<compile_context>
chip_gen: v6e
topology: v6e:2x2x1
jax: 0.10.0
libtpu: 0.0.40
codegen_flags: <defaults>
</compile_context>

<pallas_src>
import functools

import jax
import jax.numpy as jnp
from jax.experimental import pallas as pl
from jax.experimental.pallas import tpu as pltpu

BN_EPS = 1e-5


# ---------------------------------------------------------------------------
# Pallas kernels
# ---------------------------------------------------------------------------
def _mm_t_kernel(*refs, relu, has_residual, relu_rows):
    """One (Cout, TM) output tile of out = W @ patches + bias [+res] [+ReLU].

    Lane-dense layout: lanes carry the spatial*batch dim (TM), sublanes carry
    output channels. MXU matmul in bf16 with f32 accumulation; bias, residual
    and ReLU fused in the f32 VPU epilogue; bf16 store.
    """
    idx = 0
    x_ref = refs[idx]; idx += 1           # (K, TM)   bf16 patches
    w_ref = refs[idx]; idx += 1           # (Co, K)   bf16, BN scale folded in
    b_ref = refs[idx]; idx += 1           # (Co, 1)   f32 bias
    res_ref = None
    if has_residual:
        res_ref = refs[idx]; idx += 1     # (Co, TM)  bf16 residual
    o_ref = refs[idx]                     # (Co, TM)  bf16 output

    acc = jnp.dot(w_ref[...], x_ref[...], preferred_element_type=jnp.float32)
    y = acc + b_ref[...]
    if has_residual:
        y = y + res_ref[...].astype(jnp.float32)

    if relu_rows is not None:
        # Fused conv1+downsample block: ReLU only on the main-path channel rows
        # (static, sublane-aligned channel-range stores; no mask input).
        o_ref[:relu_rows, :] = jnp.maximum(y[:relu_rows, :], 0.0).astype(o_ref.dtype)
        o_ref[relu_rows:, :] = y[relu_rows:, :].astype(o_ref.dtype)
    else:
        if relu:
            y = jnp.maximum(y, 0.0)
        o_ref[...] = y.astype(o_ref.dtype)


def _gap_fc_kernel(x_ref, w_ref, b_ref, o_ref):
    """Fused AdaptiveAvgPool2d((1,1)) + flatten + both FC heads (concatenated).

    x_ref: (C, N, H*W) bf16; w_ref: (n_out, C) f32; output (n_out, N) f32.
    """
    feat = jnp.mean(x_ref[...].astype(jnp.float32), axis=2)            # (C, N)
    o_ref[...] = (jnp.dot(w_ref[...], feat,
                          preferred_element_type=jnp.float32) + b_ref[...])


# ---------------------------------------------------------------------------
# Pallas wrappers
# ---------------------------------------------------------------------------
def _pick_tile_m(M):
    """>=2 grid steps where possible (megacore), lane tile a multiple of 128,
    capped at 1024 lanes (f32 accumulator stays small on v5e)."""
    if M >= 256 and M % 256 == 0:
        return min(1024, M // 2)
    return M


def matmul_bn_act_t(x_t, w_t, bias, residual=None, relu=False, relu_rows=None):
    """out(Co, M) = w_t(Co, K) @ x_t(K, M) + bias [+ residual] [+ ReLU]."""
    K, M = x_t.shape
    Co, K2 = w_t.shape
    assert K == K2
    TM = _pick_tile_m(M)
    assert M % TM == 0, (M, TM)
    grid = (M // TM,)

    args = [x_t.astype(jnp.bfloat16),
            w_t.astype(jnp.bfloat16),
            bias.reshape(Co, 1).astype(jnp.float32)]
    in_specs = [pl.BlockSpec((K, TM), lambda i: (0, i)),
                pl.BlockSpec((Co, K), lambda i: (0, 0)),
                pl.BlockSpec((Co, 1), lambda i: (0, 0))]
    # Let XLA fuse the im2col / reshape / bf16-cast producers into the Pallas
    # input copy (no HBM materialization of the patch matrix).
    allow_fusion = [True, False, False]
    if residual is not None:
        args.append(residual.astype(jnp.bfloat16))
        in_specs.append(pl.BlockSpec((Co, TM), lambda i: (0, i)))
        allow_fusion.append(True)

    flops = 2 * Co * K * M
    bytes_accessed = (K * M * 2 + Co * K * 2 + Co * 4 + Co * M * 2
                      + (Co * M * 2 if residual is not None else 0))

    kernel = functools.partial(_mm_t_kernel, relu=relu,
                               has_residual=residual is not None,
                               relu_rows=relu_rows)
    return pl.pallas_call(
        kernel,
        out_shape=jax.ShapeDtypeStruct((Co, M), jnp.bfloat16),
        grid=grid,
        in_specs=in_specs,
        out_specs=pl.BlockSpec((Co, TM), lambda i: (0, i)),
        compiler_params=pltpu.CompilerParams(
            dimension_semantics=("parallel",),        # split M tiles across TCs
            allow_input_fusion=allow_fusion),
        cost_estimate=pl.CostEstimate(flops=flops, transcendentals=0,
                                      bytes_accessed=bytes_accessed),
    )(*args)


def gap_fc_t(x4, w_cat, b_cat):
    """x4: (C, N, H, W) bf16 -> (N, n_out) f32 via fused GAP + both FC heads."""
    C, N, H, W = x4.shape
    n_out = w_cat.shape[0]
    x3 = x4.reshape(C, N, H * W)
    args = [x3,
            w_cat.astype(jnp.float32),
            b_cat.reshape(n_out, 1).astype(jnp.float32)]
    in_specs = [pl.BlockSpec(a.shape, lambda *_, nd=a.ndim: (0,) * nd)
                for a in args]
    out_t = pl.pallas_call(
        _gap_fc_kernel,
        out_shape=jax.ShapeDtypeStruct((n_out, N), jnp.float32),
        in_specs=in_specs,
        out_specs=pl.BlockSpec((n_out, N), lambda: (0, 0)),
        compiler_params=pltpu.CompilerParams(
            allow_input_fusion=[True, False, False]),
        cost_estimate=pl.CostEstimate(
            flops=2 * n_out * C * N + C * N * H * W,
            transcendentals=0,
            bytes_accessed=C * N * H * W * 2 + n_out * C * 4 + n_out * 4
                           + n_out * N * 4),
    )(*args)
    return out_t.T                                    # (N, n_out)


# ---------------------------------------------------------------------------
# JAX glue: transposed im2col patch extraction, maxpool (fused by XLA / into
# the Pallas input copies via allow_input_fusion)
# ---------------------------------------------------------------------------
def im2col_t(x, kh, kw, stride, pad):
    """x: (C, N, H, W) -> (kh*kw*C, N*Ho*Wo); rows ordered (dy, dx) outer, C inner."""
    C, N, H, W = x.shape
    Ho = (H + 2 * pad - kh) // stride + 1
    Wo = (W + 2 * pad - kw) // stride + 1
    xp = jnp.pad(x, ((0, 0), (0, 0), (pad, pad), (pad, pad)))
    taps = []
    for dy in range(kh):
        for dx in range(kw):
            taps.append(xp[:, :, dy:dy + stride * (Ho - 1) + 1:stride,
                           dx:dx + stride * (Wo - 1) + 1:stride])
    pat = jnp.stack(taps, axis=0)                     # (kh*kw, C, N, Ho, Wo)
    return pat.reshape(kh * kw * C, N * Ho * Wo), (N, Ho, Wo)


def conv_mm_t(x, w_t, bias, *, kh, kw, stride, pad, relu,
              residual=None, relu_rows=None):
    """x: (Cin, N, H, W); returns (Cout_total, N, Ho, Wo) bf16."""
    x2d, (N, Ho, Wo) = im2col_t(x, kh, kw, stride, pad)
    co = w_t.shape[0]
    res2d = residual.reshape(residual.shape[0], -1) if residual is not None else None
    out2d = matmul_bn_act_t(x2d, w_t, bias, residual=res2d, relu=relu,
                            relu_rows=relu_rows)
    return out2d.reshape(co, N, Ho, Wo)


def maxpool_t_3x3_s2_p1(x):
    # jnp.maximum tree over the 9 shifted views; XLA fuses it in place.
    C, N, H, W = x.shape
    k, s, p = 3, 2, 1
    Ho = (H + 2 * p - k) // s + 1
    Wo = (W + 2 * p - k) // s + 1
    xp = jnp.pad(x, ((0, 0), (0, 0), (p, p), (p, p)), constant_values=-jnp.inf)
    out = None
    for dy in range(k):
        for dx in range(k):
            v = xp[:, :, dy:dy + s * (Ho - 1) + 1:s,
                   dx:dx + s * (Wo - 1) + 1:s]
            out = v if out is None else jnp.maximum(out, v)
    return out


# ---------------------------------------------------------------------------
# Parameters (deterministic synthetic init, PyTorch layouts) + pre-transform
# ---------------------------------------------------------------------------
def fold_bn(gamma, beta, mean, var):
    scale = gamma / jnp.sqrt(var + BN_EPS)
    bias = beta - mean * scale
    return scale, bias


def init_conv(key, co, ci, kh, kw):
    return 0.1 * jax.random.normal(key, (co, ci, kh, kw), jnp.float32)


def init_bn(key, c):
    k1, k2, k3, k4 = jax.random.split(key, 4)
    gamma = 1.0 + 0.1 * jax.random.normal(k1, (c,), jnp.float32)
    beta = 0.1 * jax.random.normal(k2, (c,), jnp.float32)
    mean = 0.1 * jax.random.normal(k3, (c,), jnp.float32)
    var = 1.0 + 0.1 * jax.random.uniform(k4, (c,), jnp.float32)
    return fold_bn(gamma, beta, mean, var)


def init_basic_block(key, cin, cout, stride):
    ks = jax.random.split(key, 6)
    p = {
        "stride": stride,
        "conv1_w": init_conv(ks[0], cout, cin, 3, 3),
        "bn1": init_bn(ks[1], cout),
        "conv2_w": init_conv(ks[2], cout, cout, 3, 3),
        "bn2": init_bn(ks[3], cout),
    }
    if stride != 1 or cin != cout:
        p["down_w"] = init_conv(ks[4], cout, cin, 1, 1)
        p["down_bn"] = init_bn(ks[5], cout)
    return p


def init_resnet2fcl_params(key, in_ch=3, widths=(8, 16, 32, 64),
                           blocks=(1, 1, 1, 1), fc_out=(10, 5)):
    keys = jax.random.split(key, 16)
    params = {
        "conv1_w": init_conv(keys[0], widths[0], in_ch, 7, 7),
        "bn1": init_bn(keys[1], widths[0]),
        "layers": [],
    }
    cin = widths[0]
    ki = 2
    for li, (w, nb) in enumerate(zip(widths, blocks)):
        stride = 1 if li == 0 else 2
        layer_p = []
        for b in range(nb):
            layer_p.append(init_basic_block(keys[ki], cin, w,
                                            stride if b == 0 else 1))
            ki += 1
            cin = w
        params["layers"].append(layer_p)
    kf = jax.random.split(keys[ki], 4)
    params["fc1_w"] = 0.1 * jax.random.normal(kf[0], (fc_out[0], cin), jnp.float32)
    params["fc1_b"] = 0.01 * jax.random.normal(kf[1], (fc_out[0],), jnp.float32)
    params["fc2_w"] = 0.1 * jax.random.normal(kf[2], (fc_out[1], cin), jnp.float32)
    params["fc2_b"] = 0.01 * jax.random.normal(kf[3], (fc_out[1],), jnp.float32)
    return params


def _conv_wt(w_oihw, scale, dtype=jnp.bfloat16):
    """OIHW -> (Cout, kh*kw*Cin), columns ordered (dy, dx, cin); BN scale folded."""
    co, ci, kh, kw = w_oihw.shape
    w = jnp.transpose(w_oihw, (0, 2, 3, 1)).reshape(co, kh * kw * ci)
    return (w * scale[:, None]).astype(dtype)


def prepare_params(raw):
    """Pre-transform all parameters once into kernel-ready transposed layout."""
    prep = {
        "conv1_wt": _conv_wt(raw["conv1_w"], raw["bn1"][0]),
        "conv1_bias": raw["bn1"][1],
        "layers": [],
    }
    for layer in raw["layers"]:
        lp = []
        for bp in layer:
            stride = bp["stride"]
            cout, cin = bp["conv1_w"].shape[0], bp["conv1_w"].shape[1]
            entry = {
                "stride": stride,
                "cout": cout,
                "conv2_wt": _conv_wt(bp["conv2_w"], bp["bn2"][0]),
                "bn2_bias": bp["bn2"][1],
            }
            if "down_w" in bp:
                # Fuse the 1x1 stride-s downsample conv into conv1's matmul:
                # its columns live at the 3x3 center tap (dy=1, dx=1).
                s1, b1 = bp["bn1"]
                sd, bd = bp["down_bn"]
                w_main = jnp.transpose(bp["conv1_w"], (0, 2, 3, 1)).reshape(cout, 9 * cin)
                w_main = w_main * s1[:, None]
                w_down = bp["down_w"].reshape(cout, cin) * sd[:, None]
                center = 4  # tap index of (dy=1, dx=1) in a 3x3 kernel
                w_dfull = jnp.zeros((cout, 9 * cin), jnp.float32)
                w_dfull = w_dfull.at[:, center * cin:(center + 1) * cin].set(w_down)
                entry["fused_wt"] = jnp.concatenate(
                    [w_main, w_dfull], axis=0).astype(jnp.bfloat16)     # (2*cout, K)
                entry["fused_bias"] = jnp.concatenate([b1, bd])
            else:
                entry["conv1_wt"] = _conv_wt(bp["conv1_w"], bp["bn1"][0])
                entry["bn1_bias"] = bp["bn1"][1]
            lp.append(entry)
        prep["layers"].append(lp)
    # Fused GAP + both FC heads: one (15, C) matmul, split outside.
    prep["fc_w"] = jnp.concatenate([raw["fc1_w"], raw["fc2_w"]], axis=0).astype(jnp.float32)
    prep["fc_b"] = jnp.concatenate([raw["fc1_b"], raw["fc2_b"]]).astype(jnp.float32)
    prep["fc_splits"] = (raw["fc1_w"].shape[0], raw["fc2_w"].shape[0])
    return prep


# ---------------------------------------------------------------------------
# Forward pass (== ResNet2FCL.forward), jit'ed as a whole
# ---------------------------------------------------------------------------
def basic_block_forward(x, bp):
    stride, cout = bp["stride"], bp["cout"]
    if "fused_wt" in bp:
        # conv1 + downsample fused into one matmul (2*cout output channel rows);
        # ReLU applied only to the main-path rows inside the kernel.
        fused = conv_mm_t(x, bp["fused_wt"], bp["fused_bias"],
                          kh=3, kw=3, stride=stride, pad=1, relu=False,
                          relu_rows=cout)
        out = fused[:cout]            # relu(bn1(conv1(x)))
        identity = fused[cout:]       # down_bn(down_conv(x))
    else:
        out = conv_mm_t(x, bp["conv1_wt"], bp["bn1_bias"],
                        kh=3, kw=3, stride=stride, pad=1, relu=True)
        identity = x
    # conv2 + bn2 + residual add + relu fused in one Pallas kernel
    out = conv_mm_t(out, bp["conv2_wt"], bp["bn2_bias"],
                    kh=3, kw=3, stride=1, pad=1, relu=True, residual=identity)
    return out


def resnet2fcl_forward(prep, x_nchw):
    # NCHW -> channel-major (C, N, H, W), bf16 activations throughout.
    x = jnp.transpose(x_nchw, (1, 0, 2, 3)).astype(jnp.bfloat16)
    x = conv_mm_t(x, prep["conv1_wt"], prep["conv1_bias"],
                  kh=7, kw=7, stride=2, pad=3, relu=True)          # conv1+bn1+relu
    x = maxpool_t_3x3_s2_p1(x)                                     # maxpool
    for layer_blocks in prep["layers"]:                            # layer1..layer4
        for bp in layer_blocks:
            x = basic_block_forward(x, bp)
    fc_out = gap_fc_t(x, prep["fc_w"], prep["fc_b"])               # avgpool + fc1/fc2
    n1, n2 = prep["fc_splits"]
    return [fc_out[:, :n1], fc_out[:, n1:n1 + n2]]


# ---------------------------------------------------------------------------
# Pure-JAX reference (lax.conv) mirroring the bf16 / BN-fold numerics
# ---------------------------------------------------------------------------
def reference_forward(raw, x_nchw):
    def conv(x, w_oihw, scale, bias, stride, pad, relu, residual=None):
        w = jnp.transpose(w_oihw, (2, 3, 1, 0)) * scale            # HWIO, scale folded
        y = jax.lax.conv_general_dilated(
            x.astype(jnp.bfloat16), w.astype(jnp.bfloat16),
            window_strides=(stride, stride),
            padding=[(pad, pad), (pad, pad)],
            dimension_numbers=("NHWC", "HWIO", "NHWC"),
            preferred_element_type=jnp.float32)
        y = y + bias
        if residual is not None:
            y = y + residual.astype(jnp.float32)
        if relu:
            y = jnp.maximum(y, 0.0)
        return y.astype(jnp.bfloat16)

    def maxpool(x):
        N, H, W, C = x.shape
        k, s, p = 3, 2, 1
        Ho = (H + 2 * p - k) // s + 1
        Wo = (W + 2 * p - k) // s + 1
        xp = jnp.pad(x, ((0, 0), (p, p), (p, p), (0, 0)),
                     constant_values=-jnp.inf)
        out = None
        for dy in range(k):
            for dx in range(k):
                v = xp[:, dy:dy + s * (Ho - 1) + 1:s,
                       dx:dx + s * (Wo - 1) + 1:s, :]
                out = v if out is None else jnp.maximum(out, v)
        return out

    x = jnp.transpose(x_nchw, (0, 2, 3, 1)).astype(jnp.bfloat16)
    x = conv(x, raw["conv1_w"], *raw["bn1"], 2, 3, True)
    x = maxpool(x)
    for layer in raw["layers"]:
        for bp in layer:
            s = bp["stride"]
            if "down_w" in bp:
                identity = conv(x, bp["down_w"], *bp["down_bn"], s, 0, False)
            else:
                identity = x
            out = conv(x, bp["conv1_w"], *bp["bn1"], s, 1, True)
            x = conv(out, bp["conv2_w"], *bp["bn2"], 1, 1, True, residual=identity)
    feat = jnp.mean(x.astype(jnp.float32), axis=(1, 2))
    fc1 = feat @ raw["fc1_w"].T + raw["fc1_b"]
    fc2 = feat @ raw["fc2_w"].T + raw["fc2_b"]
    return [fc1, fc2]


if __name__ == "__main__":
    key = jax.random.PRNGKey(0)
    kp, kx = jax.random.split(key)
    raw_params = init_resnet2fcl_params(kp, in_ch=3)
    prep_params = prepare_params(raw_params)
    x = jax.random.normal(kx, (2, 3, 64, 64), jnp.float32)   # NCHW like PyTorch

    fwd = jax.jit(functools.partial(resnet2fcl_forward, prep_params))
    out = jax.block_until_ready(fwd(x))

    assert out[0].shape == (2, 10) and out[1].shape == (2, 5)
    assert all(bool(jnp.all(jnp.isfinite(o))) for o in out)

    # Sanity check against a pure-JAX reference built from the raw PyTorch-layout
    # params (verifies the transposed lane-dense matmuls, the downsample /
    # avgpool / FC fusions and the bf16 activation path).
    ref = jax.block_until_ready(jax.jit(functools.partial(reference_forward,
                                                          raw_params))(x))
    for o, r in zip(out, ref):
        assert bool(jnp.allclose(o, r, atol=5e-2, rtol=5e-2)), \
            float(jnp.max(jnp.abs(o - r)))

    print("KERNEL_OK")
</pallas_src>

<mosaic_0001>
module attributes {stable_mosaic.version = 11 : i64} {
  func.func @_mm_t_kernel(%arg0: i32, %arg1: memref<147x1024xbf16, #tpu.memory_space<vmem>>, %arg2: memref<8x147xbf16, #tpu.memory_space<vmem>>, %arg3: memref<8x1xf32, #tpu.memory_space<vmem>>, %arg4: memref<8x1024xbf16, #tpu.memory_space<vmem>>) attributes {dimension_semantics = [#tpu.dimension_semantics<parallel>], iteration_bounds = array<i64: 2>, scalar_prefetch = 0 : i64, scratch_operands = 0 : i64, tpu.core_type = #tpu.core_type<tc>, window_params = [{transform_indices = @transform_0, window_bounds = array<i64: 147, 1024>}, {pipeline_mode = #tpu.pipeline_mode<synchronous>, transform_indices = @transform_1, window_bounds = array<i64: 8, 147>}, {pipeline_mode = #tpu.pipeline_mode<synchronous>, transform_indices = @transform_2, window_bounds = array<i64: 8, 1>}, {transform_indices = @transform_3, window_bounds = array<i64: 8, 1024>}]} {
    %c0 = arith.constant 0 : index
    %c0_0 = arith.constant 0 : index
    %0 = vector.load %arg2[%c0, %c0_0] : memref<8x147xbf16, #tpu.memory_space<vmem>>, vector<8x147xbf16>
    %c0_1 = arith.constant 0 : index
    %c0_2 = arith.constant 0 : index
    %1 = vector.load %arg1[%c0_1, %c0_2] : memref<147x1024xbf16, #tpu.memory_space<vmem>>, vector<147x1024xbf16>
    %cst = arith.constant dense<0.000000e+00> : vector<8x1024xf32>
    %2 = tpu.matmul %0, %1, %cst {dimension_numbers = #tpu.dot_dimension_numbers<[1], [0], [0], [1], [0, 0, 1, 1], [], []>} : vector<8x147xbf16>, vector<147x1024xbf16>, vector<8x1024xf32> -> vector<8x1024xf32>
    %c0_3 = arith.constant 0 : index
    %c0_4 = arith.constant 0 : index
    %3 = vector.load %arg3[%c0_3, %c0_4] : memref<8x1xf32, #tpu.memory_space<vmem>>, vector<8x1xf32>
    %4 = vector.broadcast %3 : vector<8x1xf32> to vector<8x1024xf32>
    %5 = arith.addf %2, %4 : vector<8x1024xf32>
    %cst_5 = arith.constant 0.000000e+00 : f32
    %6 = vector.broadcast %cst_5 : f32 to vector<8x1024xf32>
    %7 = arith.maximumf %5, %6 : vector<8x1024xf32>
    %8 = arith.truncf %7 : vector<8x1024xf32> to vector<8x1024xbf16>
    %c0_6 = arith.constant 0 : index
    %c0_7 = arith.constant 0 : index
    %9 = vector.load %arg4[%c0_6, %c0_7] : memref<8x1024xbf16, #tpu.memory_space<vmem>>, vector<8x1024xbf16>
    tpu.vector_store %arg4[%c0_6, %c0_7], %8 {strides = array<i32>} : memref<8x1024xbf16, #tpu.memory_space<vmem>>, vector<8x1024xbf16>,
    return
  }
  func.func @transform_0(%arg0: i32) -> (i32, i32) {
    %c0_i32 = arith.constant 0 : i32
    %c0_i32_0 = arith.constant 0 : i32
    return %c0_i32, %arg0 : i32, i32
  }
  func.func @transform_1(%arg0: i32) -> (i32, i32) {
    %c0_i32 = arith.constant 0 : i32
    %c0_i32_0 = arith.constant 0 : i32
    %c0_i32_1 = arith.constant 0 : i32
    return %c0_i32, %c0_i32_0 : i32, i32
  }
  func.func @transform_2(%arg0: i32) -> (i32, i32) {
    %c0_i32 = arith.constant 0 : i32
    %c0_i32_0 = arith.constant 0 : i32
    %c0_i32_1 = arith.constant 0 : i32
    return %c0_i32, %c0_i32_0 : i32, i32
  }
  func.func @transform_3(%arg0: i32) -> (i32, i32) {
    %c0_i32 = arith.constant 0 : i32
    %c0_i32_0 = arith.constant 0 : i32
    return %c0_i32, %arg0 : i32, i32
  }
}

module attributes {stable_mosaic.version = 11 : i64} {
  func.func @_mm_t_kernel(%arg0: i32, %arg1: memref<72x256xbf16, #tpu.memory_space<vmem>>, %arg2: memref<8x72xbf16, #tpu.memory_space<vmem>>, %arg3: memref<8x1xf32, #tpu.memory_space<vmem>>, %arg4: memref<8x256xbf16, #tpu.memory_space<vmem>>) attributes {dimension_semantics = [#tpu.dimension_semantics<parallel>], iteration_bounds = array<i64: 2>, scalar_prefetch = 0 : i64, scratch_operands = 0 : i64, tpu.core_type = #tpu.core_type<tc>, window_params = [{transform_indices = @transform_0, window_bounds = array<i64: 72, 256>}, {pipeline_mode = #tpu.pipeline_mode<synchronous>, transform_indices = @transform_1, window_bounds = array<i64: 8, 72>}, {pipeline_mode = #tpu.pipeline_mode<synchronous>, transform_indices = @transform_2, window_bounds = array<i64: 8, 1>}, {transform_indices = @transform_3, window_bounds = array<i64: 8, 256>}]} {
    %c0 = arith.constant 0 : index
    %c0_0 = arith.constant 0 : index
    %0 = vector.load %arg2[%c0, %c0_0] : memref<8x72xbf16, #tpu.memory_space<vmem>>, vector<8x72xbf16>
    %c0_1 = arith.constant 0 : index
    %c0_2 = arith.constant 0 : index
    %1 = vector.load %arg1[%c0_1, %c0_2] : memref<72x256xbf16, #tpu.memory_space<vmem>>, vector<72x256xbf16>
    %cst = arith.constant dense<0.000000e+00> : vector<8x256xf32>
    %2 = tpu.matmul %0, %1, %cst {dimension_numbers = #tpu.dot_dimension_numbers<[1], [0], [0], [1], [0, 0, 1, 1], [], []>} : vector<8x72xbf16>, vector<72x256xbf16>, vector<8x256xf32> -> vector<8x256xf32>
    %c0_3 = arith.constant 0 : index
    %c0_4 = arith.constant 0 : index
    %3 = vector.load %arg3[%c0_3, %c0_4] : memref<8x1xf32, #tpu.memory_space<vmem>>, vector<8x1xf32>
    %4 = vector.broadcast %3 : vector<8x1xf32> to vector<8x256xf32>
    %5 = arith.addf %2, %4 : vector<8x256xf32>
    %cst_5 = arith.constant 0.000000e+00 : f32
    %6 = vector.broadcast %cst_5 : f32 to vector<8x256xf32>
    %7 = arith.maximumf %5, %6 : vector<8x256xf32>
    %8 = arith.truncf %7 : vector<8x256xf32> to vector<8x256xbf16>
    %c0_6 = arith.constant 0 : index
    %c0_7 = arith.constant 0 : index
    %9 = vector.load %arg4[%c0_6, %c0_7] : memref<8x256xbf16, #tpu.memory_space<vmem>>, vector<8x256xbf16>
    tpu.vector_store %arg4[%c0_6, %c0_7], %8 {strides = array<i32>} : memref<8x256xbf16, #tpu.memory_space<vmem>>, vector<8x256xbf16>,
    return
  }
  func.func @transform_0(%arg0: i32) -> (i32, i32) {
    %c0_i32 = arith.constant 0 : i32
    %c0_i32_0 = arith.constant 0 : i32
    return %c0_i32, %arg0 : i32, i32
  }
  func.func @transform_1(%arg0: i32) -> (i32, i32) {
    %c0_i32 = arith.constant 0 : i32
    %c0_i32_0 = arith.constant 0 : i32
    %c0_i32_1 = arith.constant 0 : i32
    return %c0_i32, %c0_i32_0 : i32, i32
  }
  func.func @transform_2(%arg0: i32) -> (i32, i32) {
    %c0_i32 = arith.constant 0 : i32
    %c0_i32_0 = arith.constant 0 : i32
    %c0_i32_1 = arith.constant 0 : i32
    return %c0_i32, %c0_i32_0 : i32, i32
  }
  func.func @transform_3(%arg0: i32) -> (i32, i32) {
    %c0_i32 = arith.constant 0 : i32
    %c0_i32_0 = arith.constant 0 : i32
    return %c0_i32, %arg0 : i32, i32
  }
}

module attributes {stable_mosaic.version = 11 : i64} {
  func.func @_mm_t_kernel(%arg0: i32, %arg1: memref<72x256xbf16, #tpu.memory_space<vmem>>, %arg2: memref<8x72xbf16, #tpu.memory_space<vmem>>, %arg3: memref<8x1xf32, #tpu.memory_space<vmem>>, %arg4: memref<8x256xbf16, #tpu.memory_space<vmem>>, %arg5: memref<8x256xbf16, #tpu.memory_space<vmem>>) attributes {dimension_semantics = [#tpu.dimension_semantics<parallel>], iteration_bounds = array<i64: 2>, scalar_prefetch = 0 : i64, scratch_operands = 0 : i64, tpu.core_type = #tpu.core_type<tc>, window_params = [{transform_indices = @transform_0, window_bounds = array<i64: 72, 256>}, {pipeline_mode = #tpu.pipeline_mode<synchronous>, transform_indices = @transform_1, window_bounds = array<i64: 8, 72>}, {pipeline_mode = #tpu.pipeline_mode<synchronous>, transform_indices = @transform_2, window_bounds = array<i64: 8, 1>}, {transform_indices = @transform_3, window_bounds = array<i64: 8, 256>}, {transform_indices = @transform_4, window_bounds = array<i64: 8, 256>}]} {
    %c0 = arith.constant 0 : index
    %c0_0 = arith.constant 0 : index
    %0 = vector.load %arg2[%c0, %c0_0] : memref<8x72xbf16, #tpu.memory_space<vmem>>, vector<8x72xbf16>
    %c0_1 = arith.constant 0 : index
    %c0_2 = arith.constant 0 : index
    %1 = vector.load %arg1[%c0_1, %c0_2] : memref<72x256xbf16, #tpu.memory_space<vmem>>, vector<72x256xbf16>
    %cst = arith.constant dense<0.000000e+00> : vector<8x256xf32>
    %2 = tpu.matmul %0, %1, %cst {dimension_numbers = #tpu.dot_dimension_numbers<[1], [0], [0], [1], [0, 0, 1, 1], [], []>} : vector<8x72xbf16>, vector<72x256xbf16>, vector<8x256xf32> -> vector<8x256xf32>
    %c0_3 = arith.constant 0 : index
    %c0_4 = arith.constant 0 : index
    %3 = vector.load %arg3[%c0_3, %c0_4] : memref<8x1xf32, #tpu.memory_space<vmem>>, vector<8x1xf32>
    %4 = vector.broadcast %3 : vector<8x1xf32> to vector<8x256xf32>
    %5 = arith.addf %2, %4 : vector<8x256xf32>
    %c0_5 = arith.constant 0 : index
    %c0_6 = arith.constant 0 : index
    %6 = vector.load %arg4[%c0_5, %c0_6] : memref<8x256xbf16, #tpu.memory_space<vmem>>, vector<8x256xbf16>
    %7 = arith.extf %6 : vector<8x256xbf16> to vector<8x256xf32>
    %8 = arith.addf %5, %7 : vector<8x256xf32>
    %cst_7 = arith.constant 0.000000e+00 : f32
    %9 = vector.broadcast %cst_7 : f32 to vector<8x256xf32>
    %10 = arith.maximumf %8, %9 : vector<8x256xf32>
    %11 = arith.truncf %10 : vector<8x256xf32> to vector<8x256xbf16>
    %c0_8 = arith.constant 0 : index
    %c0_9 = arith.constant 0 : index
    %12 = vector.load %arg5[%c0_8, %c0_9] : memref<8x256xbf16, #tpu.memory_space<vmem>>, vector<8x256xbf16>
    tpu.vector_store %arg5[%c0_8, %c0_9], %11 {strides = array<i32>} : memref<8x256xbf16, #tpu.memory_space<vmem>>, vector<8x256xbf16>,
    return
  }
  func.func @transform_0(%arg0: i32) -> (i32, i32) {
    %c0_i32 = arith.constant 0 : i32
    %c0_i32_0 = arith.constant 0 : i32
    return %c0_i32, %arg0 : i32, i32
  }
  func.func @transform_1(%arg0: i32) -> (i32, i32) {
    %c0_i32 = arith.constant 0 : i32
    %c0_i32_0 = arith.constant 0 : i32
    %c0_i32_1 = arith.constant 0 : i32
    return %c0_i32, %c0_i32_0 : i32, i32
  }
  func.func @transform_2(%arg0: i32) -> (i32, i32) {
    %c0_i32 = arith.constant 0 : i32
    %c0_i32_0 = arith.constant 0 : i32
    %c0_i32_1 = arith.constant 0 : i32
    return %c0_i32, %c0_i32_0 : i32, i32
  }
  func.func @transform_3(%arg0: i32) -> (i32, i32) {
    %c0_i32 = arith.constant 0 : i32
    %c0_i32_0 = arith.constant 0 : i32
    return %c0_i32, %arg0 : i32, i32
  }
  func.func @transform_4(%arg0: i32) -> (i32, i32) {
    %c0_i32 = arith.constant 0 : i32
    %c0_i32_0 = arith.constant 0 : i32
    return %c0_i32, %arg0 : i32, i32
  }
}

module attributes {stable_mosaic.version = 11 : i64} {
  func.func @_mm_t_kernel(%arg0: i32, %arg1: memref<72x128xbf16, #tpu.memory_space<vmem>>, %arg2: memref<32x72xbf16, #tpu.memory_space<vmem>>, %arg3: memref<32x1xf32, #tpu.memory_space<vmem>>, %arg4: memref<32x128xbf16, #tpu.memory_space<vmem>>) attributes {dimension_semantics = [#tpu.dimension_semantics<parallel>], iteration_bounds = array<i64: 1>, scalar_prefetch = 0 : i64, scratch_operands = 0 : i64, tpu.core_type = #tpu.core_type<tc>, window_params = [{transform_indices = @transform_0, window_bounds = array<i64: 72, 128>}, {pipeline_mode = #tpu.pipeline_mode<synchronous>, transform_indices = @transform_1, window_bounds = array<i64: 32, 72>}, {pipeline_mode = #tpu.pipeline_mode<synchronous>, transform_indices = @transform_2, window_bounds = array<i64: 32, 1>}, {transform_indices = @transform_3, window_bounds = array<i64: 32, 128>}]} {
    %c0 = arith.constant 0 : index
    %c0_0 = arith.constant 0 : index
    %0 = vector.load %arg2[%c0, %c0_0] : memref<32x72xbf16, #tpu.memory_space<vmem>>, vector<32x72xbf16>
    %c0_1 = arith.constant 0 : index
    %c0_2 = arith.constant 0 : index
    %1 = vector.load %arg1[%c0_1, %c0_2] : memref<72x128xbf16, #tpu.memory_space<vmem>>, vector<72x128xbf16>
    %cst = arith.constant dense<0.000000e+00> : vector<32x128xf32>
    %2 = tpu.matmul %0, %1, %cst {dimension_numbers = #tpu.dot_dimension_numbers<[1], [0], [0], [1], [0, 0, 1, 1], [], []>} : vector<32x72xbf16>, vector<72x128xbf16>, vector<32x128xf32> -> vector<32x128xf32>
    %c0_3 = arith.constant 0 : index
    %c0_4 = arith.constant 0 : index
    %3 = vector.load %arg3[%c0_3, %c0_4] : memref<32x1xf32, #tpu.memory_space<vmem>>, vector<32x1xf32>
    %4 = vector.broadcast %3 : vector<32x1xf32> to vector<32x128xf32>
    %5 = arith.addf %2, %4 : vector<32x128xf32>
    %6 = vector.extract_strided_slice %5 {offsets = [0, 0], sizes = [16, 128], strides = [1, 1]} : vector<32x128xf32> to vector<16x128xf32>
    %cst_5 = arith.constant 0.000000e+00 : f32
    %7 = vector.broadcast %cst_5 : f32 to vector<16x128xf32>
    %8 = arith.maximumf %6, %7 : vector<16x128xf32>
    %9 = arith.truncf %8 : vector<16x128xf32> to vector<16x128xbf16>
    %c0_6 = arith.constant 0 : index
    %c0_7 = arith.constant 0 : index
    %10 = vector.load %arg4[%c0_6, %c0_7] : memref<32x128xbf16, #tpu.memory_space<vmem>>, vector<16x128xbf16>
    tpu.vector_store %arg4[%c0_6, %c0_7], %9 {strides = array<i32>} : memref<32x128xbf16, #tpu.memory_space<vmem>>, vector<16x128xbf16>,
    %11 = vector.extract_strided_slice %5 {offsets = [16, 0], sizes = [16, 128], strides = [1, 1]} : vector<32x128xf32> to vector<16x128xf32>
    %12 = arith.truncf %11 : vector<16x128xf32> to vector<16x128xbf16>
    %c16 = arith.constant 16 : index
    %c0_8 = arith.constant 0 : index
    %13 = vector.load %arg4[%c16, %c0_8] : memref<32x128xbf16, #tpu.memory_space<vmem>>, vector<16x128xbf16>
    tpu.vector_store %arg4[%c16, %c0_8], %12 {strides = array<i32>} : memref<32x128xbf16, #tpu.memory_space<vmem>>, vector<16x128xbf16>,
    return
  }
  func.func @transform_0(%arg0: i32) -> (i32, i32) {
    %c0_i32 = arith.constant 0 : i32
    %c0_i32_0 = arith.constant 0 : i32
    return %c0_i32, %arg0 : i32, i32
  }
  func.func @transform_1(%arg0: i32) -> (i32, i32) {
    %c0_i32 = arith.constant 0 : i32
    %c0_i32_0 = arith.constant 0 : i32
    %c0_i32_1 = arith.constant 0 : i32
    return %c0_i32, %c0_i32_0 : i32, i32
  }
  func.func @transform_2(%arg0: i32) -> (i32, i32) {
    %c0_i32 = arith.constant 0 : i32
    %c0_i32_0 = arith.constant 0 : i32
    %c0_i32_1 = arith.constant 0 : i32
    return %c0_i32, %c0_i32_0 : i32, i32
  }
  func.func @transform_3(%arg0: i32) -> (i32, i32) {
    %c0_i32 = arith.constant 0 : i32
    %c0_i32_0 = arith.constant 0 : i32
    return %c0_i32, %arg0 : i32, i32
  }
}

module attributes {stable_mosaic.version = 11 : i64} {
  func.func @_mm_t_kernel(%arg0: i32, %arg1: memref<144x128xbf16, #tpu.memory_space<vmem>>, %arg2: memref<16x144xbf16, #tpu.memory_space<vmem>>, %arg3: memref<16x1xf32, #tpu.memory_space<vmem>>, %arg4: memref<16x128xbf16, #tpu.memory_space<vmem>>, %arg5: memref<16x128xbf16, #tpu.memory_space<vmem>>) attributes {dimension_semantics = [#tpu.dimension_semantics<parallel>], iteration_bounds = array<i64: 1>, scalar_prefetch = 0 : i64, scratch_operands = 0 : i64, tpu.core_type = #tpu.core_type<tc>, window_params = [{transform_indices = @transform_0, window_bounds = array<i64: 144, 128>}, {pipeline_mode = #tpu.pipeline_mode<synchronous>, transform_indices = @transform_1, window_bounds = array<i64: 16, 144>}, {pipeline_mode = #tpu.pipeline_mode<synchronous>, transform_indices = @transform_2, window_bounds = array<i64: 16, 1>}, {transform_indices = @transform_3, window_bounds = array<i64: 16, 128>}, {transform_indices = @transform_4, window_bounds = array<i64: 16, 128>}]} {
    %c0 = arith.constant 0 : index
    %c0_0 = arith.constant 0 : index
    %0 = vector.load %arg2[%c0, %c0_0] : memref<16x144xbf16, #tpu.memory_space<vmem>>, vector<16x144xbf16>
    %c0_1 = arith.constant 0 : index
    %c0_2 = arith.constant 0 : index
    %1 = vector.load %arg1[%c0_1, %c0_2] : memref<144x128xbf16, #tpu.memory_space<vmem>>, vector<144x128xbf16>
    %cst = arith.constant dense<0.000000e+00> : vector<16x128xf32>
    %2 = tpu.matmul %0, %1, %cst {dimension_numbers = #tpu.dot_dimension_numbers<[1], [0], [0], [1], [0, 0, 1, 1], [], []>} : vector<16x144xbf16>, vector<144x128xbf16>, vector<16x128xf32> -> vector<16x128xf32>
    %c0_3 = arith.constant 0 : index
    %c0_4 = arith.constant 0 : index
    %3 = vector.load %arg3[%c0_3, %c0_4] : memref<16x1xf32, #tpu.memory_space<vmem>>, vector<16x1xf32>
    %4 = vector.broadcast %3 : vector<16x1xf32> to vector<16x128xf32>
    %5 = arith.addf %2, %4 : vector<16x128xf32>
    %c0_5 = arith.constant 0 : index
    %c0_6 = arith.constant 0 : index
    %6 = vector.load %arg4[%c0_5, %c0_6] : memref<16x128xbf16, #tpu.memory_space<vmem>>, vector<16x128xbf16>
    %7 = arith.extf %6 : vector<16x128xbf16> to vector<16x128xf32>
    %8 = arith.addf %5, %7 : vector<16x128xf32>
    %cst_7 = arith.constant 0.000000e+00 : f32
    %9 = vector.broadcast %cst_7 : f32 to vector<16x128xf32>
    %10 = arith.maximumf %8, %9 : vector<16x128xf32>
    %11 = arith.truncf %10 : vector<16x128xf32> to vector<16x128xbf16>
    %c0_8 = arith.constant 0 : index
    %c0_9 = arith.constant 0 : index
    %12 = vector.load %arg5[%c0_8, %c0_9] : memref<16x128xbf16, #tpu.memory_space<vmem>>, vector<16x128xbf16>
    tpu.vector_store %arg5[%c0_8, %c0_9], %11 {strides = array<i32>} : memref<16x128xbf16, #tpu.memory_space<vmem>>, vector<16x128xbf16>,
    return
  }
  func.func @transform_0(%arg0: i32) -> (i32, i32) {
    %c0_i32 = arith.constant 0 : i32
    %c0_i32_0 = arith.constant 0 : i32
    return %c0_i32, %arg0 : i32, i32
  }
  func.func @transform_1(%arg0: i32) -> (i32, i32) {
    %c0_i32 = arith.constant 0 : i32
    %c0_i32_0 = arith.constant 0 : i32
    %c0_i32_1 = arith.constant 0 : i32
    return %c0_i32, %c0_i32_0 : i32, i32
  }
  func.func @transform_2(%arg0: i32) -> (i32, i32) {
    %c0_i32 = arith.constant 0 : i32
    %c0_i32_0 = arith.constant 0 : i32
    %c0_i32_1 = arith.constant 0 : i32
    return %c0_i32, %c0_i32_0 : i32, i32
  }
  func.func @transform_3(%arg0: i32) -> (i32, i32) {
    %c0_i32 = arith.constant 0 : i32
    %c0_i32_0 = arith.constant 0 : i32
    return %c0_i32, %arg0 : i32, i32
  }
  func.func @transform_4(%arg0: i32) -> (i32, i32) {
    %c0_i32 = arith.constant 0 : i32
    %c0_i32_0 = arith.constant 0 : i32
    return %c0_i32, %arg0 : i32, i32
  }
}

module attributes {stable_mosaic.version = 11 : i64} {
  func.func @_mm_t_kernel(%arg0: i32, %arg1: memref<144x32xbf16, #tpu.memory_space<vmem>>, %arg2: memref<64x144xbf16, #tpu.memory_space<vmem>>, %arg3: memref<64x1xf32, #tpu.memory_space<vmem>>, %arg4: memref<64x32xbf16, #tpu.memory_space<vmem>>) attributes {dimension_semantics = [#tpu.dimension_semantics<parallel>], iteration_bounds = array<i64: 1>, scalar_prefetch = 0 : i64, scratch_operands = 0 : i64, tpu.core_type = #tpu.core_type<tc>, window_params = [{transform_indices = @transform_0, window_bounds = array<i64: 144, 32>}, {pipeline_mode = #tpu.pipeline_mode<synchronous>, transform_indices = @transform_1, window_bounds = array<i64: 64, 144>}, {pipeline_mode = #tpu.pipeline_mode<synchronous>, transform_indices = @transform_2, window_bounds = array<i64: 64, 1>}, {transform_indices = @transform_3, window_bounds = array<i64: 64, 32>}]} {
    %c0 = arith.constant 0 : index
    %c0_0 = arith.constant 0 : index
    %0 = vector.load %arg2[%c0, %c0_0] : memref<64x144xbf16, #tpu.memory_space<vmem>>, vector<64x144xbf16>
    %c0_1 = arith.constant 0 : index
    %c0_2 = arith.constant 0 : index
    %1 = vector.load %arg1[%c0_1, %c0_2] : memref<144x32xbf16, #tpu.memory_space<vmem>>, vector<144x32xbf16>
    %cst = arith.constant dense<0.000000e+00> : vector<64x32xf32>
    %2 = tpu.matmul %0, %1, %cst {dimension_numbers = #tpu.dot_dimension_numbers<[1], [0], [0], [1], [0, 0, 1, 1], [], []>} : vector<64x144xbf16>, vector<144x32xbf16>, vector<64x32xf32> -> vector<64x32xf32>
    %c0_3 = arith.constant 0 : index
    %c0_4 = arith.constant 0 : index
    %3 = vector.load %arg3[%c0_3, %c0_4] : memref<64x1xf32, #tpu.memory_space<vmem>>, vector<64x1xf32>
    %4 = vector.broadcast %3 : vector<64x1xf32> to vector<64x32xf32>
    %5 = arith.addf %2, %4 : vector<64x32xf32>
    %6 = vector.extract_strided_slice %5 {offsets = [0, 0], sizes = [32, 32], strides = [1, 1]} : vector<64x32xf32> to vector<32x32xf32>
    %cst_5 = arith.constant 0.000000e+00 : f32
    %7 = vector.broadcast %cst_5 : f32 to vector<32x32xf32>
    %8 = arith.maximumf %6, %7 : vector<32x32xf32>
    %9 = arith.truncf %8 : vector<32x32xf32> to vector<32x32xbf16>
    %c0_6 = arith.constant 0 : index
    %c0_7 = arith.constant 0 : index
    %10 = vector.load %arg4[%c0_6, %c0_7] : memref<64x32xbf16, #tpu.memory_space<vmem>>, vector<32x32xbf16>
    tpu.vector_store %arg4[%c0_6, %c0_7], %9 {strides = array<i32>} : memref<64x32xbf16, #tpu.memory_space<vmem>>, vector<32x32xbf16>,
    %11 = vector.extract_strided_slice %5 {offsets = [32, 0], sizes = [32, 32], strides = [1, 1]} : vector<64x32xf32> to vector<32x32xf32>
    %12 = arith.truncf %11 : vector<32x32xf32> to vector<32x32xbf16>
    %c32 = arith.constant 32 : index
    %c0_8 = arith.constant 0 : index
    %13 = vector.load %arg4[%c32, %c0_8] : memref<64x32xbf16, #tpu.memory_space<vmem>>, vector<32x32xbf16>
    tpu.vector_store %arg4[%c32, %c0_8], %12 {strides = array<i32>} : memref<64x32xbf16, #tpu.memory_space<vmem>>, vector<32x32xbf16>,
    return
  }
  func.func @transform_0(%arg0: i32) -> (i32, i32) {
    %c0_i32 = arith.constant 0 : i32
    %c0_i32_0 = arith.constant 0 : i32
    return %c0_i32, %arg0 : i32, i32
  }
  func.func @transform_1(%arg0: i32) -> (i32, i32) {
    %c0_i32 = arith.constant 0 : i32
    %c0_i32_0 = arith.constant 0 : i32
    %c0_i32_1 = arith.constant 0 : i32
    return %c0_i32, %c0_i32_0 : i32, i32
  }
  func.func @transform_2(%arg0: i32) -> (i32, i32) {
    %c0_i32 = arith.constant 0 : i32
    %c0_i32_0 = arith.constant 0 : i32
    %c0_i32_1 = arith.constant 0 : i32
    return %c0_i32, %c0_i32_0 : i32, i32
  }
  func.func @transform_3(%arg0: i32) -> (i32, i32) {
    %c0_i32 = arith.constant 0 : i32
    %c0_i32_0 = arith.constant 0 : i32
    return %c0_i32, %arg0 : i32, i32
  }
}

module attributes {stable_mosaic.version = 11 : i64} {
  func.func @_mm_t_kernel(%arg0: i32, %arg1: memref<288x32xbf16, #tpu.memory_space<vmem>>, %arg2: memref<32x288xbf16, #tpu.memory_space<vmem>>, %arg3: memref<32x1xf32, #tpu.memory_space<vmem>>, %arg4: memref<32x32xbf16, #tpu.memory_space<vmem>>, %arg5: memref<32x32xbf16, #tpu.memory_space<vmem>>) attributes {dimension_semantics = [#tpu.dimension_semantics<parallel>], iteration_bounds = array<i64: 1>, scalar_prefetch = 0 : i64, scratch_operands = 0 : i64, tpu.core_type = #tpu.core_type<tc>, window_params = [{transform_indices = @transform_0, window_bounds = array<i64: 288, 32>}, {pipeline_mode = #tpu.pipeline_mode<synchronous>, transform_indices = @transform_1, window_bounds = array<i64: 32, 288>}, {pipeline_mode = #tpu.pipeline_mode<synchronous>, transform_indices = @transform_2, window_bounds = array<i64: 32, 1>}, {transform_indices = @transform_3, window_bounds = array<i64: 32, 32>}, {transform_indices = @transform_4, window_bounds = array<i64: 32, 32>}]} {
    %c0 = arith.constant 0 : index
    %c0_0 = arith.constant 0 : index
    %0 = vector.load %arg2[%c0, %c0_0] : memref<32x288xbf16, #tpu.memory_space<vmem>>, vector<32x288xbf16>
    %c0_1 = arith.constant 0 : index
    %c0_2 = arith.constant 0 : index
    %1 = vector.load %arg1[%c0_1, %c0_2] : memref<288x32xbf16, #tpu.memory_space<vmem>>, vector<288x32xbf16>
    %cst = arith.constant dense<0.000000e+00> : vector<32x32xf32>
    %2 = tpu.matmul %0, %1, %cst {dimension_numbers = #tpu.dot_dimension_numbers<[1], [0], [0], [1], [0, 0, 1, 1], [], []>} : vector<32x288xbf16>, vector<288x32xbf16>, vector<32x32xf32> -> vector<32x32xf32>
    %c0_3 = arith.constant 0 : index
    %c0_4 = arith.constant 0 : index
    %3 = vector.load %arg3[%c0_3, %c0_4] : memref<32x1xf32, #tpu.memory_space<vmem>>, vector<32x1xf32>
    %4 = vector.broadcast %3 : vector<32x1xf32> to vector<32x32xf32>
    %5 = arith.addf %2, %4 : vector<32x32xf32>
    %c0_5 = arith.constant 0 : index
    %c0_6 = arith.constant 0 : index
    %6 = vector.load %arg4[%c0_5, %c0_6] : memref<32x32xbf16, #tpu.memory_space<vmem>>, vector<32x32xbf16>
    %7 = arith.extf %6 : vector<32x32xbf16> to vector<32x32xf32>
    %8 = arith.addf %5, %7 : vector<32x32xf32>
    %cst_7 = arith.constant 0.000000e+00 : f32
    %9 = vector.broadcast %cst_7 : f32 to vector<32x32xf32>
    %10 = arith.maximumf %8, %9 : vector<32x32xf32>
    %11 = arith.truncf %10 : vector<32x32xf32> to vector<32x32xbf16>
    %c0_8 = arith.constant 0 : index
    %c0_9 = arith.constant 0 : index
    %12 = vector.load %arg5[%c0_8, %c0_9] : memref<32x32xbf16, #tpu.memory_space<vmem>>, vector<32x32xbf16>
    tpu.vector_store %arg5[%c0_8, %c0_9], %11 {strides = array<i32>} : memref<32x32xbf16, #tpu.memory_space<vmem>>, vector<32x32xbf16>,
    return
  }
  func.func @transform_0(%arg0: i32) -> (i32, i32) {
    %c0_i32 = arith.constant 0 : i32
    %c0_i32_0 = arith.constant 0 : i32
    return %c0_i32, %arg0 : i32, i32
  }
  func.func @transform_1(%arg0: i32) -> (i32, i32) {
    %c0_i32 = arith.constant 0 : i32
    %c0_i32_0 = arith.constant 0 : i32
    %c0_i32_1 = arith.constant 0 : i32
    return %c0_i32, %c0_i32_0 : i32, i32
  }
  func.func @transform_2(%arg0: i32) -> (i32, i32) {
    %c0_i32 = arith.constant 0 : i32
    %c0_i32_0 = arith.constant 0 : i32
    %c0_i32_1 = arith.constant 0 : i32
    return %c0_i32, %c0_i32_0 : i32, i32
  }
  func.func @transform_3(%arg0: i32) -> (i32, i32) {
    %c0_i32 = arith.constant 0 : i32
    %c0_i32_0 = arith.constant 0 : i32
    return %c0_i32, %arg0 : i32, i32
  }
  func.func @transform_4(%arg0: i32) -> (i32, i32) {
    %c0_i32 = arith.constant 0 : i32
    %c0_i32_0 = arith.constant 0 : i32
    return %c0_i32, %arg0 : i32, i32
  }
}

module attributes {stable_mosaic.version = 11 : i64} {
  func.func @_mm_t_kernel(%arg0: i32, %arg1: memref<288x8xbf16, #tpu.memory_space<vmem>>, %arg2: memref<128x288xbf16, #tpu.memory_space<vmem>>, %arg3: memref<128x1xf32, #tpu.memory_space<vmem>>, %arg4: memref<128x8xbf16, #tpu.memory_space<vmem>>) attributes {dimension_semantics = [#tpu.dimension_semantics<parallel>], iteration_bounds = array<i64: 1>, scalar_prefetch = 0 : i64, scratch_operands = 0 : i64, tpu.core_type = #tpu.core_type<tc>, window_params = [{transform_indices = @transform_0, window_bounds = array<i64: 288, 8>}, {pipeline_mode = #tpu.pipeline_mode<synchronous>, transform_indices = @transform_1, window_bounds = array<i64: 128, 288>}, {pipeline_mode = #tpu.pipeline_mode<synchronous>, transform_indices = @transform_2, window_bounds = array<i64: 128, 1>}, {transform_indices = @transform_3, window_bounds = array<i64: 128, 8>}]} {
    %c0 = arith.constant 0 : index
    %c0_0 = arith.constant 0 : index
    %0 = vector.load %arg2[%c0, %c0_0] : memref<128x288xbf16, #tpu.memory_space<vmem>>, vector<128x288xbf16>
    %c0_1 = arith.constant 0 : index
    %c0_2 = arith.constant 0 : index
    %1 = vector.load %arg1[%c0_1, %c0_2] : memref<288x8xbf16, #tpu.memory_space<vmem>>, vector<288x8xbf16>
    %cst = arith.constant dense<0.000000e+00> : vector<128x8xf32>
    %2 = tpu.matmul %0, %1, %cst {dimension_numbers = #tpu.dot_dimension_numbers<[1], [0], [0], [1], [0, 0, 1, 1], [], []>} : vector<128x288xbf16>, vector<288x8xbf16>, vector<128x8xf32> -> vector<128x8xf32>
    %c0_3 = arith.constant 0 : index
    %c0_4 = arith.constant 0 : index
    %3 = vector.load %arg3[%c0_3, %c0_4] : memref<128x1xf32, #tpu.memory_space<vmem>>, vector<128x1xf32>
    %4 = vector.broadcast %3 : vector<128x1xf32> to vector<128x8xf32>
    %5 = arith.addf %2, %4 : vector<128x8xf32>
    %6 = vector.extract_strided_slice %5 {offsets = [0, 0], sizes = [64, 8], strides = [1, 1]} : vector<128x8xf32> to vector<64x8xf32>
    %cst_5 = arith.constant 0.000000e+00 : f32
    %7 = vector.broadcast %cst_5 : f32 to vector<64x8xf32>
    %8 = arith.maximumf %6, %7 : vector<64x8xf32>
    %9 = arith.truncf %8 : vector<64x8xf32> to vector<64x8xbf16>
    %c0_6 = arith.constant 0 : index
    %c0_7 = arith.constant 0 : index
    %10 = vector.load %arg4[%c0_6, %c0_7] : memref<128x8xbf16, #tpu.memory_space<vmem>>, vector<64x8xbf16>
    tpu.vector_store %arg4[%c0_6, %c0_7], %9 {strides = array<i32>} : memref<128x8xbf16, #tpu.memory_space<vmem>>, vector<64x8xbf16>,
    %11 = vector.extract_strided_slice %5 {offsets = [64, 0], sizes = [64, 8], strides = [1, 1]} : vector<128x8xf32> to vector<64x8xf32>
    %12 = arith.truncf %11 : vector<64x8xf32> to vector<64x8xbf16>
    %c64 = arith.constant 64 : index
    %c0_8 = arith.constant 0 : index
    %13 = vector.load %arg4[%c64, %c0_8] : memref<128x8xbf16, #tpu.memory_space<vmem>>, vector<64x8xbf16>
    tpu.vector_store %arg4[%c64, %c0_8], %12 {strides = array<i32>} : memref<128x8xbf16, #tpu.memory_space<vmem>>, vector<64x8xbf16>,
    return
  }
  func.func @transform_0(%arg0: i32) -> (i32, i32) {
    %c0_i32 = arith.constant 0 : i32
    %c0_i32_0 = arith.constant 0 : i32
    return %c0_i32, %arg0 : i32, i32
  }
  func.func @transform_1(%arg0: i32) -> (i32, i32) {
    %c0_i32 = arith.constant 0 : i32
    %c0_i32_0 = arith.constant 0 : i32
    %c0_i32_1 = arith.constant 0 : i32
    return %c0_i32, %c0_i32_0 : i32, i32
  }
  func.func @transform_2(%arg0: i32) -> (i32, i32) {
    %c0_i32 = arith.constant 0 : i32
    %c0_i32_0 = arith.constant 0 : i32
    %c0_i32_1 = arith.constant 0 : i32
    return %c0_i32, %c0_i32_0 : i32, i32
  }
  func.func @transform_3(%arg0: i32) -> (i32, i32) {
    %c0_i32 = arith.constant 0 : i32
    %c0_i32_0 = arith.constant 0 : i32
    return %c0_i32, %arg0 : i32, i32
  }
}

module attributes {stable_mosaic.version = 11 : i64} {
  func.func @_gap_fc_kernel(%arg0: memref<64x2x4xbf16, #tpu.memory_space<vmem>>, %arg1: memref<15x64xf32, #tpu.memory_space<vmem>>, %arg2: memref<15x1xf32, #tpu.memory_space<vmem>>, %arg3: memref<15x2xf32, #tpu.memory_space<vmem>>) attributes {dimension_semantics = [], scalar_prefetch = 0 : i64, scratch_operands = 0 : i64, tpu.core_type = #tpu.core_type<tc>} {
    %c0 = arith.constant 0 : index
    %c0_0 = arith.constant 0 : index
    %c0_1 = arith.constant 0 : index
    %0 = vector.load %arg0[%c0, %c0_0, %c0_1] : memref<64x2x4xbf16, #tpu.memory_space<vmem>>, vector<64x2x4xbf16>
    %1 = arith.extf %0 : vector<64x2x4xbf16> to vector<64x2x4xf32>
    %cst = arith.constant dense<0.000000e+00> : vector<64x2xf32>
    %2 = vector.multi_reduction <add>, %1, %cst [2] : vector<64x2x4xf32> to vector<64x2xf32>
    %cst_2 = arith.constant 4.000000e+00 : f32
    %3 = vector.broadcast %cst_2 : f32 to vector<64x2xf32>
    %4 = arith.divf %2, %3 : vector<64x2xf32>
    %c0_3 = arith.constant 0 : index
    %c0_4 = arith.constant 0 : index
    %5 = vector.load %arg1[%c0_3, %c0_4] : memref<15x64xf32, #tpu.memory_space<vmem>>, vector<15x64xf32>
    %cst_5 = arith.constant dense<0.000000e+00> : vector<15x2xf32>
    %6 = tpu.matmul %5, %4, %cst_5 {dimension_numbers = #tpu.dot_dimension_numbers<[1], [0], [0], [1], [0, 0, 1, 1], [], []>} : vector<15x64xf32>, vector<64x2xf32>, vector<15x2xf32> -> vector<15x2xf32>
    %c0_6 = arith.constant 0 : index
    %c0_7 = arith.constant 0 : index
    %7 = vector.load %arg2[%c0_6, %c0_7] : memref<15x1xf32, #tpu.memory_space<vmem>>, vector<15x1xf32>
    %8 = vector.broadcast %7 : vector<15x1xf32> to vector<15x2xf32>
    %9 = arith.addf %6, %8 : vector<15x2xf32>
    %c0_8 = arith.constant 0 : index
    %c0_9 = arith.constant 0 : index
    %10 = vector.load %arg3[%c0_8, %c0_9] : memref<15x2xf32, #tpu.memory_space<vmem>>, vector<15x2xf32>
    tpu.vector_store %arg3[%c0_8, %c0_9], %9 {strides = array<i32>} : memref<15x2xf32, #tpu.memory_space<vmem>>, vector<15x2xf32>,
    return
  }
}

module attributes {stable_mosaic.version = 11 : i64} {
  func.func @_mm_t_kernel(%arg0: i32, %arg1: memref<576x8xbf16, #tpu.memory_space<vmem>>, %arg2: memref<64x576xbf16, #tpu.memory_space<vmem>>, %arg3: memref<64x1xf32, #tpu.memory_space<vmem>>, %arg4: memref<64x8xbf16, #tpu.memory_space<vmem>>, %arg5: memref<64x8xbf16, #tpu.memory_space<vmem>>) attributes {dimension_semantics = [#tpu.dimension_semantics<parallel>], iteration_bounds = array<i64: 1>, scalar_prefetch = 0 : i64, scratch_operands = 0 : i64, tpu.core_type = #tpu.core_type<tc>, window_params = [{transform_indices = @transform_0, window_bounds = array<i64: 576, 8>}, {pipeline_mode = #tpu.pipeline_mode<synchronous>, transform_indices = @transform_1, window_bounds = array<i64: 64, 576>}, {pipeline_mode = #tpu.pipeline_mode<synchronous>, transform_indices = @transform_2, window_bounds = array<i64: 64, 1>}, {transform_indices = @transform_3, window_bounds = array<i64: 64, 8>}, {transform_indices = @transform_4, window_bounds = array<i64: 64, 8>}]} {
    %c0 = arith.constant 0 : index
    %c0_0 = arith.constant 0 : index
    %0 = vector.load %arg2[%c0, %c0_0] : memref<64x576xbf16, #tpu.memory_space<vmem>>, vector<64x576xbf16>
    %c0_1 = arith.constant 0 : index
    %c0_2 = arith.constant 0 : index
    %1 = vector.load %arg1[%c0_1, %c0_2] : memref<576x8xbf16, #tpu.memory_space<vmem>>, vector<576x8xbf16>
    %cst = arith.constant dense<0.000000e+00> : vector<64x8xf32>
    %2 = tpu.matmul %0, %1, %cst {dimension_numbers = #tpu.dot_dimension_numbers<[1], [0], [0], [1], [0, 0, 1, 1], [], []>} : vector<64x576xbf16>, vector<576x8xbf16>, vector<64x8xf32> -> vector<64x8xf32>
    %c0_3 = arith.constant 0 : index
    %c0_4 = arith.constant 0 : index
    %3 = vector.load %arg3[%c0_3, %c0_4] : memref<64x1xf32, #tpu.memory_space<vmem>>, vector<64x1xf32>
    %4 = vector.broadcast %3 : vector<64x1xf32> to vector<64x8xf32>
    %5 = arith.addf %2, %4 : vector<64x8xf32>
    %c0_5 = arith.constant 0 : index
    %c0_6 = arith.constant 0 : index
    %6 = vector.load %arg4[%c0_5, %c0_6] : memref<64x8xbf16, #tpu.memory_space<vmem>>, vector<64x8xbf16>
    %7 = arith.extf %6 : vector<64x8xbf16> to vector<64x8xf32>
    %8 = arith.addf %5, %7 : vector<64x8xf32>
    %cst_7 = arith.constant 0.000000e+00 : f32
    %9 = vector.broadcast %cst_7 : f32 to vector<64x8xf32>
    %10 = arith.maximumf %8, %9 : vector<64x8xf32>
    %11 = arith.truncf %10 : vector<64x8xf32> to vector<64x8xbf16>
    %c0_8 = arith.constant 0 : index
    %c0_9 = arith.constant 0 : index
    %12 = vector.load %arg5[%c0_8, %c0_9] : memref<64x8xbf16, #tpu.memory_space<vmem>>, vector<64x8xbf16>
    tpu.vector_store %arg5[%c0_8, %c0_9], %11 {strides = array<i32>} : memref<64x8xbf16, #tpu.memory_space<vmem>>, vector<64x8xbf16>,
    return
  }
  func.func @transform_0(%arg0: i32) -> (i32, i32) {
    %c0_i32 = arith.constant 0 : i32
    %c0_i32_0 = arith.constant 0 : i32
    return %c0_i32, %arg0 : i32, i32
  }
  func.func @transform_1(%arg0: i32) -> (i32, i32) {
    %c0_i32 = arith.constant 0 : i32
    %c0_i32_0 = arith.constant 0 : i32
    %c0_i32_1 = arith.constant 0 : i32
    return %c0_i32, %c0_i32_0 : i32, i32
  }
  func.func @transform_2(%arg0: i32) -> (i32, i32) {
    %c0_i32 = arith.constant 0 : i32
    %c0_i32_0 = arith.constant 0 : i32
    %c0_i32_1 = arith.constant 0 : i32
    return %c0_i32, %c0_i32_0 : i32, i32
  }
  func.func @transform_3(%arg0: i32) -> (i32, i32) {
    %c0_i32 = arith.constant 0 : i32
    %c0_i32_0 = arith.constant 0 : i32
    return %c0_i32, %arg0 : i32, i32
  }
  func.func @transform_4(%arg0: i32) -> (i32, i32) {
    %c0_i32 = arith.constant 0 : i32
    %c0_i32_0 = arith.constant 0 : i32
    return %c0_i32, %arg0 : i32, i32
  }
}

</mosaic_0001>

<bundles_post_ra>
// kernel: resnet2fcl_forward.10
= control target key start
LH: loop header
LB: loop body
LE: loop exit
PB: predicated region body
PF: predicated region fallthrough
CT: control target
= control target key end

     0   :  { %s1306_s12 = smov 0   ;;  %s1308_s13 = smov 0   ;;  %s1630_s0 = inlined_call_operand.vmem [shape: bf16[147,2048], index: 0, kind: input, shape index: {}]   ;;  %s1631_s1 = inlined_call_operand.vmem [shape: bf16[8,147], index: 1, kind: input, shape index: {}]   ;;  %s1632_s2 = inlined_call_operand.vmem [shape: f32[8,1], index: 2, kind: input, shape index: {}]   ;;  %s1633_s3 = inlined_call_operand.vmem [shape: bf16[8,2048], index: 3, kind: output, shape index: {}]  }
   0x1   :  { %s1310_s14 = smov 0  }
   0x2 LB: > { %s1115_s15 = sadd.s32 4294967295, %s1282_s14   ;;  %s1323_s16 = sadd.s32 1, %s1282_s14   ;;  %s1282_s14 = sphi %s1310_s14, %s1636_s14   ;;  %s1278_s13 = sphi %s1308_s13, %s1635_s13   ;;  %s1274_s12 = sphi %s1306_s12, %s1634_s12  }
   0x3   : > { %s17_s17 = ssub.s32 %s1282_s14, %s1323_s16  ;;  %s20_s18 = sadd.s32 1, %s1278_s13 }
   0x4   : > { %p18_p0 = scmp.eq.s32.totalorder %s17_s17, 0  ;;  %p27_p1 = scmp.ne.s32.totalorder %s1278_s13, %s1274_s12 }
   0x5   : > { %p28_p2 = scmp.eq.s32.totalorder %s1282_s14, 0  ;;  %p1118_p4 = scmp.ge.s32.totalorder %s1282_s14, 2 }
   0x6   : > { %s1332_s19 = scalar_select %p18_p0, %s1278_s13, %s20_s18  }
   0x7   : > { %p29_p3 = por %p28_p2, %p27_p1  ;;  %127 = sbr.rel (%p1118_p4) target bundleno = 55 (0x37), region = 24 }
   0xc   : > { %130 = sbr.rel (!%p29_p3) target bundleno = 55 (0x37), region = 28  ;;  %s132_s20 = sand.u32 (%p29_p3), 1, %s1278_s13  }
   0xd   : > { %s1216_s21 = sshll.u32 (%p29_p3), %s1282_s14, 5  ;;  %s1221_s22 = smul.u32 (%p29_p3), 608, %s132_s20 }
   0xe   : > { %s1340_s25 = scalar_lea.vmem (%p29_p3), %s1630_s0, %s1216_s21 }
   0xf   : > { %v150_v0 = vld [vmem:[%s1340_s25] sm:$0xff] (%p29_p3)  ;;  %v152_v1 = vld [vmem:[%s1340_s25 + $0x8] sm:$0xff] (%p29_p3)  ;;  %v154_v2 = vld [vmem:[%s1340_s25 + $0x10] sm:$0xff] (%p29_p3)  ;;  %s1348_s26 = scalar_lea.vmem (%p29_p3), [#allocation2], %s1221_s22 }
  0x10   : > { %v156_v3 = vld [vmem:[%s1340_s25 + $0x18] sm:$0xff] (%p29_p3)  ;;  %v158_v4 = vld [vmem:[%s1340_s25 + $0x40] sm:$0xff] (%p29_p3)  ;;  %v160_v5 = vld [vmem:[%s1340_s25 + $0x48] sm:$0xff] (%p29_p3)  ;;  %151 = vst [vmem:[%s1348_s26] sm:$0xff] (%p29_p3), %v150_v0 }
  0x11   : > { %153 = vst [vmem:[%s1348_s26 + $0x8] sm:$0xff] %v152_v1  ;;  %155 = vst [vmem:[%s1348_s26 + $0x10] sm:$0xff] %v154_v2  ;;  %v162_v6 = vld [vmem:[%s1340_s25 + $0x50] sm:$0xff]  ;;  %v164_v7 = vld [vmem:[%s1340_s25 + $0x58] sm:$0xff] }
  0x12   : > { %157 = vst [vmem:[%s1348_s26 + $0x18] sm:$0xff] %v156_v3  ;;  %159 = vst [vmem:[%s1348_s26 + $0x20] sm:$0xff] %v158_v4  ;;  %v166_v8 = vld [vmem:[%s1340_s25 + $0x80] sm:$0xff]  ;;  %v168_v9 = vld [vmem:[%s1340_s25 + $0x88] sm:$0xff] }
  0x13   : > { %161 = vst [vmem:[%s1348_s26 + $0x28] sm:$0xff] %v160_v5  ;;  %163 = vst [vmem:[%s1348_s26 + $0x30] sm:$0xff] %v162_v6  ;;  %v170_v10 = vld [vmem:[%s1340_s25 + $0x90] sm:$0xff]  ;;  %v172_v11 = vld [vmem:[%s1340_s25 + $0x98] sm:$0xff] }
  0x14   : > { %165 = vst [vmem:[%s1348_s26 + $0x38] sm:$0xff] %v164_v7  ;;  %167 = vst [vmem:[%s1348_s26 + $0x40] sm:$0xff] %v166_v8  ;;  %v174_v12 = vld [vmem:[%s1340_s25 + $0xc0] sm:$0xff]  ;;  %v176_v13 = vld [vmem:[%s1340_s25 + $0xc8] sm:$0xff] }
  0x15   : > { %169 = vst [vmem:[%s1348_s26 + $0x48] sm:$0xff] %v168_v9  ;;  %171 = vst [vmem:[%s1348_s26 + $0x50] sm:$0xff] %v170_v10  ;;  %v178_v14 = vld [vmem:[%s1340_s25 + $0xd0] sm:$0xff]  ;;  %v180_v15 = vld [vmem:[%s1340_s25 + $0xd8] sm:$0xff] }
  0x16   : > { %173 = vst [vmem:[%s1348_s26 + $0x58] sm:$0xff] %v172_v11  ;;  %175 = vst [vmem:[%s1348_s26 + $0x60] sm:$0xff] %v174_v12  ;;  %v182_v16 = vld [vmem:[%s1340_s25 + $0x100] sm:$0xff]  ;;  %v184_v17 = vld [vmem:[%s1340_s25 + $0x108] sm:$0xff] }
  0x17   : > { %177 = vst [vmem:[%s1348_s26 + $0x68] sm:$0xff] %v176_v13  ;;  %179 = vst [vmem:[%s1348_s26 + $0x70] sm:$0xff] %v178_v14  ;;  %v186_v18 = vld [vmem:[%s1340_s25 + $0x110] sm:$0xff]  ;;  %v188_v19 = vld [vmem:[%s1340_s25 + $0x118] sm:$0xff] }
  0x18   : > { %181 = vst [vmem:[%s1348_s26 + $0x78] sm:$0xff] %v180_v15  ;;  %183 = vst [vmem:[%s1348_s26 + $0x80] sm:$0xff] %v182_v16  ;;  %v190_v20 = vld [vmem:[%s1340_s25 + $0x140] sm:$0xff]  ;;  %v192_v21 = vld [vmem:[%s1340_s25 + $0x148] sm:$0xff] }
  0x19   : > { %185 = vst [vmem:[%s1348_s26 + $0x88] sm:$0xff] %v184_v17  ;;  %187 = vst [vmem:[%s1348_s26 + $0x90] sm:$0xff] %v186_v18  ;;  %v194_v22 = vld [vmem:[%s1340_s25 + $0x150] sm:$0xff]  ;;  %v196_v23 = vld [vmem:[%s1340_s25 + $0x158] sm:$0xff] }
  0x1a   : > { %189 = vst [vmem:[%s1348_s26 + $0x98] sm:$0xff] %v188_v19  ;;  %191 = vst [vmem:[%s1348_s26 + $0xa0] sm:$0xff] %v190_v20  ;;  %v198_v24 = vld [vmem:[%s1340_s25 + $0x180] sm:$0xff]  ;;  %v200_v25 = vld [vmem:[%s1340_s25 + $0x188] sm:$0xff] }
  0x1b   : > { %193 = vst [vmem:[%s1348_s26 + $0xa8] sm:$0xff] %v192_v21  ;;  %195 = vst [vmem:[%s1348_s26 + $0xb0] sm:$0xff] %v194_v22  ;;  %v202_v26 = vld [vmem:[%s1340_s25 + $0x190] sm:$0xff]  ;;  %v204_v27 = vld [vmem:[%s1340_s25 + $0x198] sm:$0xff] }
  0x1c   : > { %197 = vst [vmem:[%s1348_s26 + $0xb8] sm:$0xff] %v196_v23  ;;  %199 = vst [vmem:[%s1348_s26 + $0xc0] sm:$0xff] %v198_v24  ;;  %v206_v28 = vld [vmem:[%s1340_s25 + $0x1c0] sm:$0xff]  ;;  %v208_v29 = vld [vmem:[%s1340_s25 + $0x1c8] sm:$0xff] }
  0x1d   : > { %201 = vst [vmem:[%s1348_s26 + $0xc8] sm:$0xff] %v200_v25  ;;  %203 = vst [vmem:[%s1348_s26 + $0xd0] sm:$0xff] %v202_v26  ;;  %v210_v30 = vld [vmem:[%s1340_s25 + $0x1d0] sm:$0xff]  ;;  %v212_v31 = vld [vmem:[%s1340_s25 + $0x1d8] sm:$0xff] }
  0x1e   : > { %205 = vst [vmem:[%s1348_s26 + $0xd8] sm:$0xff] %v204_v27  ;;  %207 = vst [vmem:[%s1348_s26 + $0xe0] sm:$0xff] %v206_v28  ;;  %v214_v32 = vld [vmem:[%s1340_s25 + $0x200] sm:$0xff]  ;;  %v216_v33 = vld [vmem:[%s1340_s25 + $0x208] sm:$0xff] }
  0x1f   : > { %209 = vst [vmem:[%s1348_s26 + $0xe8] sm:$0xff] %v208_v29  ;;  %211 = vst [vmem:[%s1348_s26 + $0xf0] sm:$0xff] %v210_v30  ;;  %v218_v34 = vld [vmem:[%s1340_s25 + $0x210] sm:$0xff]  ;;  %v220_v35 = vld [vmem:[%s1340_s25 + $0x218] sm:$0xff] }
  0x20   : > { %213 = vst [vmem:[%s1348_s26 + $0xf8] sm:$0xff] %v212_v31  ;;  %215 = vst [vmem:[%s1348_s26 + $0x100] sm:$0xff] %v214_v32  ;;  %v222_v36 = vld [vmem:[%s1340_s25 + $0x240] sm:$0xff]  ;;  %v224_v37 = vld [vmem:[%s1340_s25 + $0x248] sm:$0xff] }
  0x21   : > { %217 = vst [vmem:[%s1348_s26 + $0x108] sm:$0xff] %v216_v33  ;;  %219 = vst [vmem:[%s1348_s26 + $0x110] sm:$0xff] %v218_v34  ;;  %v226_v38 = vld [vmem:[%s1340_s25 + $0x250] sm:$0xff]  ;;  %v228_v39 = vld [vmem:[%s1340_s25 + $0x258] sm:$0xff] }
  0x22   : > { %221 = vst [vmem:[%s1348_s26 + $0x118] sm:$0xff] %v220_v35  ;;  %223 = vst [vmem:[%s1348_s26 + $0x120] sm:$0xff] %v222_v36  ;;  %v230_v40 = vld [vmem:[%s1340_s25 + $0x280] sm:$0xff]  ;;  %v232_v41 = vld [vmem:[%s1340_s25 + $0x288] sm:$0xff] }
  0x23   : > { %225 = vst [vmem:[%s1348_s26 + $0x128] sm:$0xff] %v224_v37  ;;  %227 = vst [vmem:[%s1348_s26 + $0x130] sm:$0xff] %v226_v38  ;;  %v234_v42 = vld [vmem:[%s1340_s25 + $0x290] sm:$0xff]  ;;  %v236_v43 = vld [vmem:[%s1340_s25 + $0x298] sm:$0xff] }
  0x24   : > { %229 = vst [vmem:[%s1348_s26 + $0x138] sm:$0xff] %v228_v39  ;;  %231 = vst [vmem:[%s1348_s26 + $0x140] sm:$0xff] %v230_v40  ;;  %v238_v44 = vld [vmem:[%s1340_s25 + $0x2c0] sm:$0xff]  ;;  %v240_v45 = vld [vmem:[%s1340_s25 + $0x2c8] sm:$0xff] }
  0x25   : > { %233 = vst [vmem:[%s1348_s26 + $0x148] sm:$0xff] %v232_v41  ;;  %235 = vst [vmem:[%s1348_s26 + $0x150] sm:$0xff] %v234_v42  ;;  %v242_v46 = vld [vmem:[%s1340_s25 + $0x2d0] sm:$0xff]  ;;  %v244_v47 = vld [vmem:[%s1340_s25 + $0x2d8] sm:$0xff] }
  0x26   : > { %237 = vst [vmem:[%s1348_s26 + $0x158] sm:$0xff] %v236_v43  ;;  %239 = vst [vmem:[%s1348_s26 + $0x160] sm:$0xff] %v238_v44  ;;  %v246_v48 = vld [vmem:[%s1340_s25 + $0x300] sm:$0xff]  ;;  %v248_v49 = vld [vmem:[%s1340_s25 + $0x308] sm:$0xff] }
  0x27   : > { %241 = vst [vmem:[%s1348_s26 + $0x168] sm:$0xff] %v240_v45  ;;  %243 = vst [vmem:[%s1348_s26 + $0x170] sm:$0xff] %v242_v46  ;;  %v250_v50 = vld [vmem:[%s1340_s25 + $0x310] sm:$0xff]  ;;  %v252_v51 = vld [vmem:[%s1340_s25 + $0x318] sm:$0xff] }
  0x28   : > { %245 = vst [vmem:[%s1348_s26 + $0x178] sm:$0xff] %v244_v47  ;;  %247 = vst [vmem:[%s1348_s26 + $0x180] sm:$0xff] %v246_v48  ;;  %v254_v52 = vld [vmem:[%s1340_s25 + $0x340] sm:$0xff]  ;;  %v256_v53 = vld [vmem:[%s1340_s25 + $0x348] sm:$0xff] }
  0x29   : > { %249 = vst [vmem:[%s1348_s26 + $0x188] sm:$0xff] %v248_v49  ;;  %251 = vst [vmem:[%s1348_s26 + $0x190] sm:$0xff] %v250_v50  ;;  %v258_v54 = vld [vmem:[%s1340_s25 + $0x350] sm:$0xff]  ;;  %v260_v55 = vld [vmem:[%s1340_s25 + $0x358] sm:$0xff] }
  0x2a   : > { %253 = vst [vmem:[%s1348_s26 + $0x198] sm:$0xff] %v252_v51  ;;  %255 = vst [vmem:[%s1348_s26 + $0x1a0] sm:$0xff] %v254_v52  ;;  %v262_v56 = vld [vmem:[%s1340_s25 + $0x380] sm:$0xff]  ;;  %v264_v57 = vld [vmem:[%s1340_s25 + $0x388] sm:$0xff] }
  0x2b   : > { %257 = vst [vmem:[%s1348_s26 + $0x1a8] sm:$0xff] %v256_v53  ;;  %259 = vst [vmem:[%s1348_s26 + $0x1b0] sm:$0xff] %v258_v54  ;;  %v266_v58 = vld [vmem:[%s1340_s25 + $0x390] sm:$0xff]  ;;  %v268_v59 = vld [vmem:[%s1340_s25 + $0x398] sm:$0xff] }
  0x2c   : > { %261 = vst [vmem:[%s1348_s26 + $0x1b8] sm:$0xff] %v260_v55  ;;  %263 = vst [vmem:[%s1348_s26 + $0x1c0] sm:$0xff] %v262_v56  ;;  %v270_v60 = vld [vmem:[%s1340_s25 + $0x3c0] sm:$0xff]  ;;  %v272_v61 = vld [vmem:[%s1340_s25 + $0x3c8] sm:$0xff] }
  0x2d   : > { %265 = vst [vmem:[%s1348_s26 + $0x1c8] sm:$0xff] %v264_v57  ;;  %267 = vst [vmem:[%s1348_s26 + $0x1d0] sm:$0xff] %v266_v58  ;;  %v274_v62 = vld [vmem:[%s1340_s25 + $0x3d0] sm:$0xff]  ;;  %v276_v63 = vld [vmem:[%s1340_s25 + $0x3d8] sm:$0xff] }
  0x2e   : > { %269 = vst [vmem:[%s1348_s26 + $0x1d8] sm:$0xff] %v268_v59  ;;  %271 = vst [vmem:[%s1348_s26 + $0x1e0] sm:$0xff] %v270_v60  ;;  %v278_v0 = vld [vmem:[%s1340_s25 + $0x400] sm:$0xff]  ;;  %v280_v1 = vld [vmem:[%s1340_s25 + $0x408] sm:$0xff] }
  0x2f   : > { %273 = vst [vmem:[%s1348_s26 + $0x1e8] sm:$0xff] %v272_v61  ;;  %275 = vst [vmem:[%s1348_s26 + $0x1f0] sm:$0xff] %v274_v62  ;;  %v282_v2 = vld [vmem:[%s1340_s25 + $0x410] sm:$0xff]  ;;  %v284_v3 = vld [vmem:[%s1340_s25 + $0x418] sm:$0xff] }
  0x30   : > { %277 = vst [vmem:[%s1348_s26 + $0x1f8] sm:$0xff] %v276_v63  ;;  %279 = vst [vmem:[%s1348_s26 + $0x200] sm:$0xff] %v278_v0  ;;  %v286_v4 = vld [vmem:[%s1340_s25 + $0x440] sm:$0xff]  ;;  %v288_v5 = vld [vmem:[%s1340_s25 + $0x448] sm:$0xff] }
  0x31   : > { %281 = vst [vmem:[%s1348_s26 + $0x208] sm:$0xff] %v280_v1  ;;  %283 = vst [vmem:[%s1348_s26 + $0x210] sm:$0xff] %v282_v2  ;;  %v290_v6 = vld [vmem:[%s1340_s25 + $0x450] sm:$0xff]  ;;  %v292_v7 = vld [vmem:[%s1340_s25 + $0x458] sm:$0xff] }
  0x32   : > { %285 = vst [vmem:[%s1348_s26 + $0x218] sm:$0xff] %v284_v3  ;;  %287 = vst [vmem:[%s1348_s26 + $0x220] sm:$0xff] %v286_v4  ;;  %v294_v8 = vld [vmem:[%s1340_s25 + $0x480] sm:$0xff]  ;;  %v296_v9 = vld [vmem:[%s1340_s25 + $0x488] sm:$0xff] }
  0x33   : > { %289 = vst [vmem:[%s1348_s26 + $0x228] sm:$0xff] %v288_v5  ;;  %291 = vst [vmem:[%s1348_s26 + $0x230] sm:$0xff] %v290_v6  ;;  %v298_v10 = vld [vmem:[%s1340_s25 + $0x490] sm:$0xff]  ;;  %v300_v11 = vld [vmem:[%s1340_s25 + $0x498] sm:$0xff] }
  0x34   : > { %293 = vst [vmem:[%s1348_s26 + $0x238] sm:$0xff] %v292_v7  ;;  %295 = vst [vmem:[%s1348_s26 + $0x240] sm:$0xff] %v294_v8 }
  0x35   : > { %297 = vst [vmem:[%s1348_s26 + $0x248] sm:$0xff] %v296_v9  ;;  %299 = vst [vmem:[%s1348_s26 + $0x250] sm:$0xff] %v298_v10 }
  0x36   : > { %301 = vst [vmem:[%s1348_s26 + $0x258] sm:$0xff] %v300_v11 }
  0x37 PF: > { %p1121_p5 = scmp.ge.s32.totalorder %s1282_s14, 1  ;;  %p306_p6 = scmp.lt.s32.totalorder %s1282_s14, 3 }
  0x39   : > { %p307_p7 = pnand %p1121_p5, %p306_p6 }
  0x3a   : > { %s313_s27 = sand.u32 (!%p307_p7), 1, %s1274_s12   ;;  %s1122_s7 = sshll.u32 (!%p307_p7), %s1115_s15, 3 }
  0x3b   : > { %310 = sbr.rel (%p307_p7) target bundleno = 352 (0x160), region = 51  ;;  %p338_p8 = scmp.lt.s32.totalorder (!%p307_p7), %s1122_s7, 15 }
  0x3c   : > { %s1222_s30 = smul.u32 (!%p307_p7), 608, %s313_s27 }
  0x3e   : > { %s1515_s6 = scalar_lea.vmem (!%p307_p7), [#allocation2], %s1222_s30 }
  0x40   : > { %v1502_v12 = vld [vmem:[%s1631_s1] sm:$0xff]  ;;  %vm813_vm0 = vcmask 154624   ;;  %v1284_v15 = vmov 0   ;;  %v402_v18 = vld [vmem:[%s1515_s6 + $0x1c8] sm:$0xff]  ;;  %vm817_vm1 = vcmask 1040384   ;;  %vm818_vm2 = vcmask 1041408  }
  0x41   : > { %v1506_v13 = vcombine.high %v1502_v12, %v1502_v12  ;;  %v421_v14 = vld [vmem:[%s1632_s2] sm:$0xff]  ;;  %1249 = vset.pattern.permute.xlu0 %v1284_v15  ;;  %v406_v20 = vld [vmem:[%s1515_s6 + $0x1e8] sm:$0xff]  ;;  %v1285_v11 = vmov 65535   ;;  %s1638_s7 = smov (!%p338_p8, %s1122_s7), 15 }
  0x42   : > { %v401_v16 = vld [vmem:[%s1515_s6 + $0x1c0] sm:$0xff]  ;;  %424 = vperm.xlu0 %1249, %v421_v14   ;;  %v1185_v24 = vcombine.high %v402_v18, %v406_v20  ;;  %v1184_v25 = vcombine.low %v402_v18, %v406_v20  ;;  %v394_v27 = vld [vmem:[%s1515_s6 + $0x188] sm:$0xff]  ;;  %v819_v14 = vsel %vm817_vm1, 4294967295, %v1285_v11  ;;  %s1123_s8 = sshll.u32 %s1638_s7, 2 }
  0x43   : > { %1206 = vmatprep.mubr.msk.bf16.mxu0 %vm813_vm0, %v1506_v13  ;;  %1207 = vmatprep.mubr.msk.bf16.mxu1 %vm813_vm0, %v1506_v13  ;;  %v405_v17 = vld [vmem:[%s1515_s6 + $0x1e0] sm:$0xff]  ;;  %v398_v28 = vld [vmem:[%s1515_s6 + $0x1a8] sm:$0xff]  ;;  %s341_s11 = scalar_lea.vmem %s1633_s3, %s1123_s8 }
  0x44   : > { %v1183_v19 = vcombine.high %v401_v16, %v405_v17  ;;  %v1182_v21 = vcombine.low %v401_v16, %v405_v17  ;;  %v393_v22 = vld [vmem:[%s1515_s6 + $0x180] sm:$0xff]  ;;  %v1177_v30 = vcombine.high %v394_v27, %v398_v28  ;;  %v386_v32 = vld [vmem:[%s1515_s6 + $0x148] sm:$0xff]  ;;  %886 = vmatprep.subr.bf16.mxu1 %v1185_v24  ;;  %v1176_v35 = vcombine.low %v394_v27, %v398_v28 }
  0x45   : > { %v397_v23 = vld [vmem:[%s1515_s6 + $0x1a0] sm:$0xff]  ;;  %v390_v33 = vld [vmem:[%s1515_s6 + $0x168] sm:$0xff]  ;;  %887 = vmatpush1.bf16.msra.mxu1 %v1184_v25 }
  0x46   : > { %v1175_v26 = vcombine.high %v393_v22, %v397_v23  ;;  %v385_v29 = vld [vmem:[%s1515_s6 + $0x140] sm:$0xff]  ;;  %845 = vmatprep.subr.bf16.mxu0 %v1183_v19  ;;  %v1174_v34 = vcombine.low %v393_v22, %v397_v23  ;;  %888 = vmatprep.subr.bf16.mxu1 %v1177_v30  ;;  %v1169_v37 = vcombine.high %v386_v32, %v390_v33  ;;  %v378_v40 = vld [vmem:[%s1515_s6 + $0x108] sm:$0xff] }
  0x47   : > { %v389_v31 = vld [vmem:[%s1515_s6 + $0x160] sm:$0xff]  ;;  %846 = vmatpush1.bf16.msra.mxu0 %v1182_v21  ;;  %v382_v41 = vld [vmem:[%s1515_s6 + $0x128] sm:$0xff]  ;;  %v1168_v43 = vcombine.low %v386_v32, %v390_v33  ;;  %v1551_v21 = vsel %vm818_vm2, %v819_v14, 0  ;;  %v363_v14 = vld [vmem:[%s1515_s6 + $0x90] sm:$0xff] }
  0x48   : > { %847 = vmatprep.subr.bf16.mxu0 %v1175_v26  ;;  %v1167_v36 = vcombine.high %v385_v29, %v389_v31  ;;  %v377_v38 = vld [vmem:[%s1515_s6 + $0x100] sm:$0xff]  ;;  %v1166_v42 = vcombine.low %v385_v29, %v389_v31  ;;  %v1161_v45 = vcombine.high %v378_v40, %v382_v41  ;;  %v370_v48 = vld [vmem:[%s1515_s6 + $0xc8] sm:$0xff]  ;;  %v1160_v51 = vcombine.low %v378_v40, %v382_v41  ;;  %v408_v40 = vld [vmem:[%s1515_s6 + $0x1f8] sm:$0xff] }
  0x49   : > { %v381_v39 = vld [vmem:[%s1515_s6 + $0x120] sm:$0xff]  ;;  %889 = vmatpush1.bf16.msra.mxu1 %v1176_v35  ;;  %v374_v49 = vld [vmem:[%s1515_s6 + $0xe8] sm:$0xff] }
  0x4a   : > { %v1159_v44 = vcombine.high %v377_v38, %v381_v39  ;;  %890 = vmatprep.subr.bf16.mxu1 %v1169_v37  ;;  %v369_v46 = vld [vmem:[%s1515_s6 + $0xc0] sm:$0xff]  ;;  %v1158_v50 = vcombine.low %v377_v38, %v381_v39  ;;  %v1153_v53 = vcombine.high %v370_v48, %v374_v49  ;;  %v362_v56 = vld [vmem:[%s1515_s6 + $0x88] sm:$0xff]  ;;  %v1152_v59 = vcombine.low %v370_v48, %v374_v49  ;;  %v403_v37 = vld [vmem:[%s1515_s6 + $0x1d0] sm:$0xff] }
  0x4b   : > { %848 = vmatpush1.bf16.msra.mxu0 %v1174_v34  ;;  %v373_v47 = vld [vmem:[%s1515_s6 + $0xe0] sm:$0xff]  ;;  %v366_v57 = vld [vmem:[%s1515_s6 + $0xa8] sm:$0xff]  ;;  %v407_v38 = vld [vmem:[%s1515_s6 + $0x1f0] sm:$0xff] }
  0x4c   : > { %849 = vmatprep.subr.bf16.mxu0 %v1167_v36  ;;  %v1151_v52 = vcombine.high %v369_v46, %v373_v47  ;;  %v361_v54 = vld [vmem:[%s1515_s6 + $0x80] sm:$0xff]  ;;  %v1150_v58 = vcombine.low %v369_v46, %v373_v47  ;;  %v1145_v61 = vcombine.high %v362_v56, %v366_v57  ;;  %v354_v0 = vld [vmem:[%s1515_s6 + $0x48] sm:$0xff]  ;;  %v1144_v3 = vcombine.low %v362_v56, %v366_v57  ;;  %v404_v39 = vld [vmem:[%s1515_s6 + $0x1d8] sm:$0xff] }
  0x4d   : > { %891 = vmatpush1.bf16.msra.mxu1 %v1168_v43  ;;  %v365_v55 = vld [vmem:[%s1515_s6 + $0xa0] sm:$0xff]  ;;  %v358_v1 = vld [vmem:[%s1515_s6 + $0x68] sm:$0xff]  ;;  %v1187_v43 = vcombine.high %v403_v37, %v407_v38  ;;  %v399_v46 = vld [vmem:[%s1515_s6 + $0x1b0] sm:$0xff]  ;;  %v1569_v47 = vcombine.low %v1502_v12, %v1502_v12 }
  0x4e   : > { %892 = vmatprep.subr.bf16.mxu1 %v1161_v45  ;;  %v1143_v60 = vcombine.high %v361_v54, %v365_v55  ;;  %v353_v62 = vld [vmem:[%s1515_s6 + $0x40] sm:$0xff]  ;;  %v1142_v2 = vcombine.low %v361_v54, %v365_v55  ;;  %v1137_v5 = vcombine.high %v354_v0, %v358_v1  ;;  %v346_v9 = vld [vmem:[%s1515_s6 + $0x8] sm:$0xff]  ;;  %v1136_v17 = vcombine.low %v354_v0, %v358_v1  ;;  %v395_v45 = vld [vmem:[%s1515_s6 + $0x190] sm:$0xff] }
  0x4f   : > { %850 = vmatpush1.bf16.msra.mxu0 %v1166_v42  ;;  %v357_v63 = vld [vmem:[%s1515_s6 + $0x60] sm:$0xff]  ;;  %v350_v10 = vld [vmem:[%s1515_s6 + $0x28] sm:$0xff]  ;;  %v396_v48 = vld [vmem:[%s1515_s6 + $0x198] sm:$0xff]  ;;  %v1178_v57 = vcombine.low %v395_v45, %v399_v46 }
  0x50   : > { %851 = vmatprep.subr.bf16.mxu0 %v1159_v44  ;;  %v1135_v4 = vcombine.high %v353_v62, %v357_v63  ;;  %v345_v6 = vld [vmem:[%s1515_s6] sm:$0xff]  ;;  %v418_v15 = vld [vmem:[%s1515_s6 + $0x248] sm:$0x33]  ;;  %v1134_v16 = vcombine.low %v353_v62, %v357_v63  ;;  %v1129_v20 = vcombine.high %v346_v9, %v350_v10  ;;  %v1128_v25 = vcombine.low %v346_v9, %v350_v10  ;;  %v400_v49 = vld [vmem:[%s1515_s6 + $0x1b8] sm:$0xff] }
  0x51   : > { %893 = vmatpush1.bf16.msra.mxu1 %v1160_v51  ;;  %v349_v7 = vld [vmem:[%s1515_s6 + $0x20] sm:$0xff]  ;;  %v1201_v22 = vcombine.high %v418_v15, %v418_v15  ;;  %v1200_v27 = vcombine.low %v418_v15, %v418_v15  ;;  %v410_v31 = vld [vmem:[%s1515_s6 + $0x208] sm:$0xff]  ;;  %v1189_v44 = vcombine.high %v404_v39, %v408_v40  ;;  %v1188_v51 = vcombine.low %v404_v39, %v408_v40  ;;  %v387_v54 = vld [vmem:[%s1515_s6 + $0x150] sm:$0xff] }
  0x52   : > { %894 = vmatprep.subr.bf16.mxu1 %v1153_v53  ;;  %v417_v8 = vld [vmem:[%s1515_s6 + $0x240] sm:$0x33]  ;;  %v1127_v18 = vcombine.high %v345_v6, %v349_v7  ;;  %v1126_v23 = vcombine.low %v345_v6, %v349_v7  ;;  %v414_v32 = vld [vmem:[%s1515_s6 + $0x228] sm:$0xff]  ;;  %v1181_v53 = vcombine.high %v396_v48, %v400_v49  ;;  %v391_v55 = vld [vmem:[%s1515_s6 + $0x170] sm:$0xff] }
  0x53   : > { %852 = vmatpush1.bf16.msra.mxu0 %v1158_v50  ;;  %v1199_v19 = vcombine.high %v417_v8, %v417_v8  ;;  %v1198_v24 = vcombine.low %v417_v8, %v417_v8  ;;  %v831_v28 = vand.u32 %v1201_v22, %v1551_v21  ;;  %v409_v29 = vld [vmem:[%s1515_s6 + $0x200] sm:$0xff]  ;;  %v828_v34 = vand.u32 %v1200_v27, %v1551_v21  ;;  %v388_v12 = vld [vmem:[%s1515_s6 + $0x158] sm:$0xff]  ;;  %v383_v62 = vld [vmem:[%s1515_s6 + $0x130] sm:$0xff] }
  0x54   : > { %853 = vmatprep.subr.bf16.mxu0 %v1151_v52  ;;  %v413_v30 = vld [vmem:[%s1515_s6 + $0x220] sm:$0xff]  ;;  %v1193_v36 = vcombine.high %v410_v31, %v414_v32  ;;  %v1192_v42 = vcombine.low %v410_v31, %v414_v32  ;;  %v1186_v50 = vcombine.low %v403_v37, %v407_v38  ;;  %v1179_v52 = vcombine.high %v395_v45, %v399_v46  ;;  %v392_v56 = vld [vmem:[%s1515_s6 + $0x178] sm:$0xff]  ;;  %v375_v6 = vld [vmem:[%s1515_s6 + $0xf0] sm:$0xff] }
  0x55   : > { %895 = vmatpush1.bf16.msra.mxu1 %v1152_v59  ;;  %v825_v26 = vand.u32 %v1199_v19, %v1551_v21  ;;  %v822_v33 = vand.u32 %v1198_v24, %v1551_v21  ;;  %v1191_v35 = vcombine.high %v409_v29, %v413_v30  ;;  %v1190_v41 = vcombine.low %v409_v29, %v413_v30  ;;  %v380_v63 = vld [vmem:[%s1515_s6 + $0x118] sm:$0xff]  ;;  %v367_v15 = vld [vmem:[%s1515_s6 + $0xb0] sm:$0xff] }
  0x56   : > { %896 = vmatprep.subr.bf16.mxu1 %v1145_v61  ;;  %v1171_v59 = vcombine.high %v387_v54, %v391_v55  ;;  %v379_v61 = vld [vmem:[%s1515_s6 + $0x110] sm:$0xff]  ;;  %v384_v0 = vld [vmem:[%s1515_s6 + $0x138] sm:$0xff]  ;;  %v1170_v1 = vcombine.low %v387_v54, %v391_v55  ;;  %v1146_v27 = vcombine.low %v363_v14, %v367_v15 }
  0x57   : > { %854 = vmatpush1.bf16.msra.mxu0 %v1150_v58  ;;  %v1180_v58 = vcombine.low %v396_v48, %v400_v49  ;;  %v372_v7 = vld [vmem:[%s1515_s6 + $0xd8] sm:$0xff]  ;;  %v1162_v9 = vcombine.low %v379_v61, %v383_v62  ;;  %v359_v24 = vld [vmem:[%s1515_s6 + $0x70] sm:$0xff] }
  0x58   : > { %855 = vmatprep.subr.bf16.mxu0 %v1143_v60  ;;  %v1173_v60 = vcombine.high %v388_v12, %v392_v56  ;;  %v376_v8 = vld [vmem:[%s1515_s6 + $0xf8] sm:$0xff]  ;;  %v347_v31 = vld [vmem:[%s1515_s6 + $0x10] sm:$0xff] }
  0x59   : > { %897 = vmatpush1.bf16.msra.mxu1 %v1144_v3  ;;  %v1163_v3 = vcombine.high %v379_v61, %v383_v62  ;;  %v1157_v11 = vcombine.high %v372_v7, %v376_v8  ;;  %v1156_v19 = vcombine.low %v372_v7, %v376_v8  ;;  %v351_v32 = vld [vmem:[%s1515_s6 + $0x30] sm:$0xff] }
  0x5a   : > { %898 = vmatprep.subr.bf16.mxu1 %v1137_v5  ;;  %v371_v5 = vld [vmem:[%s1515_s6 + $0xd0] sm:$0xff]  ;;  %v1131_v39 = vcombine.high %v347_v31, %v351_v32 }
  0x5b   : > { %856 = vmatpush1.bf16.msra.mxu0 %v1142_v2  ;;  %v1172_v2 = vcombine.low %v388_v12, %v392_v56  ;;  %v1155_v10 = vcombine.high %v371_v5, %v375_v6 }
  0x5c   : > { %857 = vmatprep.subr.bf16.mxu0 %v1135_v4  ;;  %v1165_v4 = vcombine.high %v380_v63, %v384_v0 }
  0x5d   : > { %899 = vmatpush1.bf16.msra.mxu1 %v1136_v17  ;;  %v368_v17 = vld [vmem:[%s1515_s6 + $0xb8] sm:$0xff] }
  0x5e   : > { %900 = vmatprep.subr.bf16.mxu1 %v1129_v20  ;;  %v1147_v20 = vcombine.high %v363_v14, %v367_v15 }
  0x5f   : > { %858 = vmatpush1.bf16.msra.mxu0 %v1134_v16  ;;  %v364_v16 = vld [vmem:[%s1515_s6 + $0x98] sm:$0xff] }
  0x60   : > { %859 = vmatprep.subr.bf16.mxu0 %v1127_v18  ;;  %v1154_v18 = vcombine.low %v371_v5, %v375_v6  ;;  %v1149_v22 = vcombine.high %v364_v16, %v368_v17 }
  0x61   : > { %901 = vmatpush1.bf16.msra.mxu1 %v1128_v25  ;;  %v356_v25 = vld [vmem:[%s1515_s6 + $0x58] sm:$0xff] }
  0x62   : > { %914 = vmatprep.subr.bf16.mxu1 %v831_v28  ;;  %v1148_v28 = vcombine.low %v364_v16, %v368_v17 }
  0x63   : > { %860 = vmatpush1.bf16.msra.mxu0 %v1126_v23  ;;  %v355_v23 = vld [vmem:[%s1515_s6 + $0x50] sm:$0xff] }
  0x64   : > { %873 = vmatprep.subr.bf16.mxu0 %v825_v26  ;;  %v360_v26 = vld [vmem:[%s1515_s6 + $0x78] sm:$0xff]  ;;  %v1139_v29 = vcombine.high %v355_v23, %v359_v24  ;;  %v1138_v37 = vcombine.low %v355_v23, %v359_v24 }
  0x65   : > { %915 = vmatpush2.bf16.msra.mxu1 %v828_v34  ;;  %v1141_v30 = vcombine.high %v356_v25, %v360_v26  ;;  %v348_v34 = vld [vmem:[%s1515_s6 + $0x18] sm:$0xff]  ;;  %v1140_v38 = vcombine.low %v356_v25, %v360_v26 }
  0x66   : > { %916 = vmatprep.subr.bf16.mxu1 %v1193_v36  ;;  %v420_v36 = vld [vmem:[%s1515_s6 + $0x258] sm:$0x33] }
  0x67   : > { %874 = vmatpush2.bf16.msra.mxu0 %v822_v33  ;;  %v419_v33 = vld [vmem:[%s1515_s6 + $0x250] sm:$0x33]  ;;  %v1204_v48 = vcombine.low %v420_v36, %v420_v36 }
  0x68   : > { %875 = vmatprep.subr.bf16.mxu0 %v1191_v35  ;;  %v352_v35 = vld [vmem:[%s1515_s6 + $0x38] sm:$0xff]  ;;  %v1203_v40 = vcombine.high %v419_v33, %v419_v33 }
  0x69   : > { %917 = vmatpush2.bf16.msra.mxu1 %v1192_v42  ;;  %v1205_v42 = vcombine.high %v420_v36, %v420_v36  ;;  %v1132_v45 = vcombine.low %v348_v34, %v352_v35  ;;  %v840_v55 = vand.u32 %v1204_v48, %v1551_v21 }
  0x6a   : > { %968 = vmatprep.subr.bf16.mxu1 %v1189_v44  ;;  %v1202_v44 = vcombine.low %v419_v33, %v419_v33  ;;  %v837_v46 = vand.u32 %v1203_v40, %v1551_v21 }
  0x6b   : > { %876 = vmatpush2.bf16.msra.mxu0 %v1190_v41  ;;  %v1133_v41 = vcombine.high %v348_v34, %v352_v35  ;;  %v843_v49 = vand.u32 %v1205_v42, %v1551_v21 }
  0x6c   : > { %927 = vmatprep.subr.bf16.mxu0 %v1187_v43  ;;  %919 = vmatmul.mubr.bf16.vlgmr.msra.gmra.mxu1 %v1569_v47  ;;  %v1130_v43 = vcombine.low %v347_v31, %v351_v32  ;;  %v834_v54 = vand.u32 %v1202_v44, %v1551_v21 }
  0x6d   : > { %969 = vmatpush1.bf16.msra.mxu1 %v1188_v51  ;;  %1209 = vmatprep.mubr.msk.bf16.mxu1 %vm813_vm0, %v1506_v13  ;;  %v415_v51 = vld [vmem:[%s1515_s6 + $0x230] sm:$0xff] }
  0x6e   : > { %878 = vmatmul.mubr.bf16.vlgmr.msra.gmra.mxu0 %v1569_v47  ;;  %970 = vmatprep.subr.bf16.mxu1 %v1181_v53  ;;  %v416_v53 = vld [vmem:[%s1515_s6 + $0x238] sm:$0xff] }
  0x6f   : > { %928 = vmatpush1.bf16.msra.mxu0 %v1186_v50  ;;  %1208 = vmatprep.mubr.msk.bf16.mxu0 %vm813_vm0, %v1506_v13  ;;  %v1164_v13 = vcombine.low %v380_v63, %v384_v0  ;;  %v411_v50 = vld [vmem:[%s1515_s6 + $0x210] sm:$0xff] }
  0x70   : > { %929 = vmatprep.subr.bf16.mxu0 %v1179_v52  ;;  %v412_v52 = vld [vmem:[%s1515_s6 + $0x218] sm:$0xff]  ;;  %v1195_v12 = vcombine.high %v411_v50, %v415_v51 }
  0x71   : > { %971 = vmatpush1.bf16.msra.mxu1 %v1180_v58  ;;  %v1197_v56 = vcombine.high %v412_v52, %v416_v53  ;;  %v1196_v58 = vcombine.low %v412_v52, %v416_v53 }
  0x72   : > { %972 = vmatprep.subr.bf16.mxu1 %v1173_v60 }
  0x73   : > { %930 = vmatpush1.bf16.msra.mxu0 %v1178_v57  ;;  %v1194_v57 = vcombine.low %v411_v50, %v415_v51 }
  0x74   : > { %931 = vmatprep.subr.bf16.mxu0 %v1171_v59 }
  0x75   : > { %973 = vmatpush1.bf16.msra.mxu1 %v1172_v2 }
  0x76   : > { %974 = vmatprep.subr.bf16.mxu1 %v1165_v4 }
  0x77   : > { %932 = vmatpush1.bf16.msra.mxu0 %v1170_v1 }
  0x78   : > { %933 = vmatprep.subr.bf16.mxu0 %v1163_v3 }
  0x79   : > { %975 = vmatpush1.bf16.msra.mxu1 %v1164_v13 }
  0x7a   : > { %976 = vmatprep.subr.bf16.mxu1 %v1157_v11 }
  0x7b   : > { %934 = vmatpush1.bf16.msra.mxu0 %v1162_v9 }
  0x7c   : > { %935 = vmatprep.subr.bf16.mxu0 %v1155_v10 }
  0x7d   : > { %977 = vmatpush1.bf16.msra.mxu1 %v1156_v19 }
  0x7e   : > { %978 = vmatprep.subr.bf16.mxu1 %v1149_v22 }
  0x7f   : > { %936 = vmatpush1.bf16.msra.mxu0 %v1154_v18 }
  0x80   : > { %937 = vmatprep.subr.bf16.mxu0 %v1147_v20 }
  0x81   : > { %979 = vmatpush1.bf16.msra.mxu1 %v1148_v28 }
  0x82   : > { %980 = vmatprep.subr.bf16.mxu1 %v1141_v30 }
  0x83   : > { %938 = vmatpush1.bf16.msra.mxu0 %v1146_v27 }
  0x84   : > { %939 = vmatprep.subr.bf16.mxu0 %v1139_v29 }
  0x85   : > { %981 = vmatpush1.bf16.msra.mxu1 %v1140_v38 }
  0x86   : > { %982 = vmatprep.subr.bf16.mxu1 %v1133_v41 }
  0x87   : > { %940 = vmatpush1.bf16.msra.mxu0 %v1138_v37 }
  0x88   : > { %941 = vmatprep.subr.bf16.mxu0 %v1131_v39 }
  0x89   : > { %983 = vmatpush1.bf16.msra.mxu1 %v1132_v45 }
  0x8a   : > { %996 = vmatprep.subr.bf16.mxu1 %v843_v49 }
  0x8b   : > { %942 = vmatpush1.bf16.msra.mxu0 %v1130_v43 }
  0x8c   : > { %955 = vmatprep.subr.bf16.mxu0 %v837_v46 }
  0x8d   : > { %997 = vmatpush2.bf16.msra.mxu1 %v840_v55 }
  0x8e   : > { %998 = vmatprep.subr.bf16.mxu1 %v1197_v56 }
  0x8f   : > { %956 = vmatpush2.bf16.msra.mxu0 %v834_v54 }
  0x90   : > { %957 = vmatprep.subr.bf16.mxu0 %v1195_v12 }
  0x91   : > { %999 = vmatpush2.bf16.msra.mxu1 %v1196_v58 }
  0x93   : > { %958 = vmatpush2.bf16.msra.mxu0 %v1194_v57 }
  0x94   : > { %1001 = vmatmul.mubr.bf16.vlgmr.msra.gmra.mxu1 %v1569_v47 }
  0x96   : > { %960 = vmatmul.mubr.bf16.vlgmr.msra.gmra.mxu0 %v1569_v47 }
  0xbd   : > { %v425_v59 = vpop.permute.xlu0 %424 }
 0x12c   : > { %v920_v60 = vpop.f32.mrf.mxu1 }
 0x12d   : > { %v921_v63 = vadd.f32 %v920_v60, %v425_v59 }
 0x12e   : > { %v879_v21 = vpop.f32.mrf.mxu0  ;;  %v922_v2 = vpop.f32.mrf.mxu1 }
 0x12f   : > { %v880_v61 = vadd.f32 %v879_v21, %v425_v59  ;;  %v923_v3 = vadd.f32 %v922_v2, %v425_v59  ;;  %v1011_v4 = vmax.f32 %v921_v63, 0.0 }
 0x130   : > { %v881_v62 = vpop.f32.mrf.mxu0  ;;  %v924_v7 = vpop.f32.mrf.mxu1 }
 0x131   : > { %v882_v0 = vadd.f32 %v881_v62, %v425_v59  ;;  %v1009_v1 = vmax.f32 %v880_v61, 0.0  ;;  %v1012_v47 = vmax.f32 %v923_v3, 0.0 }
 0x132   : > { %v883_v5 = vpop.f32.mrf.mxu0  ;;  %v925_v13 = vpop.f32.mrf.mxu1 }
 0x133   : > { %v1010_v6 = vmax.f32 %v882_v0, 0.0  ;;  %v1218_v10 = vpack.c.bf16 %v1012_v47, %v1011_v4 }
 0x134   : > { %v884_v8 = vpop.f32.mrf.mxu0 }
 0x135   : > { %v1217_v9 = vpack.c.bf16 %v1010_v6, %v1009_v1  ;;  %1050 = vst [vmem:[%s341_s11 + $0x8] sm:$0xff] %v1218_v10 }
 0x137   : > { %1049 = vst [vmem:[%s341_s11] sm:$0xff] %v1217_v9 }
 0x154   : > { %v1002_v15 = vpop.f32.mrf.mxu1 }
 0x155   : > { %v1003_v16 = vadd.f32 %v1002_v15, %v425_v59 }
 0x156   : > { %v961_v11 = vpop.f32.mrf.mxu0  ;;  %v1004_v19 = vpop.f32.mrf.mxu1 }
 0x157   : > { %v962_v14 = vadd.f32 %v961_v11, %v425_v59  ;;  %v1005_v20 = vadd.f32 %v1004_v19, %v425_v59  ;;  %v1015_v26 = vmax.f32 %v1003_v16, 0.0 }
 0x158   : > { %v963_v17 = vpop.f32.mrf.mxu0  ;;  %v1006_v25 = vpop.f32.mrf.mxu1 }
 0x159   : > { %v964_v18 = vadd.f32 %v963_v17, %v425_v59  ;;  %v1013_v23 = vmax.f32 %v962_v14, 0.0  ;;  %v1016_v27 = vmax.f32 %v1005_v20, 0.0 }
 0x15a   : > { %v965_v22 = vpop.f32.mrf.mxu0  ;;  %v1007_v30 = vpop.f32.mrf.mxu1 }
 0x15b   : > { %v1014_v24 = vmax.f32 %v964_v18, 0.0  ;;  %v1220_v31 = vpack.c.bf16 %v1016_v27, %v1015_v26 }
 0x15c   : > { %v966_v28 = vpop.f32.mrf.mxu0 }
 0x15d   : > { %v1219_v29 = vpack.c.bf16 %v1014_v24, %v1013_v23  ;;  %1052 = vst [vmem:[%s341_s11 + $0x18] sm:$0xff] %v1220_v31 }
 0x15f   : > { %1051 = vst [vmem:[%s341_s11 + $0x10] sm:$0xff] %v1219_v29 }
 0x160 PF: > { %p10_p9 = scmp.ge.s32.totalorder %s1323_s16, 4   ;;  %s1634_s12 = smov %s1278_s13 }
 0x161   : > { %s1635_s13 = smov %s1332_s19  ;;  %s1636_s14 = smov %s1323_s16 }
 0x162   :  { %12 = sbr.rel (!%p10_p9) target bundleno = 2 (0x2), region = 90 }

// kernel: resnet2fcl_forward.11
= control target key start
LH: loop header
LB: loop body
LE: loop exit
PB: predicated region body
PF: predicated region fallthrough
CT: control target
= control target key end

     0   :  { %s541_s12 = smov 0   ;;  %s543_s13 = smov 0   ;;  %s599_s0 = inlined_call_operand.vmem [shape: bf16[72,512], index: 0, kind: input, shape index: {}]   ;;  %s600_s1 = inlined_call_operand.vmem [shape: bf16[8,72], index: 1, kind: input, shape index: {}]   ;;  %s601_s2 = inlined_call_operand.vmem [shape: f32[8,1], index: 2, kind: input, shape index: {}]   ;;  %s602_s3 = inlined_call_operand.vmem [shape: bf16[8,512], index: 3, kind: output, shape index: {}]  }
   0x1   :  { %s545_s14 = smov 0  }
   0x2 LB: > { %s428_s15 = sadd.s32 4294967295, %s518_s14   ;;  %s558_s16 = sadd.s32 1, %s518_s14   ;;  %s518_s14 = sphi %s545_s14, %s605_s14   ;;  %s514_s13 = sphi %s543_s13, %s604_s13   ;;  %s510_s12 = sphi %s541_s12, %s603_s12  }
   0x3   : > { %s17_s17 = ssub.s32 %s518_s14, %s558_s16  ;;  %s20_s18 = sadd.s32 1, %s514_s13 }
   0x4   : > { %p18_p0 = scmp.eq.s32.totalorder %s17_s17, 0  ;;  %p27_p1 = scmp.ne.s32.totalorder %s514_s13, %s510_s12 }
   0x5   : > { %p28_p2 = scmp.eq.s32.totalorder %s518_s14, 0  ;;  %p431_p4 = scmp.ge.s32.totalorder %s518_s14, 2 }
   0x6   : > { %s567_s19 = scalar_select %p18_p0, %s514_s13, %s20_s18  }
   0x7   : > { %p29_p3 = por %p28_p2, %p27_p1  ;;  %127 = sbr.rel (%p431_p4) target bundleno = 21 (0x15), region = 24 }
   0xc   : > { %130 = sbr.rel (!%p29_p3) target bundleno = 21 (0x15), region = 28  ;;  %s132_s20 = sand.u32 (%p29_p3), 1, %s514_s13  }
   0xd   : > { %s452_s21 = sshll.u32 (%p29_p3), %s518_s14, 3  ;;  %s454_s22 = smul.u32 (%p29_p3), 72, %s132_s20 }
   0xe   : > { %s137_s25 = scalar_lea.vmem (%p29_p3), %s599_s0, %s452_s21 }
   0xf   : > { %v182_v0 = vld [vmem:[%s137_s25] sm:$0xff] (%p29_p3)  ;;  %v184_v1 = vld [vmem:[%s137_s25 + $0x10] sm:$0xff] (%p29_p3)  ;;  %s134_s26 = scalar_lea.vmem (%p29_p3), [#allocation2], %s454_s22 }
  0x10   : > { %v186_v2 = vld [vmem:[%s137_s25 + $0x20] sm:$0xff] (%p29_p3)  ;;  %v188_v3 = vld [vmem:[%s137_s25 + $0x30] sm:$0xff] (%p29_p3)  ;;  %183 = vst [vmem:[%s134_s26] sm:$0xff] (%p29_p3), %v182_v0  ;;  %185 = vst [vmem:[%s134_s26 + $0x8] sm:$0xff] (%p29_p3), %v184_v1 }
  0x11   : > { %v190_v4 = vld [vmem:[%s137_s25 + $0x40] sm:$0xff]  ;;  %v192_v5 = vld [vmem:[%s137_s25 + $0x50] sm:$0xff]  ;;  %187 = vst [vmem:[%s134_s26 + $0x10] sm:$0xff] %v186_v2  ;;  %189 = vst [vmem:[%s134_s26 + $0x18] sm:$0xff] %v188_v3 }
  0x12   : > { %191 = vst [vmem:[%s134_s26 + $0x20] sm:$0xff] %v190_v4  ;;  %193 = vst [vmem:[%s134_s26 + $0x28] sm:$0xff] %v192_v5  ;;  %v194_v6 = vld [vmem:[%s137_s25 + $0x60] sm:$0xff]  ;;  %v196_v7 = vld [vmem:[%s137_s25 + $0x70] sm:$0xff] }
  0x13   : > { %v198_v8 = vld [vmem:[%s137_s25 + $0x80] sm:$0xff]  ;;  %195 = vst [vmem:[%s134_s26 + $0x30] sm:$0xff] %v194_v6  ;;  %197 = vst [vmem:[%s134_s26 + $0x38] sm:$0xff] %v196_v7 }
  0x14   : > { %199 = vst [vmem:[%s134_s26 + $0x40] sm:$0xff] %v198_v8 }
  0x15 PF: > { %p434_p5 = scmp.ge.s32.totalorder %s518_s14, 1  ;;  %p204_p6 = scmp.lt.s32.totalorder %s518_s14, 3 }
  0x17   : > { %p205_p7 = pnand %p434_p5, %p204_p6 }
  0x18   : > { %s211_s27 = sand.u32 (!%p205_p7), 1, %s510_s12   ;;  %s435_s7 = sshll.u32 (!%p205_p7), %s428_s15, 1 }
  0x19   : > { %208 = sbr.rel (%p205_p7) target bundleno = 256 (0x100), region = 66  ;;  %p236_p8 = scmp.lt.s32.totalorder (!%p205_p7), %s435_s7, 3 }
  0x1a   : > { %s455_s28 = smul.u32 (!%p205_p7), 72, %s211_s27 }
  0x1c   : > { %s213_s4 = scalar_lea.vmem (!%p205_p7), [#allocation2], %s455_s28 }
  0x1e   : > { %v520_v9 = vmov 0   ;;  %v252_v10 = vld [vmem:[%s601_s2] sm:$0xff]  ;;  %vm307_vm0 = vcmask 1043456   ;;  %vm303_vm1 = vcmask 588800   ;;  %s607_s7 = smov (!%p236_p8, %s435_s7), 3 }
  0x1f   : > { %346 = vmatprep.mubr.bf16.mxu0 %v520_v9  ;;  %481 = vset.pattern.permute.xlu0 %v520_v9  ;;  %v251_v11 = vld [vmem:[%s213_s4 + $0x40] sm:$0xff]  ;;  %v484_v14 = vld [vmem:[%s213_s4 + $0x34] ss:$8 sps:$4 sm:$0xff]   ;;  %v486_v16 = vld [vmem:[%s213_s4 + $0x30] ss:$8 sps:$4 sm:$0xff]   ;;  %s436_s8 = sshll.u32 %s607_s7, 2 }
  0x20   : > { %255 = vperm.xlu0 %481, %v252_v10   ;;  %v446_v12 = vcombine.high %v251_v11, %v251_v11  ;;  %v445_v13 = vcombine.low %v251_v11, %v251_v11  ;;  %v487_v17 = vld [vmem:[%s213_s4 + $0x24] ss:$8 sps:$4 sm:$0xff]   ;;  %v489_v18 = vld [vmem:[%s213_s4 + $0x20] ss:$8 sps:$4 sm:$0xff]   ;;  %v490_v19 = vld [vmem:[%s213_s4 + $0x14] ss:$8 sps:$4 sm:$0xff]   ;;  %s239_s11 = scalar_lea.vmem %s602_s3, %s436_s8 }
  0x21   : > { %v492_v20 = vld [vmem:[%s213_s4 + $0x10] ss:$8 sps:$4 sm:$0xff]   ;;  %v493_v21 = vld [vmem:[%s213_s4 + $0x4] ss:$8 sps:$4 sm:$0xff]   ;;  %v495_v22 = vld [vmem:[%s213_s4] ss:$8 sps:$4 sm:$0xff]  }
  0x22   : > { %447 = vmatprep.subr.msk.bf16.mxu0 %vm307_vm0, %v446_v12  ;;  %v309_v15 = vsel %vm307_vm0, %v445_v13, 0  ;;  %v242_v23 = vld [vmem:[%s600_s1] sm:$0xf] }
  0x23   : > { %321 = vmatpush1.bf16.msra.mxu0 %v309_v15 }
  0x24   : > { %322 = vmatprep.subr.bf16.mxu0 %v484_v14 }
  0x27   : > { %323 = vmatpush1.bf16.msra.mxu0 %v486_v16 }
  0x28   : > { %324 = vmatprep.subr.bf16.mxu0 %v487_v17 }
  0x2b   : > { %325 = vmatpush1.bf16.msra.mxu0 %v489_v18 }
  0x2c   : > { %326 = vmatprep.subr.bf16.mxu0 %v490_v19 }
  0x2f   : > { %327 = vmatpush1.bf16.msra.mxu0 %v492_v20 }
  0x30   : > { %328 = vmatprep.subr.bf16.mxu0 %v493_v21 }
  0x33   : > { %329 = vmatpush1.bf16.msra.mxu0 %v495_v22 }
  0x36   : > { %448 = vmatmul.mubr.msk.bf16.vlgmr.msra.gmra.mxu0 %vm303_vm1, %v242_v23 }
  0x9b   : > { %v256_v24 = vpop.permute.xlu0 %255 }
  0xf6   : > { %v348_v25 = vpop.f32.mrf.mxu0 }
  0xf7   : > { %v349_v26 = vadd.f32 %v348_v25, %v256_v24 }
  0xf8   : > { %v350_v27 = vpop.f32.mrf.mxu0 }
  0xf9   : > { %v351_v28 = vadd.f32 %v350_v27, %v256_v24  ;;  %v355_v30 = vmax.f32 %v349_v26, 0.0 }
  0xfa   : > { %v352_v29 = vpop.f32.mrf.mxu0 }
  0xfb   : > { %v356_v31 = vmax.f32 %v351_v28, 0.0 }
  0xfc   : > { %v353_v32 = vpop.f32.mrf.mxu0 }
  0xfd   : > { %v453_v33 = vpack.c.bf16 %v356_v31, %v355_v30 }
  0xff   : > { %365 = vst [vmem:[%s239_s11] sm:$0xff] %v453_v33 }
 0x100 PF: > { %p10_p9 = scmp.ge.s32.totalorder %s558_s16, 4   ;;  %s603_s12 = smov %s514_s13 }
 0x101   : > { %s604_s13 = smov %s567_s19  ;;  %s605_s14 = smov %s558_s16 }
 0x102   :  { %12 = sbr.rel (!%p10_p9) target bundleno = 2 (0x2), region = 105 }

// kernel: resnet2fcl_forward.12
= control target key start
LH: loop header
LB: loop body
LE: loop exit
PB: predicated region body
PF: predicated region fallthrough
CT: control target
= control target key end

     0   :  { %s614_s15 = smov 0   ;;  %s616_s16 = smov 0   ;;  %s675_s0 = inlined_call_operand.vmem [shape: bf16[72,512], index: 0, kind: input, shape index: {}]   ;;  %s676_s1 = inlined_call_operand.vmem [shape: bf16[8,72], index: 1, kind: input, shape index: {}]   ;;  %s677_s2 = inlined_call_operand.vmem [shape: f32[8,1], index: 2, kind: input, shape index: {}]   ;;  %s678_s3 = inlined_call_operand.vmem [shape: bf16[8,512], index: 3, kind: input, shape index: {}]   ;;  %s679_s4 = inlined_call_operand.vmem [shape: bf16[8,512], index: 4, kind: output, shape index: {}]  }
   0x1   :  { %s618_s17 = smov 0  }
   0x2 LB: > { %s494_s18 = sadd.s32 4294967295, %s586_s17   ;;  %s631_s19 = sadd.s32 1, %s586_s17   ;;  %s586_s17 = sphi %s618_s17, %s682_s17   ;;  %s582_s16 = sphi %s616_s16, %s681_s16   ;;  %s578_s15 = sphi %s614_s15, %s680_s15  }
   0x3   : > { %s18_s20 = ssub.s32 %s586_s17, %s631_s19  ;;  %s21_s21 = sadd.s32 1, %s582_s16 }
   0x4   : > { %p19_p0 = scmp.eq.s32.totalorder %s18_s20, 0  ;;  %p28_p1 = scmp.ne.s32.totalorder %s582_s16, %s578_s15 }
   0x5   : > { %p29_p2 = scmp.eq.s32.totalorder %s586_s17, 0  ;;  %p497_p4 = scmp.ge.s32.totalorder %s586_s17, 2 }
   0x6   : > { %s640_s22 = scalar_select %p19_p0, %s582_s16, %s21_s21  }
   0x7   : > { %p30_p3 = por %p29_p2, %p28_p1  ;;  %154 = sbr.rel (%p497_p4) target bundleno = 21 (0x15), region = 24 }
   0xc   : > { %157 = sbr.rel (!%p30_p3) target bundleno = 21 (0x15), region = 28  ;;  %s159_s23 = sand.u32 (%p30_p3), 1, %s582_s16  }
   0xd   : > { %s520_s24 = sshll.u32 (%p30_p3), %s586_s17, 3  ;;  %s522_s25 = smul.u32 (%p30_p3), 72, %s159_s23 }
   0xe   : > { %s164_s28 = scalar_lea.vmem (%p30_p3), %s675_s0, %s520_s24 }
   0xf   : > { %v209_v0 = vld [vmem:[%s164_s28] sm:$0xff] (%p30_p3)  ;;  %v211_v1 = vld [vmem:[%s164_s28 + $0x10] sm:$0xff] (%p30_p3)  ;;  %s161_s29 = scalar_lea.vmem (%p30_p3), [#allocation2], %s522_s25 }
  0x10   : > { %v213_v2 = vld [vmem:[%s164_s28 + $0x20] sm:$0xff] (%p30_p3)  ;;  %v215_v3 = vld [vmem:[%s164_s28 + $0x30] sm:$0xff] (%p30_p3)  ;;  %210 = vst [vmem:[%s161_s29] sm:$0xff] (%p30_p3), %v209_v0  ;;  %212 = vst [vmem:[%s161_s29 + $0x8] sm:$0xff] (%p30_p3), %v211_v1 }
  0x11   : > { %v217_v4 = vld [vmem:[%s164_s28 + $0x40] sm:$0xff]  ;;  %v219_v5 = vld [vmem:[%s164_s28 + $0x50] sm:$0xff]  ;;  %214 = vst [vmem:[%s161_s29 + $0x10] sm:$0xff] %v213_v2  ;;  %216 = vst [vmem:[%s161_s29 + $0x18] sm:$0xff] %v215_v3 }
  0x12   : > { %218 = vst [vmem:[%s161_s29 + $0x20] sm:$0xff] %v217_v4  ;;  %220 = vst [vmem:[%s161_s29 + $0x28] sm:$0xff] %v219_v5  ;;  %v221_v6 = vld [vmem:[%s164_s28 + $0x60] sm:$0xff]  ;;  %v223_v7 = vld [vmem:[%s164_s28 + $0x70] sm:$0xff] }
  0x13   : > { %v225_v8 = vld [vmem:[%s164_s28 + $0x80] sm:$0xff]  ;;  %222 = vst [vmem:[%s161_s29 + $0x30] sm:$0xff] %v221_v6  ;;  %224 = vst [vmem:[%s161_s29 + $0x38] sm:$0xff] %v223_v7 }
  0x14   : > { %226 = vst [vmem:[%s161_s29 + $0x40] sm:$0xff] %v225_v8 }
  0x15 PF: > { %p500_p5 = scmp.ge.s32.totalorder %s586_s17, 1  ;;  %p240_p6 = scmp.lt.s32.totalorder %s586_s17, 3 }
  0x17   : > { %p241_p7 = pnand %p500_p5, %p240_p6 }
  0x18   : > { %s247_s30 = sand.u32 (!%p241_p7), 1, %s578_s15   ;;  %s501_s11 = sshll.u32 (!%p241_p7), %s494_s18, 1 }
  0x19   : > { %244 = sbr.rel (%p241_p7) target bundleno = 258 (0x102), region = 70  ;;  %p279_p8 = scmp.lt.s32.totalorder (!%p241_p7), %s501_s11, 3 }
  0x1a   : > { %s523_s5 = smul.u32 (!%p241_p7), 72, %s247_s30 }
  0x1c   : > { %s249_s8 = scalar_lea.vmem (!%p241_p7), [#allocation2], %s523_s5 }
  0x1e   : > { %v588_v9 = vmov 0   ;;  %v301_v10 = vld [vmem:[%s677_s2] sm:$0xff]  ;;  %vm356_vm0 = vcmask 1043456   ;;  %vm352_vm1 = vcmask 588800   ;;  %s684_s11 = smov (!%p279_p8, %s501_s11), 3 }
  0x1f   : > { %395 = vmatprep.mubr.bf16.mxu0 %v588_v9  ;;  %549 = vset.pattern.permute.xlu0 %v588_v9  ;;  %v300_v11 = vld [vmem:[%s249_s8 + $0x40] sm:$0xff]  ;;  %v552_v14 = vld [vmem:[%s249_s8 + $0x34] ss:$8 sps:$4 sm:$0xff]   ;;  %v554_v16 = vld [vmem:[%s249_s8 + $0x30] ss:$8 sps:$4 sm:$0xff]   ;;  %s502_s12 = sshll.u32 %s684_s11, 2 }
  0x20   : > { %304 = vperm.xlu0 %549, %v301_v10   ;;  %v514_v12 = vcombine.high %v300_v11, %v300_v11  ;;  %v513_v13 = vcombine.low %v300_v11, %v300_v11  ;;  %v555_v17 = vld [vmem:[%s249_s8 + $0x24] ss:$8 sps:$4 sm:$0xff]   ;;  %v557_v18 = vld [vmem:[%s249_s8 + $0x20] ss:$8 sps:$4 sm:$0xff]   ;;  %v558_v19 = vld [vmem:[%s249_s8 + $0x14] ss:$8 sps:$4 sm:$0xff]   ;;  %s282_s15 = scalar_lea.vmem %s678_s3, %s502_s12  ;;  %s288_s20 = scalar_lea.vmem %s679_s4, %s502_s12 }
  0x21   : > { %v560_v20 = vld [vmem:[%s249_s8 + $0x10] ss:$8 sps:$4 sm:$0xff]   ;;  %v561_v21 = vld [vmem:[%s249_s8 + $0x4] ss:$8 sps:$4 sm:$0xff]   ;;  %v563_v22 = vld [vmem:[%s249_s8] ss:$8 sps:$4 sm:$0xff]  }
  0x22   : > { %515 = vmatprep.subr.msk.bf16.mxu0 %vm356_vm0, %v514_v12  ;;  %v358_v15 = vsel %vm356_vm0, %v513_v13, 0  ;;  %v291_v23 = vld [vmem:[%s676_s1] sm:$0xf] }
  0x23   : > { %370 = vmatpush1.bf16.msra.mxu0 %v358_v15  ;;  %v404_v24 = vld [vmem:[%s282_s15] sm:$0xff] }
  0x24   : > { %371 = vmatprep.subr.bf16.mxu0 %v552_v14  ;;  %v405_v26 = vunpack.c.l.bf16 %v404_v24  ;;  %v406_v29 = vunpack.c.h.bf16 %v404_v24 }
  0x27   : > { %372 = vmatpush1.bf16.msra.mxu0 %v554_v16 }
  0x28   : > { %373 = vmatprep.subr.bf16.mxu0 %v555_v17 }
  0x2b   : > { %374 = vmatpush1.bf16.msra.mxu0 %v557_v18 }
  0x2c   : > { %375 = vmatprep.subr.bf16.mxu0 %v558_v19 }
  0x2f   : > { %376 = vmatpush1.bf16.msra.mxu0 %v560_v20 }
  0x30   : > { %377 = vmatprep.subr.bf16.mxu0 %v561_v21 }
  0x33   : > { %378 = vmatpush1.bf16.msra.mxu0 %v563_v22 }
  0x36   : > { %516 = vmatmul.mubr.msk.bf16.vlgmr.msra.gmra.mxu0 %vm352_vm1, %v291_v23 }
  0x9b   : > { %v305_v25 = vpop.permute.xlu0 %304 }
  0xf6   : > { %v397_v27 = vpop.f32.mrf.mxu0 }
  0xf7   : > { %v398_v28 = vadd.f32 %v397_v27, %v305_v25 }
  0xf8   : > { %v399_v30 = vpop.f32.mrf.mxu0 }
  0xf9   : > { %v407_v31 = vadd.f32 %v405_v26, %v398_v28  ;;  %v400_v32 = vadd.f32 %v399_v30, %v305_v25 }
  0xfa   : > { %v401_v33 = vpop.f32.mrf.mxu0 }
  0xfb   : > { %v408_v34 = vadd.f32 %v406_v29, %v400_v32  ;;  %v409_v36 = vmax.f32 %v407_v31, 0.0 }
  0xfc   : > { %v402_v35 = vpop.f32.mrf.mxu0 }
  0xfd   : > { %v410_v37 = vmax.f32 %v408_v34, 0.0 }
  0xff   : > { %v521_v38 = vpack.c.bf16 %v410_v37, %v409_v36 }
 0x101   : > { %419 = vst [vmem:[%s288_s20] sm:$0xff] %v521_v38 }
 0x102 PF: > { %p11_p9 = scmp.ge.s32.totalorder %s631_s19, 4   ;;  %s680_s15 = smov %s582_s16 }
 0x103   : > { %s681_s16 = smov %s640_s22  ;;  %s682_s17 = smov %s631_s19 }
 0x104   :  { %13 = sbr.rel (!%p11_p9) target bundleno = 2 (0x2), region = 112 }

// kernel: resnet2fcl_forward.13
= control target key start
LH: loop header
LB: loop body
LE: loop exit
PB: predicated region body
PF: predicated region fallthrough
CT: control target
= control target key end

     0   :  { %vm96_vm0 = vcmask 1043456   ;;  %v235_v1 = vmov 0   ;;  %vm89_vm1 = vcmask 588800   ;;  %s297_s0 = inlined_call_operand.vmem [shape: bf16[72,128], index: 0, kind: input, shape index: {}]   ;;  %s298_s1 = inlined_call_operand.vmem [shape: bf16[32,72], index: 1, kind: input, shape index: {}]   ;;  %s299_s2 = inlined_call_operand.vmem [shape: f32[32,1], index: 2, kind: input, shape index: {}]   ;;  %s300_s3 = inlined_call_operand.vmem [shape: bf16[32,128], index: 3, kind: output, shape index: {}]  }
   0x1   :  { %v228_v0 = vld [vmem:[%s297_s0 + $0x20] ss:$0 sps:$4 sm:$0xff]   ;;  %226 = vset.pattern.permute.xlu0 %v235_v1  ;;  %227 = vset.pattern.permute.xlu1 %v235_v1  ;;  %v229_v2 = vld [vmem:[%s297_s0 + $0x18] sm:$0xff]   ;;  %v230_v4 = vld [vmem:[%s297_s0 + $0x10] sm:$0xff]  }
   0x2   :  { %224 = vmatprep.subr.msk.bf16.mxu0 %vm96_vm0, %v228_v0  ;;  %v98_v3 = vsel %vm96_vm0, %v228_v0, 0  ;;  %v233_v5 = vld [vmem:[%s298_s1] sm:$0xff]   ;;  %v30_v7 = vld [vmem:[%s299_s2 + $0x10] sm:$0xff]  ;;  %v231_v8 = vld [vmem:[%s297_s0 + $0x8] sm:$0xff]  }
   0x3   :  { %211 = vmatpush3.bf16.msra.mxu0 %v98_v3  ;;  %v28_v6 = vld [vmem:[%s299_s2] sm:$0xff]  ;;  %220 = vmatprep.mubr.msk.bf16.mxu0 %vm89_vm1, %v233_v5  ;;  %v29_v9 = vld [vmem:[%s299_s2 + $0x8] sm:$0xff]  ;;  %v31_v10 = vld [vmem:[%s299_s2 + $0x18] sm:$0xff] }
   0x4   :  { %212 = vmatprep.subr.bf16.mxu0 %v229_v2  ;;  %34 = vperm.xlu0 %226, %v28_v6   ;;  %v232_v11 = vld [vmem:[%s297_s0] sm:$0xff]   ;;  %v234_v12 = vld [vmem:[%s298_s1 + $0x8] sm:$0xff]  }
   0x5   :  { %44 = vperm.xlu1 %227, %v30_v7  }
   0x7   :  { %213 = vmatpush3.bf16.msra.mxu0 %v229_v2 }
   0x8   :  { %214 = vmatprep.subr.bf16.mxu0 %v230_v4  ;;  %39 = vperm.xlu0 %226, %v29_v9  }
   0x9   :  { %49 = vperm.xlu1 %227, %v31_v10  }
   0xb   :  { %215 = vmatpush3.bf16.msra.mxu0 %v230_v4 }
   0xc   :  { %216 = vmatprep.subr.bf16.mxu0 %v231_v8 }
   0xf   :  { %217 = vmatpush3.bf16.msra.mxu0 %v231_v8 }
  0x10   :  { %218 = vmatprep.subr.bf16.mxu0 %v232_v11 }
  0x13   :  { %219 = vmatpush3.bf16.msra.mxu0 %v232_v11 }
  0x16   :  { %221 = vmatmul.mubr.msk.bf16.vlgmr.msra.gmra.mxu0 %vm89_vm1, %v234_v12 }
  0x7f   :  { %v35_v14 = vpop.permute.xlu0 %34 }
  0x80   :  { %v45_v13 = vpop.permute.xlu1 %44 }
  0x83   :  { %v40_v22 = vpop.permute.xlu0 %39 }
  0x84   :  { %v50_v17 = vpop.permute.xlu1 %49 }
  0xd6   :  { %v222_v15 = vpop.f32.mrf.mxu0 }
  0xd7   :  { %v143_v19 = vadd.f32 %v222_v15, %v45_v13 }
  0xd8   :  { %v134_v16 = vpop.f32.mrf.mxu0 }
  0xd9   :  { %v135_v20 = vadd.f32 %v134_v16, %v35_v14 }
  0xda   :  { %v223_v18 = vpop.f32.mrf.mxu0 }
  0xdb   :  { %v146_v21 = vadd.f32 %v223_v18, %v50_v17  ;;  %v149_v26 = vmax.f32 %v135_v20, 0.0 }
  0xdc   :  { %v137_v23 = vpop.f32.mrf.mxu0 }
  0xdd   :  { %v200_v24 = vpack.c.bf16 %v146_v21, %v143_v19  ;;  %v138_v25 = vadd.f32 %v137_v23, %v40_v22 }
  0xdf   :  { %202 = vst [vmem:[%s300_s3 + $0x8] sm:$0xff] %v200_v24   ;;  %v150_v27 = vmax.f32 %v138_v25, 0.0 }
  0xe1   :  { %v195_v28 = vpack.c.bf16 %v150_v27, %v149_v26 }
  0xe3   :  { %196 = vst [vmem:[%s300_s3] sm:$0xff] %v195_v28  }

// kernel: resnet2fcl_forward.14
= control target key start
LH: loop header
LB: loop body
LE: loop exit
PB: predicated region body
PF: predicated region fallthrough
CT: control target
= control target key end

     0   :  { %v219_v0 = vmov 0   ;;  %vm113_vm0 = vcmask 130048   ;;  %s290_s0 = inlined_call_operand.vmem [shape: bf16[144,128], index: 0, kind: input, shape index: {}]   ;;  %s291_s1 = inlined_call_operand.vmem [shape: bf16[16,144], index: 1, kind: input, shape index: {}]   ;;  %s292_s2 = inlined_call_operand.vmem [shape: f32[16,1], index: 2, kind: input, shape index: {}]   ;;  %s293_s3 = inlined_call_operand.vmem [shape: bf16[16,128], index: 3, kind: input, shape index: {}]   ;;  %s294_s4 = inlined_call_operand.vmem [shape: bf16[16,128], index: 4, kind: output, shape index: {}]  }
   0x1   :  { %117 = vmatprep.subr.bf16.mxu0 %v219_v0  ;;  %v207_v1 = vld [vmem:[%s290_s0 + $0x38] sm:$0xff]   ;;  %206 = vset.pattern.permute.xlu0 %v219_v0  ;;  %v208_v2 = vld [vmem:[%s290_s0 + $0x30] sm:$0xff]   ;;  %v209_v3 = vld [vmem:[%s290_s0 + $0x28] sm:$0xff]  }
   0x2   :  { %118 = vmatpush1.bf16.msra.mxu0 %v207_v1  ;;  %v210_v4 = vld [vmem:[%s290_s0 + $0x20] sm:$0xff]   ;;  %v39_v7 = vld [vmem:[%s292_s2 + $0x8] sm:$0xff]  ;;  %v211_v8 = vld [vmem:[%s290_s0 + $0x18] sm:$0xff]  }
   0x3   :  { %119 = vmatprep.subr.bf16.mxu0 %v219_v0  ;;  %v218_v5 = vld [vmem:[%s291_s1 + $0x4] ss:$8 sps:$4 sm:$0xff]   ;;  %v212_v9 = vld [vmem:[%s290_s0 + $0x10] sm:$0xff]   ;;  %v216_v13 = vld [vmem:[%s291_s1] ss:$8 sps:$4 sm:$0xff]  }
   0x4   :  { %v38_v6 = vld [vmem:[%s292_s2] sm:$0xff]  ;;  %191 = vmatprep.mubr.msk.bf16.mxu0 %vm113_vm0, %v218_v5  ;;  %v213_v10 = vld [vmem:[%s290_s0 + $0x8] sm:$0xff]  }
   0x5   :  { %42 = vperm.xlu0 %206, %v38_v6   ;;  %v214_v11 = vld [vmem:[%s290_s0] sm:$0xff]  }
   0x6   :  { %120 = vmatpush1.bf16.msra.mxu0 %v208_v2  ;;  %v215_v12 = vld [vmem:[%s290_s0 + $0x40] sm:$0xff]  }
   0x7   :  { %121 = vmatprep.subr.bf16.mxu0 %v219_v0  ;;  %v197_v15 = vld [vmem:[%s293_s3] sm:$0xff]  }
   0x8   :  { %v198_v18 = vunpack.c.l.bf16 %v197_v15  ;;  %v199_v20 = vunpack.c.h.bf16 %v197_v15 }
   0x9   :  { %47 = vperm.xlu0 %206, %v39_v7  }
   0xa   :  { %122 = vmatpush1.bf16.msra.mxu0 %v209_v3 }
   0xb   :  { %123 = vmatprep.subr.bf16.mxu0 %v219_v0 }
   0xe   :  { %124 = vmatpush1.bf16.msra.mxu0 %v210_v4 }
   0xf   :  { %125 = vmatprep.subr.bf16.mxu0 %v219_v0 }
  0x12   :  { %126 = vmatpush1.bf16.msra.mxu0 %v211_v8 }
  0x13   :  { %127 = vmatprep.subr.bf16.mxu0 %v219_v0 }
  0x16   :  { %128 = vmatpush1.bf16.msra.mxu0 %v212_v9 }
  0x17   :  { %129 = vmatprep.subr.bf16.mxu0 %v219_v0 }
  0x1a   :  { %130 = vmatpush1.bf16.msra.mxu0 %v213_v10 }
  0x1b   :  { %131 = vmatprep.subr.bf16.mxu0 %v219_v0 }
  0x1e   :  { %132 = vmatpush1.bf16.msra.mxu0 %v214_v11 }
  0x1f   :  { %147 = vmatprep.subr.bf16.mxu0 %v219_v0 }
  0x22   :  { %148 = vmatpush2.bf16.msra.mxu0 %v215_v12 }
  0x25   :  { %150 = vmatmul.mubr.bf16.vlgmr.msra.gmra.mxu0 %v216_v13 }
  0x80   :  { %v43_v14 = vpop.permute.xlu0 %42 }
  0x84   :  { %v48_v21 = vpop.permute.xlu0 %47 }
  0xe5   :  { %v151_v16 = vpop.f32.mrf.mxu0 }
  0xe6   :  { %v152_v17 = vadd.f32 %v151_v16, %v43_v14 }
  0xe7   :  { %v153_v19 = vpop.f32.mrf.mxu0 }
  0xe8   :  { %v162_v23 = vadd.f32 %v198_v18, %v152_v17 }
  0xe9   :  { %v154_v22 = vpop.f32.mrf.mxu0 }
  0xea   :  { %v155_v24 = vadd.f32 %v154_v22, %v48_v21  ;;  %v164_v27 = vmax.f32 %v162_v23, 0.0 }
  0xeb   :  { %v156_v25 = vpop.f32.mrf.mxu0 }
  0xec   :  { %v163_v26 = vadd.f32 %v199_v20, %v155_v24 }
  0xee   :  { %v165_v28 = vmax.f32 %v163_v26, 0.0 }
  0xf0   :  { %v203_v29 = vpack.c.bf16 %v165_v28, %v164_v27 }
  0xf2   :  { %204 = vst [vmem:[%s294_s4] sm:$0xff] %v203_v29  }

// kernel: resnet2fcl_forward.15
= control target key start
LH: loop header
LB: loop body
LE: loop exit
PB: predicated region body
PF: predicated region fallthrough
CT: control target
= control target key end

     0   :  { %v385_v0 = vmov 0   ;;  %vm179_vm0 = vcmask 130048   ;;  %vm277_vm1 = vcmask 257024   ;;  %s537_s0 = inlined_call_operand.vmem [shape: bf16[144,32], index: 0, kind: input, shape index: {}]   ;;  %s538_s1 = inlined_call_operand.vmem [shape: bf16[64,144], index: 1, kind: input, shape index: {}]   ;;  %s539_s2 = inlined_call_operand.vmem [shape: f32[64,1], index: 2, kind: input, shape index: {}]   ;;  %s540_s3 = inlined_call_operand.vmem [shape: bf16[64,32], index: 3, kind: output, shape index: {}]  }
   0x1   :  { %192 = vmatprep.subr.bf16.mxu0 %v385_v0  ;;  %343 = vmatprep.subr.bf16.mxu1 %v385_v0  ;;  %v364_v1 = vld [vmem:[%s537_s0 + $0x38] sm:$0xff]   ;;  %v365_v2 = vld [vmem:[%s537_s0 + $0x30] sm:$0xff]   ;;  %v366_v3 = vld [vmem:[%s537_s0 + $0x28] sm:$0xff]  }
   0x2   :  { %363 = vset.pattern.permute.xlu1 %v385_v0  ;;  %362 = vset.pattern.permute.xlu0 %v385_v0  ;;  %v367_v4 = vld [vmem:[%s537_s0 + $0x20] sm:$0xff]   ;;  %v368_v7 = vld [vmem:[%s537_s0 + $0x18] sm:$0xff]   ;;  %v43_v8 = vld [vmem:[%s539_s2 + $0x10] sm:$0xff] }
   0x3   :  { %193 = vmatpush1.bf16.msra.mxu0 %v364_v1  ;;  %352 = vmatpush1.bf16.msra.mxu1 %v364_v1  ;;  %v375_v5 = vld [vmem:[%s538_s1 + $0x4] ss:$8 sps:$4 sm:$0xff]   ;;  %v44_v10 = vld [vmem:[%s539_s2 + $0x18] sm:$0xff]  ;;  %v369_v12 = vld [vmem:[%s537_s0 + $0x10] sm:$0xff]  }
   0x4   :  { %194 = vmatprep.subr.bf16.mxu0 %v385_v0  ;;  %344 = vmatprep.subr.bf16.mxu1 %v385_v0  ;;  %v378_v6 = vld [vmem:[%s538_s1 + $0x24] ss:$8 sps:$4 sm:$0xff]   ;;  %v48_v16 = vld [vmem:[%s539_s2 + $0x38] sm:$0xff]  ;;  %v47_v17 = vld [vmem:[%s539_s2 + $0x30] sm:$0xff] }
   0x5   :  { %323 = vmatprep.mubr.msk.bf16.mxu0 %vm179_vm0, %v375_v5  ;;  %325 = vmatprep.mubr.msk.bf16.mxu1 %vm179_vm0, %v378_v6  ;;  %v41_v9 = vld [vmem:[%s539_s2] sm:$0xff]  ;;  %v42_v11 = vld [vmem:[%s539_s2 + $0x8] sm:$0xff]  ;;  %v379_v22 = vld [vmem:[%s538_s1 + $0x14] ss:$8 sps:$4 sm:$0xff]  }
   0x6   :  { %61 = vperm.xlu1 %363, %v43_v8   ;;  %51 = vperm.xlu0 %362, %v41_v9   ;;  %v46_v13 = vld [vmem:[%s539_s2 + $0x28] sm:$0xff]  ;;  %v45_v14 = vld [vmem:[%s539_s2 + $0x20] sm:$0xff]  ;;  %v381_v23 = vld [vmem:[%s538_s1 + $0x34] ss:$8 sps:$4 sm:$0xff]  }
   0x7   :  { %195 = vmatpush1.bf16.msra.mxu0 %v365_v2  ;;  %353 = vmatpush1.bf16.msra.mxu1 %v365_v2  ;;  %v370_v15 = vld [vmem:[%s537_s0 + $0x8] sm:$0xff]   ;;  %v371_v18 = vld [vmem:[%s537_s0] sm:$0xff]   ;;  %v383_v24 = vld [vmem:[%s538_s1 + $0x10] ss:$8 sps:$4 sm:$0xff]  }
   0x8   :  { %196 = vmatprep.subr.bf16.mxu0 %v385_v0  ;;  %345 = vmatprep.subr.bf16.mxu1 %v385_v0  ;;  %v372_v19 = vld [vmem:[%s537_s0 + $0x40] sm:$0xff]   ;;  %v384_v25 = vld [vmem:[%s538_s1 + $0x30] ss:$8 sps:$4 sm:$0xff]  }
   0x9   :  { %v373_v20 = vld [vmem:[%s538_s1] ss:$8 sps:$4 sm:$0xff]  }
   0xa   :  { %66 = vperm.xlu1 %363, %v44_v10   ;;  %56 = vperm.xlu0 %362, %v42_v11   ;;  %v376_v21 = vld [vmem:[%s538_s1 + $0x20] ss:$8 sps:$4 sm:$0xff]  }
   0xb   :  { %197 = vmatpush1.bf16.msra.mxu0 %v366_v3  ;;  %354 = vmatpush1.bf16.msra.mxu1 %v366_v3 }
   0xc   :  { %198 = vmatprep.subr.bf16.mxu0 %v385_v0  ;;  %346 = vmatprep.subr.bf16.mxu1 %v385_v0 }
   0xe   :  { %76 = vperm.xlu1 %363, %v46_v13   ;;  %71 = vperm.xlu0 %362, %v45_v14  }
   0xf   :  { %199 = vmatpush1.bf16.msra.mxu0 %v367_v4  ;;  %355 = vmatpush1.bf16.msra.mxu1 %v367_v4 }
  0x10   :  { %200 = vmatprep.subr.bf16.mxu0 %v385_v0  ;;  %347 = vmatprep.subr.bf16.mxu1 %v385_v0 }
  0x12   :  { %86 = vperm.xlu1 %363, %v48_v16   ;;  %81 = vperm.xlu0 %362, %v47_v17  }
  0x13   :  { %201 = vmatpush1.bf16.msra.mxu0 %v368_v7  ;;  %356 = vmatpush1.bf16.msra.mxu1 %v368_v7 }
  0x14   :  { %202 = vmatprep.subr.bf16.mxu0 %v385_v0  ;;  %348 = vmatprep.subr.bf16.mxu1 %v385_v0 }
  0x17   :  { %203 = vmatpush1.bf16.msra.mxu0 %v369_v12  ;;  %357 = vmatpush1.bf16.msra.mxu1 %v369_v12 }
  0x18   :  { %204 = vmatprep.subr.bf16.mxu0 %v385_v0  ;;  %349 = vmatprep.subr.bf16.mxu1 %v385_v0 }
  0x1b   :  { %205 = vmatpush1.bf16.msra.mxu0 %v370_v15  ;;  %358 = vmatpush1.bf16.msra.mxu1 %v370_v15 }
  0x1c   :  { %206 = vmatprep.subr.bf16.mxu0 %v385_v0  ;;  %350 = vmatprep.subr.bf16.mxu1 %v385_v0 }
  0x1f   :  { %207 = vmatpush1.bf16.msra.mxu0 %v371_v18  ;;  %359 = vmatpush1.bf16.msra.mxu1 %v371_v18 }
  0x20   :  { %222 = vmatprep.subr.bf16.mxu0 %v385_v0  ;;  %351 = vmatprep.subr.bf16.mxu1 %v385_v0 }
  0x23   :  { %223 = vmatpush2.bf16.msra.mxu0 %v372_v19  ;;  %360 = vmatpush2.bf16.msra.mxu1 %v372_v19 }
  0x26   :  { %225 = vmatmul.mubr.bf16.vlgmr.msra.gmra.mxu0 %v373_v20  ;;  %241 = vmatmul.mubr.bf16.vlgmr.msra.gmra.mxu1 %v376_v21 }
  0x27   :  { %324 = vmatprep.mubr.msk.bf16.mxu0 %vm179_vm0, %v379_v22  ;;  %326 = vmatprep.mubr.msk.bf16.mxu1 %vm179_vm0, %v381_v23 }
  0x2e   :  { %233 = vmatmul.mubr.bf16.gmra.mxu0 %v383_v24  ;;  %249 = vmatmul.mubr.bf16.gmra.mxu1 %v384_v25 }
  0x81   :  { %v52_v26 = vpop.permute.xlu0 %51  ;;  %v62_v27 = vpop.permute.xlu1 %61 }
  0x85   :  { %v57_v28 = vpop.permute.xlu0 %56  ;;  %v67_v29 = vpop.permute.xlu1 %66 }
  0x89   :  { %v72_v30 = vpop.permute.xlu0 %71  ;;  %v77_v37 = vpop.permute.xlu1 %76 }
  0x8d   :  { %v82_v47 = vpop.permute.xlu0 %81  ;;  %v87_v57 = vpop.permute.xlu1 %86 }
  0xe6   :  { %v226_v31 = vpop.f32.mrf.mxu0  ;;  %v242_v32 = vpop.f32.mrf.mxu1 }
  0xe7   :  { %v227_v33 = vadd.f32 %v226_v31, %v52_v26  ;;  %v243_v34 = vadd.f32 %v242_v32, %v72_v30 }
  0xe8   :  { %v228_v35 = vpop.f32.mrf.mxu0  ;;  %v244_v36 = vpop.f32.mrf.mxu1 }
  0xe9   :  { %v257_v38 = vmax.f32 %v227_v33, 0.0  ;;  %v339_v39 = vpack.c.bf16 %v243_v34, %v243_v34 }
  0xea   :  { %v229_v40 = vpop.f32.mrf.mxu0  ;;  %v245_v41 = vpop.f32.mrf.mxu1 }
  0xeb   :  { %v335_v42 = vpack.c.bf16 %v257_v38, %v257_v38  ;;  %298 = vst.msk [vmem:[%s540_s3 + $0x10] sm:$0xf] %vm277_vm1, %v339_v39  ;;  %v230_v43 = vadd.f32 %v229_v40, %v57_v28  ;;  %v246_v44 = vadd.f32 %v245_v41, %v77_v37 }
  0xec   :  { %v231_v45 = vpop.f32.mrf.mxu0  ;;  %v247_v46 = vpop.f32.mrf.mxu1 }
  0xed   :  { %278 = vst.msk [vmem:[%s540_s3] sm:$0xf] %vm277_vm1, %v335_v42  ;;  %v258_v48 = vmax.f32 %v230_v43, 0.0  ;;  %v340_v49 = vpack.c.bf16 %v246_v44, %v246_v44 }
  0xee   :  { %v234_v50 = vpop.f32.mrf.mxu0  ;;  %v250_v51 = vpop.f32.mrf.mxu1 }
  0xef   :  { %v336_v52 = vpack.c.bf16 %v258_v48, %v258_v48  ;;  %299 = vst.msk [vmem:[%s540_s3 + $0x14] sm:$0xf] %vm277_vm1, %v340_v49  ;;  %v235_v53 = vadd.f32 %v234_v50, %v62_v27  ;;  %v251_v54 = vadd.f32 %v250_v51, %v82_v47 }
  0xf0   :  { %v236_v55 = vpop.f32.mrf.mxu0  ;;  %v252_v56 = vpop.f32.mrf.mxu1 }
  0xf1   :  { %279 = vst.msk [vmem:[%s540_s3 + $0x4] sm:$0xf] %vm277_vm1, %v336_v52  ;;  %v259_v58 = vmax.f32 %v235_v53, 0.0  ;;  %v341_v59 = vpack.c.bf16 %v251_v54, %v251_v54 }
  0xf2   :  { %v237_v60 = vpop.f32.mrf.mxu0  ;;  %v253_v61 = vpop.f32.mrf.mxu1 }
  0xf3   :  { %v337_v62 = vpack.c.bf16 %v259_v58, %v259_v58  ;;  %300 = vst.msk [vmem:[%s540_s3 + $0x18] sm:$0xf] %vm277_vm1, %v341_v59  ;;  %v238_v63 = vadd.f32 %v237_v60, %v67_v29  ;;  %v254_v0 = vadd.f32 %v253_v61, %v87_v57 }
  0xf4   :  { %v239_v1 = vpop.f32.mrf.mxu0  ;;  %v255_v2 = vpop.f32.mrf.mxu1 }
  0xf5   :  { %280 = vst.msk [vmem:[%s540_s3 + $0x8] sm:$0xf] %vm277_vm1, %v337_v62  ;;  %v260_v3 = vmax.f32 %v238_v63, 0.0  ;;  %v342_v4 = vpack.c.bf16 %v254_v0, %v254_v0 }
  0xf7   :  { %v338_v5 = vpack.c.bf16 %v260_v3, %v260_v3  ;;  %301 = vst.msk [vmem:[%s540_s3 + $0x1c] sm:$0xf] %vm277_vm1, %v342_v4 }
  0xf9   :  { %281 = vst.msk [vmem:[%s540_s3 + $0xc] sm:$0xf] %vm277_vm1, %v338_v5 }

// kernel: resnet2fcl_forward.16
= control target key start
LH: loop header
LB: loop body
LE: loop exit
PB: predicated region body
PF: predicated region fallthrough
CT: control target
= control target key end

     0   :  { %v482_v1 = vmov 0   ;;  %vm224_vm0 = vcmask 261120   ;;  %vm361_vm1 = vcmask 257024   ;;  %s616_s0 = inlined_call_operand.vmem [shape: bf16[288,32], index: 0, kind: input, shape index: {}]   ;;  %s617_s1 = inlined_call_operand.vmem [shape: bf16[32,288], index: 1, kind: input, shape index: {}]   ;;  %s618_s2 = inlined_call_operand.vmem [shape: f32[32,1], index: 2, kind: input, shape index: {}]   ;;  %s619_s3 = inlined_call_operand.vmem [shape: bf16[32,32], index: 3, kind: input, shape index: {}]   ;;  %s620_s4 = inlined_call_operand.vmem [shape: bf16[32,32], index: 4, kind: output, shape index: {}]  }
   0x1   :  { %v456_v0 = vld [vmem:[%s616_s0 + $0x78] sm:$0xff]   ;;  %454 = vset.pattern.permute.xlu0 %v482_v1  ;;  %455 = vset.pattern.permute.xlu1 %v482_v1  ;;  %v458_v3 = vld [vmem:[%s616_s0 + $0x70] sm:$0xff]   ;;  %v460_v5 = vld [vmem:[%s616_s0 + $0x68] sm:$0xff]  }
   0x2   :  { %v457_v2 = vld [vmem:[%s616_s0 + $0x38] sm:$0xff]   ;;  %413 = vmatprep.subr.bf16.mxu0 %v456_v0  ;;  %v459_v4 = vld [vmem:[%s616_s0 + $0x30] sm:$0xff]   ;;  %v461_v6 = vld [vmem:[%s616_s0 + $0x28] sm:$0xff]  }
   0x3   :  { %414 = vmatpush3.bf16.msra.mxu0 %v457_v2  ;;  %v462_v7 = vld [vmem:[%s616_s0 + $0x60] sm:$0xff]   ;;  %v464_v9 = vld [vmem:[%s616_s0 + $0x58] sm:$0xff]   ;;  %v471_v11 = vld [vmem:[%s616_s0 + $0x88] sm:$0xff]  }
   0x4   :  { %415 = vmatprep.subr.bf16.mxu0 %v458_v3  ;;  %v463_v8 = vld [vmem:[%s616_s0 + $0x20] sm:$0xff]   ;;  %v465_v10 = vld [vmem:[%s616_s0 + $0x18] sm:$0xff]   ;;  %v466_v12 = vld [vmem:[%s616_s0 + $0x50] sm:$0xff]   ;;  %445 = vmatprep.subr.bf16.mxu1 %v471_v11 }
   0x5   :  { %v467_v13 = vld [vmem:[%s616_s0 + $0x10] sm:$0xff]   ;;  %v468_v14 = vld [vmem:[%s616_s0 + $0x48] sm:$0xff]   ;;  %446 = vmatpush3.bf16.msra.mxu1 %v471_v11  ;;  %v476_v16 = vld [vmem:[%s616_s0 + $0x80] sm:$0xff]  }
   0x6   :  { %v475_v15 = vld [vmem:[%s617_s1 + $0x4] ss:$12 sps:$4 sm:$0xff]   ;;  %v477_v17 = vld [vmem:[%s617_s1 + $0x8] ss:$12 sps:$4 sm:$0xff]   ;;  %447 = vmatprep.subr.bf16.mxu1 %v476_v16  ;;  %v478_v18 = vld [vmem:[%s617_s1 + $0x20] ss:$12 sps:$4 sm:$0xff]  }
   0x7   :  { %416 = vmatpush3.bf16.msra.mxu0 %v459_v4  ;;  %263 = vmatprep.mubr.bf16.mxu0 %v475_v15  ;;  %v62_v19 = vld [vmem:[%s618_s2] sm:$0xff]  ;;  %v469_v20 = vld [vmem:[%s616_s0 + $0x8] sm:$0xff]   ;;  %v64_v21 = vld [vmem:[%s618_s2 + $0x10] sm:$0xff] }
   0x8   :  { %417 = vmatprep.subr.bf16.mxu0 %v460_v5  ;;  %449 = vmatprep.mubr.msk.bf16.mxu1 %vm224_vm0, %v477_v17  ;;  %v470_v22 = vld [vmem:[%s616_s0 + $0x40] sm:$0xff]   ;;  %v63_v23 = vld [vmem:[%s618_s2 + $0x8] sm:$0xff]  ;;  %v65_v24 = vld [vmem:[%s618_s2 + $0x18] sm:$0xff] }
   0x9   :  { %448 = vmatpush3.bf16.msra.mxu1 %v476_v16  ;;  %68 = vperm.xlu0 %454, %v62_v19   ;;  %v472_v25 = vld [vmem:[%s616_s0] sm:$0xff]   ;;  %v479_v27 = vld [vmem:[%s617_s1 + $0x1c] ss:$12 sps:$4 sm:$0xff]  }
   0xa   :  { %78 = vperm.xlu1 %455, %v64_v21   ;;  %v473_v26 = vld [vmem:[%s617_s1] ss:$12 sps:$4 sm:$0xff]   ;;  %v481_v28 = vld [vmem:[%s617_s1 + $0x18] ss:$12 sps:$4 sm:$0xff]  }
   0xb   :  { %418 = vmatpush3.bf16.msra.mxu0 %v461_v6  ;;  %v405_v34 = vld [vmem:[%s619_s3] sm:$0xff]   ;;  %v412_v49 = vld [vmem:[%s619_s3 + $0x8] sm:$0xff]  }
   0xc   :  { %419 = vmatprep.subr.bf16.mxu0 %v462_v7  ;;  %450 = vmatmul.mubr.msk.bf16.vlgmr.msra.gmra.mxu1 %vm224_vm0, %v478_v18  ;;  %v406_v39 = vunpack.c.l.bf16 %v405_v34  ;;  %v407_v48 = vunpack.c.h.bf16 %v405_v34  ;;  %v410_v58 = vunpack.c.l.bf16 %v412_v49  ;;  %v411_v4 = vunpack.c.h.bf16 %v412_v49 }
   0xd   :  { %73 = vperm.xlu0 %454, %v63_v23  }
   0xe   :  { %83 = vperm.xlu1 %455, %v65_v24  }
   0xf   :  { %420 = vmatpush3.bf16.msra.mxu0 %v463_v8 }
  0x10   :  { %421 = vmatprep.subr.bf16.mxu0 %v464_v9 }
  0x13   :  { %422 = vmatpush3.bf16.msra.mxu0 %v465_v10 }
  0x14   :  { %423 = vmatprep.subr.bf16.mxu0 %v466_v12 }
  0x17   :  { %424 = vmatpush3.bf16.msra.mxu0 %v467_v13 }
  0x18   :  { %425 = vmatprep.subr.bf16.mxu0 %v468_v14 }
  0x1b   :  { %426 = vmatpush3.bf16.msra.mxu0 %v469_v20 }
  0x1c   :  { %427 = vmatprep.subr.bf16.mxu0 %v470_v22 }
  0x1f   :  { %428 = vmatpush3.bf16.msra.mxu0 %v472_v25 }
  0x22   :  { %264 = vmatmul.mubr.bf16.vlgmr.msra.gmra.mxu0 %v473_v26 }
  0x23   :  { %271 = vmatprep.mubr.bf16.mxu0 %v479_v27 }
  0x2a   :  { %272 = vmatmul.mubr.bf16.gmra.mxu0 %v481_v28 }
  0x84   :  { %v69_v30 = vpop.permute.xlu0 %68 }
  0x85   :  { %v79_v50 = vpop.permute.xlu1 %78 }
  0x88   :  { %v74_v41 = vpop.permute.xlu0 %73 }
  0x89   :  { %v84_v0 = vpop.permute.xlu1 %83 }
  0xcc   :  { %v451_v29 = vpop.f32.mrf.mxu1 }
  0xce   :  { %v314_v32 = vpop.f32.mrf.mxu1 }
  0xd0   :  { %v452_v37 = vpop.f32.mrf.mxu1 }
  0xd2   :  { %v317_v45 = vpop.f32.mrf.mxu1 }
  0xe2   :  { %v429_v31 = vpop.f32.mrf.mxu0 }
  0xe4   :  { %v430_v33 = vpop.f32.mrf.mxu0 }
  0xe5   :  { %v431_v35 = vadd.f32 %v430_v33, %v429_v31 }
  0xe6   :  { %v432_v36 = vpop.f32.mrf.mxu0 }
  0xe7   :  { %v266_v38 = vadd.f32 %v431_v35, %v69_v30 }
  0xe8   :  { %v433_v40 = vpop.f32.mrf.mxu0 }
  0xe9   :  { %v434_v42 = vadd.f32 %v433_v40, %v432_v36  ;;  %v315_v43 = vadd.f32 %v314_v32, %v266_v38 }
  0xea   :  { %v435_v44 = vpop.f32.mrf.mxu0 }
  0xeb   :  { %v337_v46 = vadd.f32 %v406_v39, %v315_v43  ;;  %v269_v47 = vadd.f32 %v434_v42, %v74_v41 }
  0xec   :  { %v436_v51 = vpop.f32.mrf.mxu0 }
  0xed   :  { %v341_v52 = vmax.f32 %v337_v46, 0.0  ;;  %v437_v53 = vadd.f32 %v436_v51, %v435_v44  ;;  %v318_v54 = vadd.f32 %v317_v45, %v269_v47 }
  0xee   :  { %v438_v55 = vpop.f32.mrf.mxu0 }
  0xef   :  { %v400_v56 = vpack.c.bf16 %v341_v52, %v341_v52  ;;  %v274_v57 = vadd.f32 %v437_v53, %v79_v50  ;;  %v338_v59 = vadd.f32 %v407_v48, %v318_v54 }
  0xf0   :  { %v439_v60 = vpop.f32.mrf.mxu0 }
  0xf1   :  { %362 = vst.msk [vmem:[%s620_s4] sm:$0xf] %vm361_vm1, %v400_v56  ;;  %v323_v61 = vadd.f32 %v451_v29, %v274_v57  ;;  %v342_v62 = vmax.f32 %v338_v59, 0.0  ;;  %v440_v63 = vadd.f32 %v439_v60, %v438_v55 }
  0xf3   :  { %v339_v1 = vadd.f32 %v410_v58, %v323_v61  ;;  %v401_v2 = vpack.c.bf16 %v342_v62, %v342_v62  ;;  %v277_v3 = vadd.f32 %v440_v63, %v84_v0 }
  0xf5   :  { %v343_v5 = vmax.f32 %v339_v1, 0.0  ;;  %363 = vst.msk [vmem:[%s620_s4 + $0x4] sm:$0xf] %vm361_vm1, %v401_v2  ;;  %v326_v6 = vadd.f32 %v452_v37, %v277_v3 }
  0xf7   :  { %v402_v7 = vpack.c.bf16 %v343_v5, %v343_v5  ;;  %v340_v8 = vadd.f32 %v411_v4, %v326_v6 }
  0xf9   :  { %364 = vst.msk [vmem:[%s620_s4 + $0x8] sm:$0xf] %vm361_vm1, %v402_v7  ;;  %v344_v9 = vmax.f32 %v340_v8, 0.0 }
  0xfb   :  { %v403_v10 = vpack.c.bf16 %v344_v9, %v344_v9 }
  0xfd   :  { %365 = vst.msk [vmem:[%s620_s4 + $0xc] sm:$0xf] %vm361_vm1, %v403_v10 }

// kernel: resnet2fcl_forward.17
= control target key start
LH: loop header
LB: loop body
LE: loop exit
PB: predicated region body
PF: predicated region fallthrough
CT: control target
= control target key end

     0   :  { %v964_v1 = vmov 0   ;;  %vm407_vm0 = vcmask 261120   ;;  %vm666_vm1 = vcmask 60416   ;;  %s1267_s0 = inlined_call_operand.vmem [shape: bf16[288,8], index: 0, kind: input, shape index: {}]   ;;  %s1268_s1 = inlined_call_operand.vmem [shape: bf16[128,288], index: 1, kind: input, shape index: {}]   ;;  %s1269_s2 = inlined_call_operand.vmem [shape: f32[128,1], index: 2, kind: input, shape index: {}]   ;;  %s1270_s3 = inlined_call_operand.vmem [shape: bf16[128,8], index: 3, kind: output, shape index: {}]  }
   0x1   :  { %v914_v0 = vld [vmem:[%s1267_s0 + $0x78] sm:$0xff]   ;;  %912 = vset.pattern.permute.xlu0 %v964_v1  ;;  %913 = vset.pattern.permute.xlu1 %v964_v1  ;;  %v916_v3 = vld [vmem:[%s1267_s0 + $0x70] sm:$0xff]   ;;  %v918_v5 = vld [vmem:[%s1267_s0 + $0x68] sm:$0xff]  }
   0x2   :  { %v915_v2 = vld [vmem:[%s1267_s0 + $0x38] sm:$0xff]   ;;  %801 = vmatprep.subr.bf16.mxu0 %v914_v0  ;;  %895 = vmatprep.subr.bf16.mxu1 %v914_v0  ;;  %v917_v4 = vld [vmem:[%s1267_s0 + $0x30] sm:$0xff]   ;;  %v919_v6 = vld [vmem:[%s1267_s0 + $0x28] sm:$0xff]  }
   0x3   :  { %802 = vmatpush3.bf16.msra.mxu0 %v915_v2  ;;  %903 = vmatpush3.bf16.msra.mxu1 %v915_v2  ;;  %v920_v7 = vld [vmem:[%s1267_s0 + $0x60] sm:$0xff]   ;;  %v922_v9 = vld [vmem:[%s1267_s0 + $0x58] sm:$0xff]   ;;  %v924_v11 = vld [vmem:[%s1267_s0 + $0x50] sm:$0xff]  }
   0x4   :  { %803 = vmatprep.subr.bf16.mxu0 %v916_v3  ;;  %896 = vmatprep.subr.bf16.mxu1 %v916_v3  ;;  %v921_v8 = vld [vmem:[%s1267_s0 + $0x20] sm:$0xff]   ;;  %v923_v10 = vld [vmem:[%s1267_s0 + $0x18] sm:$0xff]   ;;  %v925_v14 = vld [vmem:[%s1267_s0 + $0x10] sm:$0xff]  }
   0x5   :  { %v932_v12 = vld [vmem:[%s1268_s1 + $0x4] ss:$12 sps:$4 sm:$0xff]   ;;  %v935_v13 = vld [vmem:[%s1268_s1 + $0x94] ss:$12 sps:$4 sm:$0xff]   ;;  %v926_v15 = vld [vmem:[%s1267_s0 + $0x48] sm:$0xff]  }
   0x6   :  { %464 = vmatprep.mubr.bf16.mxu0 %v932_v12  ;;  %512 = vmatprep.mubr.bf16.mxu1 %v935_v13  ;;  %v927_v16 = vld [vmem:[%s1267_s0 + $0x8] sm:$0xff]   ;;  %v928_v17 = vld [vmem:[%s1267_s0 + $0x40] sm:$0xff]   ;;  %v933_v21 = vld [vmem:[%s1268_s1 + $0x90] ss:$12 sps:$4 sm:$0xff]  }
   0x7   :  { %804 = vmatpush3.bf16.msra.mxu0 %v917_v4  ;;  %904 = vmatpush3.bf16.msra.mxu1 %v917_v4  ;;  %v929_v18 = vld [vmem:[%s1267_s0] sm:$0xff]   ;;  %v936_v20 = vld [vmem:[%s1267_s0 + $0x88] sm:$0xff]   ;;  %v85_v26 = vld [vmem:[%s1269_s2 + $0x10] sm:$0xff] }
   0x8   :  { %805 = vmatprep.subr.bf16.mxu0 %v918_v5  ;;  %897 = vmatprep.subr.bf16.mxu1 %v918_v5  ;;  %v930_v19 = vld [vmem:[%s1268_s1] ss:$12 sps:$4 sm:$0xff]   ;;  %v937_v22 = vld [vmem:[%s1268_s1 + $0x1c] ss:$12 sps:$4 sm:$0xff]   ;;  %v941_v27 = vld [vmem:[%s1268_s1 + $0x18] ss:$12 sps:$4 sm:$0xff]  }
   0x9   :  { %v939_v23 = vld [vmem:[%s1268_s1 + $0xac] ss:$12 sps:$4 sm:$0xff]   ;;  %v943_v24 = vld [vmem:[%s1267_s0 + $0x80] sm:$0xff]   ;;  %v942_v28 = vld [vmem:[%s1268_s1 + $0xa8] ss:$12 sps:$4 sm:$0xff]   ;;  %111 = vperm.xlu1 %913, %v85_v26  }
   0xa   :  { %v83_v25 = vld [vmem:[%s1269_s2] sm:$0xff]  ;;  %v84_v29 = vld [vmem:[%s1269_s2 + $0x8] sm:$0xff]  ;;  %v86_v32 = vld [vmem:[%s1269_s2 + $0x18] sm:$0xff] }
   0xb   :  { %806 = vmatpush3.bf16.msra.mxu0 %v919_v6  ;;  %905 = vmatpush3.bf16.msra.mxu1 %v919_v6  ;;  %v944_v30 = vld [vmem:[%s1268_s1 + $0x34] ss:$12 sps:$4 sm:$0xff]   ;;  %v88_v34 = vld [vmem:[%s1269_s2 + $0x28] sm:$0xff]  ;;  %v947_v35 = vld [vmem:[%s1268_s1 + $0x30] ss:$12 sps:$4 sm:$0xff]  }
   0xc   :  { %807 = vmatprep.subr.bf16.mxu0 %v920_v7  ;;  %898 = vmatprep.subr.bf16.mxu1 %v920_v7  ;;  %v946_v31 = vld [vmem:[%s1268_s1 + $0x8] ss:$12 sps:$4 sm:$0xff]   ;;  %v87_v33 = vld [vmem:[%s1269_s2 + $0x20] sm:$0xff]  ;;  %v949_v38 = vld [vmem:[%s1268_s1 + $0x4c] ss:$12 sps:$4 sm:$0xff]  }
   0xd   :  { %101 = vperm.xlu0 %912, %v83_v25   ;;  %116 = vperm.xlu1 %913, %v86_v32   ;;  %v948_v36 = vld [vmem:[%s1268_s1 + $0x20] ss:$12 sps:$4 sm:$0xff]   ;;  %v89_v37 = vld [vmem:[%s1269_s2 + $0x30] sm:$0xff]  ;;  %v951_v39 = vld [vmem:[%s1268_s1 + $0x38] ss:$12 sps:$4 sm:$0xff]  }
   0xe   :  { %v90_v40 = vld [vmem:[%s1269_s2 + $0x38] sm:$0xff]  ;;  %v91_v41 = vld [vmem:[%s1269_s2 + $0x40] sm:$0xff]  ;;  %v92_v42 = vld [vmem:[%s1269_s2 + $0x48] sm:$0xff] }
   0xf   :  { %808 = vmatpush3.bf16.msra.mxu0 %v921_v8  ;;  %906 = vmatpush3.bf16.msra.mxu1 %v921_v8  ;;  %v952_v43 = vld [vmem:[%s1268_s1 + $0x48] ss:$12 sps:$4 sm:$0xff]   ;;  %v953_v44 = vld [vmem:[%s1268_s1 + $0x50] ss:$12 sps:$4 sm:$0xff]   ;;  %v95_v49 = vld [vmem:[%s1269_s2 + $0x60] sm:$0xff] }
  0x10   :  { %809 = vmatprep.subr.bf16.mxu0 %v922_v9  ;;  %899 = vmatprep.subr.bf16.mxu1 %v922_v9  ;;  %v93_v45 = vld [vmem:[%s1269_s2 + $0x50] sm:$0xff]  ;;  %v94_v48 = vld [vmem:[%s1269_s2 + $0x58] sm:$0xff]  ;;  %v96_v50 = vld [vmem:[%s1269_s2 + $0x68] sm:$0xff] }
  0x11   :  { %106 = vperm.xlu0 %912, %v84_v29   ;;  %126 = vperm.xlu1 %913, %v88_v34   ;;  %v954_v46 = vld [vmem:[%s1268_s1 + $0x64] ss:$12 sps:$4 sm:$0xff]   ;;  %v956_v47 = vld [vmem:[%s1268_s1 + $0x68] ss:$12 sps:$4 sm:$0xff]   ;;  %v957_v51 = vld [vmem:[%s1268_s1 + $0x60] ss:$12 sps:$4 sm:$0xff]  }
  0x12   :  { %v958_v52 = vld [vmem:[%s1268_s1 + $0x80] ss:$12 sps:$4 sm:$0xff]   ;;  %v97_v53 = vld [vmem:[%s1269_s2 + $0x70] sm:$0xff]  ;;  %v959_v54 = vld [vmem:[%s1268_s1 + $0x7c] ss:$12 sps:$4 sm:$0xff]  }
  0x13   :  { %810 = vmatpush3.bf16.msra.mxu0 %v923_v10  ;;  %907 = vmatpush3.bf16.msra.mxu1 %v923_v10  ;;  %v961_v55 = vld [vmem:[%s1268_s1 + $0x98] ss:$12 sps:$4 sm:$0xff]   ;;  %v963_v58 = vld [vmem:[%s1268_s1 + $0xb0] ss:$12 sps:$4 sm:$0xff]  }
  0x14   :  { %811 = vmatprep.subr.bf16.mxu0 %v924_v11  ;;  %900 = vmatprep.subr.bf16.mxu1 %v924_v11  ;;  %v98_v56 = vld [vmem:[%s1269_s2 + $0x78] sm:$0xff] }
  0x15   :  { %121 = vperm.xlu0 %912, %v87_v33   ;;  %136 = vperm.xlu1 %913, %v90_v40   ;;  %v962_v57 = vld [vmem:[%s1268_s1 + $0x78] ss:$12 sps:$4 sm:$0xff]  }
  0x17   :  { %812 = vmatpush3.bf16.msra.mxu0 %v925_v14  ;;  %908 = vmatpush3.bf16.msra.mxu1 %v925_v14 }
  0x18   :  { %813 = vmatprep.subr.bf16.mxu0 %v926_v15  ;;  %901 = vmatprep.subr.bf16.mxu1 %v926_v15 }
  0x19   :  { %131 = vperm.xlu0 %912, %v89_v37   ;;  %146 = vperm.xlu1 %913, %v92_v42  }
  0x1b   :  { %814 = vmatpush3.bf16.msra.mxu0 %v927_v16  ;;  %909 = vmatpush3.bf16.msra.mxu1 %v927_v16 }
  0x1c   :  { %815 = vmatprep.subr.bf16.mxu0 %v928_v17  ;;  %902 = vmatprep.subr.bf16.mxu1 %v928_v17 }
  0x1d   :  { %141 = vperm.xlu0 %912, %v91_v41   ;;  %156 = vperm.xlu1 %913, %v94_v48  }
  0x1f   :  { %816 = vmatpush3.bf16.msra.mxu0 %v929_v18  ;;  %910 = vmatpush3.bf16.msra.mxu1 %v929_v18 }
  0x20   :  { %875 = vmatprep.subr.bf16.mxu1 %v936_v20 }
  0x21   :  { %151 = vperm.xlu0 %912, %v93_v45   ;;  %166 = vperm.xlu1 %913, %v96_v50  }
  0x22   :  { %465 = vmatmul.mubr.bf16.vlgmr.msra.gmra.mxu0 %v930_v19  ;;  %513 = vmatmul.mubr.bf16.vlgmr.msra.gmra.mxu1 %v933_v21 }
  0x23   :  { %876 = vmatpush3.bf16.msra.mxu1 %v936_v20  ;;  %472 = vmatprep.mubr.bf16.mxu0 %v937_v22 }
  0x24   :  { %520 = vmatprep.mubr.bf16.mxu1 %v939_v23  ;;  %877 = vmatprep.subr.bf16.mxu1 %v943_v24 }
  0x25   :  { %161 = vperm.xlu0 %912, %v95_v49   ;;  %176 = vperm.xlu1 %913, %v98_v56  }
  0x27   :  { %878 = vmatpush3.bf16.msra.mxu1 %v943_v24 }
  0x29   :  { %171 = vperm.xlu0 %912, %v97_v53  }
  0x2a   :  { %473 = vmatmul.mubr.bf16.gmra.mxu0 %v941_v27  ;;  %521 = vmatmul.mubr.bf16.gmra.mxu1 %v942_v28 }
  0x2b   :  { %480 = vmatprep.mubr.bf16.mxu0 %v944_v30  ;;  %879 = vmatprep.mubr.msk.bf16.mxu1 %vm407_vm0, %v946_v31 }
  0x32   :  { %481 = vmatmul.mubr.bf16.gmra.mxu0 %v947_v35  ;;  %880 = vmatmul.mubr.msk.bf16.vlgmr.msra.gmra.mxu1 %vm407_vm0, %v948_v36 }
  0x33   :  { %488 = vmatprep.mubr.bf16.mxu0 %v949_v38  ;;  %883 = vmatprep.mubr.msk.bf16.mxu1 %vm407_vm0, %v951_v39 }
  0x3a   :  { %489 = vmatmul.mubr.bf16.gmra.mxu0 %v952_v43  ;;  %884 = vmatmul.mubr.msk.bf16.gmra.mxu1 %vm407_vm0, %v953_v44 }
  0x3b   :  { %496 = vmatprep.mubr.bf16.mxu0 %v954_v46  ;;  %887 = vmatprep.mubr.msk.bf16.mxu1 %vm407_vm0, %v956_v47 }
  0x42   :  { %497 = vmatmul.mubr.bf16.gmra.mxu0 %v957_v51  ;;  %888 = vmatmul.mubr.msk.bf16.gmra.mxu1 %vm407_vm0, %v958_v52 }
  0x43   :  { %504 = vmatprep.mubr.bf16.mxu0 %v959_v54  ;;  %891 = vmatprep.mubr.msk.bf16.mxu1 %vm407_vm0, %v961_v55 }
  0x4a   :  { %505 = vmatmul.mubr.bf16.gmra.mxu0 %v962_v57  ;;  %892 = vmatmul.mubr.msk.bf16.gmra.mxu1 %vm407_vm0, %v963_v58 }
  0x84   :  { %v112_v60 = vpop.permute.xlu1 %111 }
  0x88   :  { %v102_v59 = vpop.permute.xlu0 %101  ;;  %v117_v4 = vpop.permute.xlu1 %116 }
  0x8c   :  { %v107_v63 = vpop.permute.xlu0 %106  ;;  %v127_v12 = vpop.permute.xlu1 %126 }
  0x90   :  { %v122_v7 = vpop.permute.xlu0 %121  ;;  %v137_v25 = vpop.permute.xlu1 %136 }
  0x94   :  { %v132_v16 = vpop.permute.xlu0 %131  ;;  %v1185_v43 = vpop.permute.xlu1 %146 }
  0x98   :  { %v1183_v30 = vpop.permute.xlu0 %141 }
  0x9c   :  { %v1191_v49 = vpop.permute.xlu0 %151 }
  0xe2   :  { %v817_v61 = vpop.f32.mrf.mxu0  ;;  %v1167_v62 = vpop.f32.mrf.mxu1 }
  0xe4   :  { %v818_v0 = vpop.f32.mrf.mxu0  ;;  %v1169_v1 = vpop.f32.mrf.mxu1 }
  0xe5   :  { %v819_v17 = vadd.f32 %v818_v0, %v817_v61  ;;  %v1201_v61 = vpop.permute.xlu1 %156 }
  0xe6   :  { %v820_v2 = vpop.f32.mrf.mxu0  ;;  %v1171_v3 = vpop.f32.mrf.mxu1 }
  0xe7   :  { %v467_v27 = vadd.f32 %v819_v17, %v102_v59 }
  0xe8   :  { %v821_v5 = vpop.f32.mrf.mxu0  ;;  %v1173_v6 = vpop.f32.mrf.mxu1 }
  0xe9   :  { %v822_v22 = vadd.f32 %v821_v5, %v820_v2 }
  0xea   :  { %v823_v8 = vpop.f32.mrf.mxu0  ;;  %v1175_v9 = vpop.f32.mrf.mxu1 }
  0xeb   :  { %v470_v36 = vadd.f32 %v822_v22, %v107_v63 }
  0xec   :  { %v824_v10 = vpop.f32.mrf.mxu0  ;;  %v1177_v11 = vpop.f32.mrf.mxu1 }
  0xed   :  { %v825_v13 = vadd.f32 %v824_v10, %v823_v8 }
  0xee   :  { %v826_v14 = vpop.f32.mrf.mxu0  ;;  %v1179_v15 = vpop.f32.mrf.mxu1 }
  0xef   :  { %v475_v21 = vadd.f32 %v825_v13, %v112_v60 }
  0xf0   :  { %v827_v18 = vpop.f32.mrf.mxu0  ;;  %v1181_v19 = vpop.f32.mrf.mxu1 }
  0xf1   :  { %v828_v20 = vadd.f32 %v827_v18, %v826_v14 }
  0xf2   :  { %v829_v23 = vpop.f32.mrf.mxu0  ;;  %v881_v24 = vpop.f32.mrf.mxu1 }
  0xf3   :  { %v572_v26 = vadd.f32 %v881_v24, %v475_v21  ;;  %v478_v33 = vadd.f32 %v828_v20, %v117_v4  ;;  %v167_v24 = vpop.permute.xlu1 %166 }
  0xf4   :  { %v830_v28 = vpop.f32.mrf.mxu0  ;;  %v563_v29 = vpop.f32.mrf.mxu1 }
  0xf5   :  { %v628_v31 = vmax.f32 %v572_v26, 0.0  ;;  %v564_v32 = vadd.f32 %v563_v29, %v467_v27  ;;  %v831_v38 = vadd.f32 %v830_v28, %v829_v23 }
  0xf6   :  { %v832_v34 = vpop.f32.mrf.mxu0  ;;  %v882_v35 = vpop.f32.mrf.mxu1 }
  0xf7   :  { %v787_v37 = vpack.c.bf16 %v628_v31, %v628_v31  ;;  %v626_v39 = vmax.f32 %v564_v32, 0.0  ;;  %v575_v40 = vadd.f32 %v882_v35, %v478_v33  ;;  %v483_v53 = vadd.f32 %v831_v38, %v122_v7  ;;  %v162_v7 = vpop.permute.xlu0 %161 }
  0xf8   :  { %v833_v41 = vpop.f32.mrf.mxu0  ;;  %v566_v42 = vpop.f32.mrf.mxu1 }
  0xf9   :  { %669 = vst.msk [vmem:[%s1270_s3 + $0x8] sm:$0xf] %vm666_vm1, %v787_v37  ;;  %v785_v44 = vpack.c.bf16 %v626_v39, %v626_v39  ;;  %v629_v45 = vmax.f32 %v575_v40, 0.0  ;;  %v567_v46 = vadd.f32 %v566_v42, %v470_v36  ;;  %v834_v51 = vadd.f32 %v833_v41, %v832_v34 }
  0xfa   :  { %v835_v47 = vpop.f32.mrf.mxu0  ;;  %v885_v48 = vpop.f32.mrf.mxu1  ;;  %v855_v34 = vadd.f32 %v1169_v1, %v1167_v62  ;;  %v858_v40 = vadd.f32 %v1173_v6, %v1171_v3 }
  0xfb   :  { %667 = vst.msk [vmem:[%s1270_s3] sm:$0xf] %vm666_vm1, %v785_v44  ;;  %v788_v50 = vpack.c.bf16 %v629_v45, %v629_v45  ;;  %v627_v52 = vmax.f32 %v567_v46, 0.0  ;;  %v486_v2 = vadd.f32 %v834_v51, %v127_v12  ;;  %v861_v12 = vadd.f32 %v1177_v11, %v1175_v9  ;;  %v172_v26 = vpop.permute.xlu0 %171  ;;  %v177_v62 = vpop.permute.xlu1 %176 }
  0xfc   :  { %v836_v54 = vpop.f32.mrf.mxu0  ;;  %v579_v55 = vpop.f32.mrf.mxu1  ;;  %v864_v11 = vadd.f32 %v1181_v19, %v1179_v15  ;;  %v515_v44 = vadd.f32 %v855_v34, %v162_v7  ;;  %v518_v51 = vadd.f32 %v858_v40, %v167_v24 }
  0xfd   :  { %670 = vst.msk [vmem:[%s1270_s3 + $0xc] sm:$0xf] %vm666_vm1, %v788_v50  ;;  %v786_v56 = vpack.c.bf16 %v627_v52, %v627_v52  ;;  %v837_v57 = vadd.f32 %v836_v54, %v835_v47  ;;  %v580_v58 = vadd.f32 %v579_v55, %v483_v53  ;;  %v523_v37 = vadd.f32 %v861_v12, %v172_v26 }
  0xfe   :  { %v838_v59 = vpop.f32.mrf.mxu0  ;;  %v886_v60 = vpop.f32.mrf.mxu1  ;;  %v526_v45 = vadd.f32 %v864_v11, %v177_v62 }
  0xff   :  { %668 = vst.msk [vmem:[%s1270_s3 + $0x4] sm:$0xf] %vm666_vm1, %v786_v56  ;;  %v491_v63 = vadd.f32 %v837_v57, %v132_v16  ;;  %v630_v0 = vmax.f32 %v580_v58, 0.0 }
 0x100   :  { %v839_v4 = vpop.f32.mrf.mxu0  ;;  %v582_v5 = vpop.f32.mrf.mxu1 }
 0x101   :  { %v588_v8 = vadd.f32 %v885_v48, %v491_v63  ;;  %v789_v10 = vpack.c.bf16 %v630_v0, %v630_v0  ;;  %v840_v13 = vadd.f32 %v839_v4, %v838_v59  ;;  %v583_v14 = vadd.f32 %v582_v5, %v486_v2 }
 0x102   :  { %v841_v17 = vpop.f32.mrf.mxu0  ;;  %v889_v18 = vpop.f32.mrf.mxu1 }
 0x103   :  { %v632_v20 = vmax.f32 %v588_v8, 0.0  ;;  %671 = vst.msk [vmem:[%s1270_s3 + $0x10] sm:$0xf] %vm666_vm1, %v789_v10  ;;  %v494_v21 = vadd.f32 %v840_v13, %v137_v25  ;;  %v631_v22 = vmax.f32 %v583_v14, 0.0 }
 0x104   :  { %v842_v16 = vpop.f32.mrf.mxu0  ;;  %v595_v23 = vpop.f32.mrf.mxu1 }
 0x105   :  { %v791_v27 = vpack.c.bf16 %v632_v20, %v632_v20  ;;  %v591_v28 = vadd.f32 %v886_v60, %v494_v21  ;;  %v790_v29 = vpack.c.bf16 %v631_v22, %v631_v22  ;;  %v843_v31 = vadd.f32 %v842_v16, %v841_v17 }
 0x106   :  { %v844_v32 = vpop.f32.mrf.mxu0  ;;  %v890_v33 = vpop.f32.mrf.mxu1 }
 0x107   :  { %673 = vst.msk [vmem:[%s1270_s3 + $0x18] sm:$0xf] %vm666_vm1, %v791_v27  ;;  %v633_v25 = vmax.f32 %v591_v28, 0.0  ;;  %672 = vst.msk [vmem:[%s1270_s3 + $0x14] sm:$0xf] %vm666_vm1, %v790_v29  ;;  %v499_v9 = vadd.f32 %v843_v31, %v1183_v30 }
 0x108   :  { %v845_v35 = vpop.f32.mrf.mxu0  ;;  %v598_v36 = vpop.f32.mrf.mxu1 }
 0x109   :  { %v792_v1 = vpack.c.bf16 %v633_v25, %v633_v25  ;;  %v596_v38 = vadd.f32 %v595_v23, %v499_v9  ;;  %v846_v39 = vadd.f32 %v845_v35, %v844_v32 }
 0x10a   :  { %v847_v41 = vpop.f32.mrf.mxu0  ;;  %v893_v42 = vpop.f32.mrf.mxu1 }
 0x10b   :  { %674 = vst.msk [vmem:[%s1270_s3 + $0x1c] sm:$0xf] %vm666_vm1, %v792_v1  ;;  %v793_v30 = vpack.c.bf16 %v596_v38, %v596_v38  ;;  %v502_v15 = vadd.f32 %v846_v39, %v1185_v43  ;;  %v620_v19 = vadd.f32 %v893_v42, %v523_v37 }
 0x10c   :  { %v848_v46 = vpop.f32.mrf.mxu0  ;;  %v611_v47 = vpop.f32.mrf.mxu1 }
 0x10d   :  { %707 = vst.msk [vmem:[%s1270_s3 + $0x20] sm:$0xf] %vm666_vm1, %v793_v30  ;;  %v599_v3 = vadd.f32 %v598_v36, %v502_v15  ;;  %v799_v6 = vpack.c.bf16 %v620_v19, %v620_v19  ;;  %v849_v48 = vadd.f32 %v848_v46, %v847_v41  ;;  %v612_v50 = vadd.f32 %v611_v47, %v515_v44 }
 0x10e   :  { %v850_v52 = vpop.f32.mrf.mxu0  ;;  %v894_v53 = vpop.f32.mrf.mxu1 }
 0x10f   :  { %v794_v54 = vpack.c.bf16 %v599_v3, %v599_v3  ;;  %713 = vst.msk [vmem:[%s1270_s3 + $0x38] sm:$0xf] %vm666_vm1, %v799_v6  ;;  %v507_v43 = vadd.f32 %v849_v48, %v1191_v49  ;;  %v797_v55 = vpack.c.bf16 %v612_v50, %v612_v50  ;;  %v623_v56 = vadd.f32 %v894_v53, %v526_v45 }
 0x110   :  { %v851_v57 = vpop.f32.mrf.mxu0  ;;  %v614_v58 = vpop.f32.mrf.mxu1 }
 0x111   :  { %708 = vst.msk [vmem:[%s1270_s3 + $0x24] sm:$0xf] %vm666_vm1, %v794_v54  ;;  %v604_v59 = vadd.f32 %v889_v18, %v507_v43  ;;  %711 = vst.msk [vmem:[%s1270_s3 + $0x30] sm:$0xf] %vm666_vm1, %v797_v55  ;;  %v800_v60 = vpack.c.bf16 %v623_v56, %v623_v56  ;;  %v852_v63 = vadd.f32 %v851_v57, %v850_v52 }
 0x112   :  { %v615_v0 = vadd.f32 %v614_v58, %v518_v51 }
 0x113   :  { %v795_v2 = vpack.c.bf16 %v604_v59, %v604_v59  ;;  %714 = vst.msk [vmem:[%s1270_s3 + $0x3c] sm:$0xf] %vm666_vm1, %v800_v60  ;;  %v510_v49 = vadd.f32 %v852_v63, %v1201_v61 }
 0x114   :  { %v798_v4 = vpack.c.bf16 %v615_v0, %v615_v0 }
 0x115   :  { %709 = vst.msk [vmem:[%s1270_s3 + $0x28] sm:$0xf] %vm666_vm1, %v795_v2  ;;  %v607_v5 = vadd.f32 %v890_v33, %v510_v49 }
 0x116   :  { %712 = vst.msk [vmem:[%s1270_s3 + $0x34] sm:$0xf] %vm666_vm1, %v798_v4 }
 0x117   :  { %v796_v7 = vpack.c.bf16 %v607_v5, %v607_v5 }
 0x119   :  { %710 = vst.msk [vmem:[%s1270_s3 + $0x2c] sm:$0xf] %vm666_vm1, %v796_v7 }

// kernel: resnet2fcl_forward.19
= control target key start
LH: loop header
LB: loop body
LE: loop exit
PB: predicated region body
PF: predicated region fallthrough
CT: control target
= control target key end

     0   :  { %vm142_vm0 = vcmask 25600   ;;  %vm807_vm1 = vcmask 523264   ;;  %vm736_vm2 = vcmask 1041409   ;;  %vm738_vm3 = vcmask 1042434   ;;  %s1529_s0 = inlined_call_operand.vmem [shape: bf16[64,2,4], index: 0, kind: input, shape index: {}]   ;;  %s1530_s1 = inlined_call_operand.vmem [shape: f32[15,64], index: 1, kind: input, shape index: {}]   ;;  %s1531_s2 = inlined_call_operand.vmem [shape: f32[15,1], index: 2, kind: input, shape index: {}]   ;;  %s1532_s3 = inlined_call_operand.vmem [shape: f32[15,2], index: 3, kind: output, shape index: {}]  }
   0x1   :  { %v72_v0 = vld [vmem:[%s1529_s0 + $0x3a] sm:$0x1]  ;;  %v70_v1 = vld [vmem:[%s1529_s0 + $0x38] sm:$0x1]  ;;  %v71_v2 = vld [vmem:[%s1529_s0 + $0x39] sm:$0x1] }
   0x2   :  { %v136_v3 = vunpack.c.l.bf16 %v72_v0  ;;  %v134_v4 = vunpack.c.l.bf16 %v70_v1  ;;  %v135_v5 = vunpack.c.l.bf16 %v71_v2  ;;  %v62_v6 = vld [vmem:[%s1529_s0 + $0x30] sm:$0x1]  ;;  %v63_v8 = vld [vmem:[%s1529_s0 + $0x31] sm:$0x1]  ;;  %v73_v9 = vld [vmem:[%s1529_s0 + $0x3b] sm:$0x1] }
   0x3   :  { %v126_v7 = vunpack.c.l.bf16 %v62_v6  ;;  %v127_v14 = vunpack.c.l.bf16 %v63_v8  ;;  %v137_v15 = vunpack.c.l.bf16 %v73_v9  ;;  %v64_v16 = vld [vmem:[%s1529_s0 + $0x32] sm:$0x1]  ;;  %v74_v17 = vld [vmem:[%s1529_s0 + $0x3c] sm:$0x1]  ;;  %v55_v18 = vld [vmem:[%s1529_s0 + $0x29] sm:$0x1] }
   0x4   :  { %v317_v10 = vsel %vm142_vm0, %v136_v3, 0.0  ;;  %v311_v11 = vsel %vm142_vm0, %v134_v4, 0.0  ;;  %v314_v12 = vsel %vm142_vm0, %v135_v5, 0.0  ;;  %v54_v19 = vld [vmem:[%s1529_s0 + $0x28] sm:$0x1]  ;;  %v128_v24 = vunpack.c.l.bf16 %v64_v16 }
   0x5   :  { %318 = vadd.xlane.f32.xlu1 %v317_v10  ;;  %312 = vadd.xlane.f32.xlu0 %v311_v11  ;;  %v287_v13 = vsel %vm142_vm0, %v126_v7, 0.0  ;;  %v75_v20 = vld [vmem:[%s1529_s0 + $0x3d] sm:$0x1]  ;;  %v65_v21 = vld [vmem:[%s1529_s0 + $0x33] sm:$0x1]  ;;  %v290_v22 = vsel %vm142_vm0, %v127_v14, 0.0  ;;  %v138_v25 = vunpack.c.l.bf16 %v74_v17  ;;  %v119_v28 = vunpack.c.l.bf16 %v55_v18 }
   0x6   :  { %v320_v23 = vsel %vm142_vm0, %v137_v15, 0.0  ;;  %v66_v26 = vld [vmem:[%s1529_s0 + $0x34] sm:$0x1]  ;;  %v56_v27 = vld [vmem:[%s1529_s0 + $0x2a] sm:$0x1]  ;;  %v118_v29 = vunpack.c.l.bf16 %v54_v19  ;;  %v139_v32 = vunpack.c.l.bf16 %v75_v20  ;;  %v129_v33 = vunpack.c.l.bf16 %v65_v21 }
   0x7   :  { %v76_v30 = vld [vmem:[%s1529_s0 + $0x3e] sm:$0x1]  ;;  %v46_v31 = vld [vmem:[%s1529_s0 + $0x20] sm:$0x1]  ;;  %v130_v34 = vunpack.c.l.bf16 %v66_v26  ;;  %v120_v35 = vunpack.c.l.bf16 %v56_v27  ;;  %v293_v36 = vsel %vm142_vm0, %v128_v24, 0.0  ;;  %v323_v37 = vsel %vm142_vm0, %v138_v25, 0.0 }
   0x8   :  { %v140_v38 = vunpack.c.l.bf16 %v76_v30  ;;  %v110_v39 = vunpack.c.l.bf16 %v46_v31  ;;  %v1011_v40 = vld [vmem:[%s1529_s0 + $0x21] sm:$0x1]  ;;  %v1016_v41 = vld [vmem:[%s1529_s0 + $0x2b] sm:$0x1]  ;;  %v266_v42 = vsel %vm142_vm0, %v119_v28, 0.0  ;;  %v263_v43 = vsel %vm142_vm0, %v118_v29, 0.0 }
   0x9   :  { %315 = vadd.xlane.f32.xlu0 %v314_v12  ;;  %288 = vadd.xlane.f32.xlu1 %v287_v13  ;;  %v326_v44 = vsel %vm142_vm0, %v139_v32, 0.0  ;;  %v296_v45 = vsel %vm142_vm0, %v129_v33, 0.0  ;;  %v1025_v46 = vld [vmem:[%s1529_s0 + $0x35] sm:$0x1]  ;;  %v1030_v47 = vld [vmem:[%s1529_s0 + $0x3f] sm:$0x1]  ;;  %v111_v50 = vunpack.c.l.bf16 %v1011_v40  ;;  %v121_v51 = vunpack.c.l.bf16 %v1016_v41 }
   0xa   :  { %v1033_v48 = vsel %vm142_vm0, %v130_v34, 0.0  ;;  %v1036_v49 = vsel %vm142_vm0, %v120_v35, 0.0  ;;  %v31_v52 = vld [vmem:[%s1529_s0 + $0x11] sm:$0x1]  ;;  %v41_v53 = vld [vmem:[%s1529_s0 + $0x1b] sm:$0x1]  ;;  %v131_v60 = vunpack.c.l.bf16 %v1025_v46  ;;  %v141_v61 = vunpack.c.l.bf16 %v1030_v47 }
   0xb   :  { %v1047_v54 = vsel %vm142_vm0, %v140_v38, 0.0  ;;  %v1050_v55 = vsel %vm142_vm0, %v110_v39, 0.0  ;;  %v95_v56 = vunpack.c.l.bf16 %v31_v52  ;;  %v105_v57 = vunpack.c.l.bf16 %v41_v53  ;;  %v51_v58 = vld [vmem:[%s1529_s0 + $0x25] sm:$0x1]  ;;  %v61_v59 = vld [vmem:[%s1529_s0 + $0x2f] sm:$0x1] }
   0xc   :  { %v115_v62 = vunpack.c.l.bf16 %v51_v58  ;;  %v125_v63 = vunpack.c.l.bf16 %v61_v59  ;;  %v32_v0 = vld [vmem:[%s1529_s0 + $0x12] sm:$0x1]  ;;  %v42_v1 = vld [vmem:[%s1529_s0 + $0x1c] sm:$0x1]  ;;  %v52_v6 = vld [vmem:[%s1529_s0 + $0x26] sm:$0x1] }
   0xd   :  { %291 = vadd.xlane.f32.xlu0 %v290_v22  ;;  %321 = vadd.xlane.f32.xlu1 %v320_v23  ;;  %v1067_v2 = vsel %vm142_vm0, %v95_v56, 0.0  ;;  %v1070_v3 = vsel %vm142_vm0, %v105_v57, 0.0  ;;  %v96_v4 = vunpack.c.l.bf16 %v32_v0  ;;  %v106_v5 = vunpack.c.l.bf16 %v42_v1  ;;  %v22_v7 = vld [vmem:[%s1529_s0 + $0x8] sm:$0x1]  ;;  %v23_v12 = vld [vmem:[%s1529_s0 + $0x9] sm:$0x1] }
   0xe   :  { %v1079_v8 = vsel %vm142_vm0, %v115_v62, 0.0  ;;  %v1082_v9 = vsel %vm142_vm0, %v125_v63, 0.0  ;;  %v116_v10 = vunpack.c.l.bf16 %v52_v6  ;;  %v86_v11 = vunpack.c.l.bf16 %v22_v7  ;;  %v33_v13 = vld [vmem:[%s1529_s0 + $0x13] sm:$0x1]  ;;  %v43_v18 = vld [vmem:[%s1529_s0 + $0x1d] sm:$0x1] }
   0xf   :  { %v1091_v14 = vsel %vm142_vm0, %v96_v4, 0.0  ;;  %v1094_v15 = vsel %vm142_vm0, %v106_v5, 0.0  ;;  %v87_v16 = vunpack.c.l.bf16 %v23_v12  ;;  %v97_v17 = vunpack.c.l.bf16 %v33_v13  ;;  %v53_v19 = vld [vmem:[%s1529_s0 + $0x27] sm:$0x1]  ;;  %v24_v24 = vld [vmem:[%s1529_s0 + $0xa] sm:$0x1] }
  0x10   :  { %v1103_v20 = vsel %vm142_vm0, %v116_v10, 0.0  ;;  %v1106_v21 = vsel %vm142_vm0, %v86_v11, 0.0  ;;  %v107_v22 = vunpack.c.l.bf16 %v43_v18  ;;  %v117_v23 = vunpack.c.l.bf16 %v53_v19  ;;  %v34_v25 = vld [vmem:[%s1529_s0 + $0x14] sm:$0x1]  ;;  %v44_v30 = vld [vmem:[%s1529_s0 + $0x1e] sm:$0x1] }
  0x11   :  { %294 = vadd.xlane.f32.xlu0 %v293_v36  ;;  %324 = vadd.xlane.f32.xlu1 %v323_v37  ;;  %v1115_v26 = vsel %vm142_vm0, %v87_v16, 0.0  ;;  %v1118_v27 = vsel %vm142_vm0, %v97_v17, 0.0  ;;  %v88_v28 = vunpack.c.l.bf16 %v24_v24  ;;  %v98_v29 = vunpack.c.l.bf16 %v34_v25  ;;  %v14_v31 = vld [vmem:[%s1529_s0] sm:$0x1]  ;;  %v15_v36 = vld [vmem:[%s1529_s0 + $0x1] sm:$0x1] }
  0x12   :  { %v1127_v32 = vsel %vm142_vm0, %v107_v22, 0.0  ;;  %v1130_v33 = vsel %vm142_vm0, %v117_v23, 0.0  ;;  %v108_v34 = vunpack.c.l.bf16 %v44_v30  ;;  %v78_v35 = vunpack.c.l.bf16 %v14_v31  ;;  %v25_v37 = vld [vmem:[%s1529_s0 + $0xb] sm:$0x1]  ;;  %v16_v58 = vld [vmem:[%s1529_s0 + $0x2] sm:$0x1] }
  0x13   :  { %v1139_v38 = vsel %vm142_vm0, %v88_v28, 0.0  ;;  %v1142_v39 = vsel %vm142_vm0, %v98_v29, 0.0  ;;  %v26_v59 = vld [vmem:[%s1529_s0 + $0xc] sm:$0x1]  ;;  %v80_v0 = vunpack.c.l.bf16 %v16_v58  ;;  %v36_v4 = vld [vmem:[%s1529_s0 + $0x16] sm:$0x1] }
  0x14   :  { %v1151_v52 = vsel %vm142_vm0, %v108_v34, 0.0  ;;  %v1154_v53 = vsel %vm142_vm0, %v78_v35, 0.0  ;;  %v90_v1 = vunpack.c.l.bf16 %v26_v59  ;;  %v17_v5 = vld [vmem:[%s1529_s0 + $0x3] sm:$0x1]  ;;  %v100_v10 = vunpack.c.l.bf16 %v36_v4  ;;  %v27_v12 = vld [vmem:[%s1529_s0 + $0xd] sm:$0x1] }
  0x15   :  { %267 = vadd.xlane.f32.xlu1 %v266_v42  ;;  %264 = vadd.xlane.f32.xlu0 %v263_v43  ;;  %v79_v42 = vunpack.c.l.bf16 %v15_v36  ;;  %v89_v43 = vunpack.c.l.bf16 %v25_v37  ;;  %v81_v11 = vunpack.c.l.bf16 %v17_v5  ;;  %v37_v13 = vld [vmem:[%s1529_s0 + $0x17] sm:$0x1]  ;;  %v91_v16 = vunpack.c.l.bf16 %v27_v12  ;;  %v18_v18 = vld [vmem:[%s1529_s0 + $0x4] sm:$0x1]  ;;  %v28_v19 = vld [vmem:[%s1529_s0 + $0xe] sm:$0x1] }
  0x16   :  { %v101_v17 = vunpack.c.l.bf16 %v37_v13  ;;  %v1201_v22 = vsel %vm142_vm0, %v100_v10, 0.0  ;;  %v82_v24 = vunpack.c.l.bf16 %v18_v18  ;;  %v92_v25 = vunpack.c.l.bf16 %v28_v19  ;;  %v19_v28 = vld [vmem:[%s1529_s0 + $0x5] sm:$0x1]  ;;  %v29_v29 = vld [vmem:[%s1529_s0 + $0xf] sm:$0x1] }
  0x17   :  { %v1163_v62 = vsel %vm142_vm0, %v79_v42, 0.0  ;;  %v1166_v63 = vsel %vm142_vm0, %v89_v43, 0.0  ;;  %v1204_v23 = vsel %vm142_vm0, %v81_v11, 0.0  ;;  %v1213_v30 = vsel %vm142_vm0, %v91_v16, 0.0  ;;  %v20_v36 = vld [vmem:[%s1529_s0 + $0x6] sm:$0x1] }
  0x18   :  { %v1216_v31 = vsel %vm142_vm0, %v101_v17, 0.0  ;;  %v83_v34 = vunpack.c.l.bf16 %v19_v28  ;;  %v93_v35 = vunpack.c.l.bf16 %v29_v29  ;;  %v21_v37 = vld [vmem:[%s1529_s0 + $0x7] sm:$0x1]  ;;  %v1227_v42 = vsel %vm142_vm0, %v82_v24, 0.0  ;;  %v48_v58 = vld [vmem:[%s1529_s0 + $0x22] sm:$0x1] }
  0x19   :  { %327 = vadd.xlane.f32.xlu1 %v326_v44  ;;  %297 = vadd.xlane.f32.xlu0 %v296_v45  ;;  %v35_v44 = vld [vmem:[%s1529_s0 + $0x15] sm:$0x1]  ;;  %v45_v45 = vld [vmem:[%s1529_s0 + $0x1f] sm:$0x1]  ;;  %v1230_v43 = vsel %vm142_vm0, %v92_v25, 0.0  ;;  %v332_v59 = vsel %vm142_vm0, %v141_v61, 0.0 }
  0x1a   :  { %v99_v56 = vunpack.c.l.bf16 %v35_v44  ;;  %v109_v57 = vunpack.c.l.bf16 %v45_v45  ;;  %v84_v44 = vunpack.c.l.bf16 %v20_v36  ;;  %v85_v45 = vunpack.c.l.bf16 %v21_v37  ;;  %v58_v40 = vld [vmem:[%s1529_s0 + $0x2c] sm:$0x1]  ;;  %v68_v4 = vld [vmem:[%s1529_s0 + $0x36] sm:$0x1]  ;;  %v38_v5 = vld [vmem:[%s1529_s0 + $0x18] sm:$0x1] }
  0x1b   :  { %v132_v10 = vunpack.c.l.bf16 %v68_v4  ;;  %v102_v47 = vunpack.c.l.bf16 %v38_v5  ;;  %v39_v61 = vld [vmem:[%s1529_s0 + $0x19] sm:$0x1]  ;;  %v49_v11 = vld [vmem:[%s1529_s0 + $0x23] sm:$0x1]  ;;  %v59_v18 = vld [vmem:[%s1529_s0 + $0x2d] sm:$0x1] }
  0x1c   :  { %v1177_v6 = vsel %vm142_vm0, %v99_v56, 0.0  ;;  %v1180_v7 = vsel %vm142_vm0, %v109_v57, 0.0  ;;  %v242_v56 = vsel %vm142_vm0, %v111_v50, 0.0  ;;  %v272_v57 = vsel %vm142_vm0, %v121_v51, 0.0  ;;  %v69_v19 = vld [vmem:[%s1529_s0 + $0x37] sm:$0x1] }
  0x1d   :  { %300 = vadd.xlane.f32.xlu1 %v1033_v48  ;;  %270 = vadd.xlane.f32.xlu0 %v1036_v49  ;;  %v1189_v48 = vsel %vm142_vm0, %v80_v0, 0.0  ;;  %v1192_v49 = vsel %vm142_vm0, %v90_v1, 0.0  ;;  %v1251_v50 = vsel %vm142_vm0, %v84_v44, 0.0  ;;  %v1254_v41 = vsel %vm142_vm0, %v85_v45, 0.0 }
  0x1e   :  { %v302_v51 = vsel %vm142_vm0, %v131_v60, 0.0  ;;  %v112_v0 = vunpack.c.l.bf16 %v48_v58  ;;  %v122_v1 = vunpack.c.l.bf16 %v58_v40  ;;  %v305_v12 = vsel %vm142_vm0, %v132_v10, 0.0 }
  0x1f   :  { %v215_v13 = vsel %vm142_vm0, %v102_v47, 0.0  ;;  %v103_v16 = vunpack.c.l.bf16 %v39_v61  ;;  %v113_v17 = vunpack.c.l.bf16 %v49_v11  ;;  %v123_v28 = vunpack.c.l.bf16 %v59_v18 }
  0x20   :  { %v245_v46 = vsel %vm142_vm0, %v112_v0, 0.0  ;;  %v275_v60 = vsel %vm142_vm0, %v122_v1, 0.0  ;;  %v133_v29 = vunpack.c.l.bf16 %v69_v19  ;;  %vm740_vm4 = vcmask 1043459  }
  0x21   :  { %330 = vadd.xlane.f32.xlu0 %v1047_v54  ;;  %240 = vadd.xlane.f32.xlu1 %v1050_v55  ;;  %v1239_v54 = vsel %vm142_vm0, %v83_v34, 0.0  ;;  %v1242_v55 = vsel %vm142_vm0, %v93_v35, 0.0  ;;  %v218_v24 = vsel %vm142_vm0, %v103_v16, 0.0  ;;  %v248_v25 = vsel %vm142_vm0, %v113_v17, 0.0  ;;  %v40_v34 = vld [vmem:[%s1529_s0 + $0x1a] sm:$0x1] }
  0x22   :  { %v50_v35 = vld [vmem:[%s1529_s0 + $0x24] sm:$0x1]  ;;  %v278_v36 = vsel %vm142_vm0, %v123_v28, 0.0  ;;  %v308_v37 = vsel %vm142_vm0, %v133_v29, 0.0  ;;  %v104_v44 = vunpack.c.l.bf16 %v40_v34  ;;  %vm742_vm5 = vcmask 1044484  }
  0x23   :  { %v114_v45 = vunpack.c.l.bf16 %v50_v35  ;;  %vm744_vm6 = vcmask 1045509   ;;  %vm746_vm7 = vcmask 1046534   ;;  %vm748_vm8 = vcmask 1047559  }
  0x24   :  { %v221_v58 = vsel %vm142_vm0, %v104_v44, 0.0  ;;  %vm891_vm9 = vcmask 14336   ;;  %vm889_vm10 = vcmask 15360  }
  0x25   :  { %243 = vadd.xlane.f32.xlu0 %v242_v56  ;;  %273 = vadd.xlane.f32.xlu1 %v272_v57  ;;  %v60_v56 = vld [vmem:[%s1529_s0 + $0x2e] sm:$0x1]  ;;  %v30_v57 = vld [vmem:[%s1529_s0 + $0x10] sm:$0x1]  ;;  %v251_v40 = vsel %vm142_vm0, %v114_v45, 0.0 }
  0x29   :  { %303 = vadd.xlane.f32.xlu0 %v302_v51  ;;  %333 = vadd.xlane.f32.xlu1 %v332_v59  ;;  %v124_v51 = vunpack.c.l.bf16 %v60_v56  ;;  %v94_v59 = vunpack.c.l.bf16 %v30_v57 }
  0x2b   :  { %v281_v0 = vsel %vm142_vm0, %v124_v51, 0.0  ;;  %v191_v1 = vsel %vm142_vm0, %v94_v59, 0.0 }
  0x2d   :  { %246 = vadd.xlane.f32.xlu0 %v245_v46  ;;  %276 = vadd.xlane.f32.xlu1 %v275_v60 }
  0x31   :  { %306 = vadd.xlane.f32.xlu0 %v305_v12  ;;  %216 = vadd.xlane.f32.xlu1 %v215_v13 }
  0x35   :  { %219 = vadd.xlane.f32.xlu0 %v218_v24  ;;  %249 = vadd.xlane.f32.xlu1 %v248_v25 }
  0x39   :  { %279 = vadd.xlane.f32.xlu0 %v278_v36  ;;  %309 = vadd.xlane.f32.xlu1 %v308_v37 }
  0x3d   :  { %222 = vadd.xlane.f32.xlu0 %v221_v58  ;;  %252 = vadd.xlane.f32.xlu1 %v251_v40 }
  0x41   :  { %282 = vadd.xlane.f32.xlu0 %v281_v0  ;;  %192 = vadd.xlane.f32.xlu1 %v191_v1 }
  0x45   :  { %195 = vadd.xlane.f32.xlu0 %v1067_v2  ;;  %225 = vadd.xlane.f32.xlu1 %v1070_v3 }
  0x49   :  { %255 = vadd.xlane.f32.xlu0 %v1079_v8  ;;  %285 = vadd.xlane.f32.xlu1 %v1082_v9  ;;  %v400_v8 = vld [vmem:[%s1530_s1] sm:$0xff] }
  0x4a   :  { %925 = vmatprep.mubr.msk.f32.mxu0 %vm807_vm1, %v400_v8 }
  0x4d   :  { %198 = vadd.xlane.f32.xlu0 %v1091_v14  ;;  %228 = vadd.xlane.f32.xlu1 %v1094_v15  ;;  %v931_v15 = vmov 0  }
  0x4e   :  { %930 = vset.pattern.permute.xlu1 %v931_v15  ;;  %929 = vset.pattern.permute.xlu0 %v931_v15 }
  0x51   :  { %258 = vadd.xlane.f32.xlu0 %v1103_v20  ;;  %168 = vadd.xlane.f32.xlu1 %v1106_v21  ;;  %v403_v20 = vld [vmem:[%s1531_s2 + $0x8] sm:$0x7f]  ;;  %v402_v21 = vld [vmem:[%s1531_s2] sm:$0xff] }
  0x55   :  { %171 = vadd.xlane.f32.xlu0 %v1115_v26  ;;  %201 = vadd.xlane.f32.xlu1 %v1118_v27 }
  0x59   :  { %231 = vadd.xlane.f32.xlu0 %v1127_v32  ;;  %261 = vadd.xlane.f32.xlu1 %v1130_v33 }
  0x5d   :  { %174 = vadd.xlane.f32.xlu0 %v1139_v38  ;;  %204 = vadd.xlane.f32.xlu1 %v1142_v39 }
  0x61   :  { %234 = vadd.xlane.f32.xlu0 %v1151_v52  ;;  %144 = vadd.xlane.f32.xlu1 %v1154_v53  ;;  %v478_v52 = vlaneseq }
  0x65   :  { %147 = vadd.xlane.f32.xlu0 %v1163_v62  ;;  %177 = vadd.xlane.f32.xlu1 %v1166_v63  ;;  %v479_v63 = vand.u32 127, %v478_v52 }
  0x69   :  { %207 = vadd.xlane.f32.xlu0 %v1177_v6  ;;  %237 = vadd.xlane.f32.xlu1 %v1180_v7  ;;  %v481_v6 = vshrl.u32 %v478_v52, 7 }
  0x6d   :  { %150 = vadd.xlane.f32.xlu0 %v1189_v48  ;;  %180 = vadd.xlane.f32.xlu1 %v1192_v49 }
  0x71   :  { %210 = vadd.xlane.f32.xlu0 %v1201_v22  ;;  %153 = vadd.xlane.f32.xlu1 %v1204_v23  ;;  %v1354_v22 = vsub.s32 %v479_v63, %v481_v6 }
  0x75   :  { %183 = vadd.xlane.f32.xlu0 %v1213_v30  ;;  %213 = vadd.xlane.f32.xlu1 %v1216_v31 }
  0x79   :  { %156 = vadd.xlane.f32.xlu0 %v1227_v42  ;;  %186 = vadd.xlane.f32.xlu1 %v1230_v43 }
  0x7d   :  { %159 = vadd.xlane.f32.xlu0 %v1239_v54  ;;  %189 = vadd.xlane.f32.xlu1 %v1242_v55 }
  0x81   :  { %162 = vadd.xlane.f32.xlu0 %v1251_v50  ;;  %165 = vadd.xlane.f32.xlu1 %v1254_v41 }
  0x8e   :  { %v319_v2 = vpop.xlane.xlu1 %318  ;;  %v313_v3 = vpop.xlane.xlu0 %312 }
  0x8f   :  { %v392_v23 = vmul.f32 0.25, %v313_v3  ;;  %v394_v54 = vmul.f32 0.25, %v319_v2 }
  0x91   :  { %v707_v50 = vrot.slane %v392_v23, %v1354_v22  ;;  %v715_v47 = vrot.slane %v394_v54, %v1354_v22 }
  0x92   :  { %v316_v9 = vpop.xlane.xlu0 %315  ;;  %v1339_v14 = vpop.xlane.xlu1 %288  ;;  %411 = vperm.xlu1 %930, %v403_v20  }
  0x93   :  { %v393_v49 = vmul.f32 0.25, %v316_v9  ;;  %v384_v57 = vmul.f32 0.25, %v1339_v14 }
  0x95   :  { %v711_v42 = vrot.slane %v393_v49, %v1354_v22  ;;  %v675_v8 = vrot.slane %v384_v57, %v1354_v22 }
  0x96   :  { %v292_v26 = vpop.xlane.xlu0 %291  ;;  %v322_v27 = vpop.xlane.xlu1 %321 }
  0x97   :  { %406 = vperm.xlu0 %929, %v402_v21   ;;  %v395_v43 = vmul.f32 0.25, %v322_v27  ;;  %v792_v60 = vsel %vm736_vm2, %v711_v42, %v707_v50  ;;  %v385_v37 = vmul.f32 0.25, %v292_v26 }
  0x98   :  { %v793_v12 = vsel %vm738_vm3, %v715_v47, %v792_v60 }
  0x99   :  { %v719_v10 = vrot.slane %v395_v43, %v1354_v22  ;;  %v679_v51 = vrot.slane %v385_v37, %v1354_v22 }
  0x9a   :  { %v295_v32 = vpop.xlane.xlu0 %294  ;;  %v325_v33 = vpop.xlane.xlu1 %324 }
  0x9b   :  { %v396_v55 = vmul.f32 0.25, %v325_v33  ;;  %v794_v18 = vsel %vm740_vm4, %v719_v10, %v793_v12  ;;  %v386_v44 = vmul.f32 0.25, %v295_v32  ;;  %v785_v20 = vsel %vm736_vm2, %v679_v51, %v675_v8 }
  0x9d   :  { %v723_v61 = vrot.slane %v396_v55, %v1354_v22  ;;  %v683_v0 = vrot.slane %v386_v44, %v1354_v22 }
  0x9e   :  { %v1348_v38 = vpop.xlane.xlu1 %267  ;;  %v1350_v39 = vpop.xlane.xlu0 %264 }
  0x9f   :  { %v795_v24 = vsel %vm742_vm5, %v723_v61, %v794_v18  ;;  %v786_v21 = vsel %vm738_vm3, %v683_v0, %v785_v20  ;;  %v376_v42 = vmul.f32 0.25, %v1350_v39 }
  0xa1   :  { %v643_v60 = vrot.slane %v376_v42, %v1354_v22 }
  0xa2   :  { %v328_v53 = vpop.xlane.xlu1 %327  ;;  %v298_v62 = vpop.xlane.xlu0 %297 }
  0xa3   :  { %v397_v41 = vmul.f32 0.25, %v328_v53  ;;  %v387_v58 = vmul.f32 0.25, %v298_v62 }
  0xa5   :  { %v727_v11 = vrot.slane %v397_v41, %v1354_v22  ;;  %v687_v9 = vrot.slane %v387_v58, %v1354_v22 }
  0xa6   :  { %v301_v7 = vpop.xlane.xlu1 %300  ;;  %v1352_v48 = vpop.xlane.xlu0 %270 }
  0xa7   :  { %v796_v28 = vsel %vm744_vm6, %v727_v11, %v795_v24  ;;  %v388_v40 = vmul.f32 0.25, %v301_v7  ;;  %v787_v33 = vsel %vm740_vm4, %v687_v9, %v786_v21  ;;  %v378_v43 = vmul.f32 0.25, %v1352_v48 }
  0xa9   :  { %v691_v15 = vrot.slane %v388_v40, %v1354_v22  ;;  %v651_v47 = vrot.slane %v378_v43, %v1354_v22 }
  0xaa   :  { %v331_v30 = vpop.xlane.xlu0 %330  ;;  %v1356_v31 = vpop.xlane.xlu1 %240 }
  0xab   :  { %v398_v4 = vmul.f32 0.25, %v331_v30  ;;  %v788_v53 = vsel %vm742_vm5, %v691_v15, %v787_v33  ;;  %v377_v30 = vmul.f32 0.25, %v1348_v38  ;;  %v368_v51 = vmul.f32 0.25, %v1356_v31 }
  0xad   :  { %v731_v13 = vrot.slane %v398_v4, %v1354_v22  ;;  %v647_v4 = vrot.slane %v377_v30, %v1354_v22 }
  0xae   :  { %v1360_v5 = vpop.xlane.xlu0 %243  ;;  %v1362_v46 = vpop.xlane.xlu1 %273 }
  0xaf   :  { %v797_v35 = vsel %vm746_vm7, %v731_v13, %v796_v28  ;;  %v379_v50 = vmul.f32 0.25, %v1362_v46  ;;  %v778_v12 = vsel %vm736_vm2, %v647_v4, %v643_v60 }
  0xb0   :  { %v779_v13 = vsel %vm738_vm3, %v651_v47, %v778_v12 }
  0xb1   :  { %v655_v11 = vrot.slane %v379_v50, %v1354_v22 }
  0xb2   :  { %v304_v16 = vpop.xlane.xlu0 %303  ;;  %v334_v17 = vpop.xlane.xlu1 %333 }
  0xb3   :  { %v399_v19 = vmul.f32 0.25, %v334_v17  ;;  %v389_v59 = vmul.f32 0.25, %v304_v16 }
  0xb5   :  { %v735_v25 = vrot.slane %v399_v19, %v1354_v22  ;;  %v695_v14 = vrot.slane %v389_v59, %v1354_v22  ;;  %v780_v19 = vsel %vm740_vm4, %v655_v11, %v779_v13 }
  0xb6   :  { %v1375_v29 = vpop.xlane.xlu0 %246  ;;  %v277_v34 = vpop.xlane.xlu1 %276 }
  0xb7   :  { %v798_v36 = vsel %vm748_vm8, %v735_v25, %v797_v35  ;;  %v789_v63 = vsel %vm744_vm6, %v695_v14, %v788_v53  ;;  %v380_v41 = vmul.f32 0.25, %v277_v34  ;;  %v370_v57 = vmul.f32 0.25, %v1375_v29 }
  0xb8   :  { %909 = vmatprep.subr.mxu0 %v798_v36 }
  0xb9   :  { %910 = vmatpush3.msra.mxu0 %v798_v36  ;;  %v659_v48 = vrot.slane %v380_v41, %v1354_v22  ;;  %v619_v9 = vrot.slane %v370_v57, %v1354_v22 }
  0xba   :  { %v307_v45 = vpop.xlane.xlu0 %306  ;;  %v1379_v56 = vpop.xlane.xlu1 %216 }
  0xbb   :  { %v390_v1 = vmul.f32 0.25, %v307_v45  ;;  %v781_v25 = vsel %vm742_vm5, %v659_v48, %v780_v19  ;;  %v369_v45 = vmul.f32 0.25, %v1360_v5  ;;  %v611_v5 = vrot.slane %v368_v51, %v1354_v22 }
  0xbc   :  { %v360_v4 = vmul.f32 0.25, %v1379_v56 }
  0xbd   :  { %v699_v26 = vrot.slane %v390_v1, %v1354_v22  ;;  %v615_v1 = vrot.slane %v369_v45, %v1354_v22 }
  0xbe   :  { %v1384_v2 = vpop.xlane.xlu0 %219  ;;  %v250_v3 = vpop.xlane.xlu1 %249 }
  0xbf   :  { %v790_v49 = vsel %vm746_vm7, %v699_v26, %v789_v63  ;;  %v371_v59 = vmul.f32 0.25, %v250_v3  ;;  %v771_v26 = vsel %vm736_vm2, %v615_v1, %v611_v5  ;;  %v361_v43 = vmul.f32 0.25, %v1384_v2 }
  0xc0   :  { %v772_v3 = vsel %vm738_vm3, %v619_v9, %v771_v26  ;;  %v579_v2 = vrot.slane %v360_v4, %v1354_v22 }
  0xc1   :  { %v623_v29 = vrot.slane %v371_v59, %v1354_v22  ;;  %v583_v47 = vrot.slane %v361_v43, %v1354_v22 }
  0xc2   :  { %v280_v27 = vpop.xlane.xlu0 %279  ;;  %v310_v32 = vpop.xlane.xlu1 %309 }
  0xc3   :  { %v391_v52 = vmul.f32 0.25, %v310_v32  ;;  %v381_v10 = vmul.f32 0.25, %v280_v27 }
  0xc5   :  { %v703_v62 = vrot.slane %v391_v52, %v1354_v22  ;;  %v663_v46 = vrot.slane %v381_v10, %v1354_v22  ;;  %v773_v52 = vsel %vm740_vm4, %v623_v29, %v772_v3 }
  0xc6   :  { %v1397_v6 = vpop.xlane.xlu0 %222  ;;  %v253_v7 = vpop.xlane.xlu1 %252 }
  0xc7   :  { %v791_v23 = vsel %vm748_vm8, %v703_v62, %v790_v49  ;;  %v782_v34 = vsel %vm744_vm6, %v663_v46, %v781_v25  ;;  %v372_v0 = vmul.f32 0.25, %v253_v7 }
  0xc8   :  { %911 = vmatprep.subr.mxu0 %v791_v23 }
  0xc9   :  { %912 = vmatpush3.msra.mxu0 %v791_v23  ;;  %v627_v21 = vrot.slane %v372_v0, %v1354_v22 }
  0xca   :  { %v283_v54 = vpop.xlane.xlu0 %282  ;;  %v1404_v55 = vpop.xlane.xlu1 %192 }
  0xcb   :  { %v382_v61 = vmul.f32 0.25, %v283_v54  ;;  %v774_v62 = vsel %vm742_vm5, %v627_v21, %v773_v52  ;;  %v362_v54 = vmul.f32 0.25, %v1397_v6  ;;  %v352_v51 = vmul.f32 0.25, %v1404_v55 }
  0xcd   :  { %v667_v16 = vrot.slane %v382_v61, %v1354_v22  ;;  %v587_v11 = vrot.slane %v362_v54, %v1354_v22 }
  0xce   :  { %v1410_v38 = vpop.xlane.xlu0 %195  ;;  %v226_v39 = vpop.xlane.xlu1 %225 }
  0xcf   :  { %v783_v37 = vsel %vm746_vm7, %v667_v16, %v782_v34  ;;  %v363_v60 = vmul.f32 0.25, %v226_v39  ;;  %v764_v16 = vsel %vm736_vm2, %v583_v47, %v579_v2  ;;  %v353_v34 = vmul.f32 0.25, %v1410_v38 }
  0xd0   :  { %v765_v39 = vsel %vm738_vm3, %v587_v11, %v764_v16 }
  0xd1   :  { %v591_v13 = vrot.slane %v363_v60, %v1354_v22 }
  0xd2   :  { %v256_v17 = vpop.xlane.xlu0 %255  ;;  %v286_v18 = vpop.xlane.xlu1 %285 }
  0xd3   :  { %v383_v24 = vmul.f32 0.25, %v286_v18  ;;  %v373_v8 = vmul.f32 0.25, %v256_v17 }
  0xd5   :  { %v671_v28 = vrot.slane %v383_v24, %v1354_v22  ;;  %v631_v31 = vrot.slane %v373_v8, %v1354_v22  ;;  %v766_v24 = vsel %vm740_vm4, %v591_v13, %v765_v39  ;;  %v551_v8 = vrot.slane %v353_v34, %v1354_v22 }
  0xd6   :  { %v1422_v35 = vpop.xlane.xlu0 %198  ;;  %v229_v36 = vpop.xlane.xlu1 %228 }
  0xd7   :  { %v784_v44 = vsel %vm748_vm8, %v671_v28, %v783_v37  ;;  %v775_v7 = vsel %vm744_vm6, %v631_v31, %v774_v62  ;;  %v364_v10 = vmul.f32 0.25, %v229_v36 }
  0xd8   :  { %913 = vmatprep.subr.mxu0 %v784_v44 }
  0xd9   :  { %914 = vmatpush3.msra.mxu0 %v784_v44  ;;  %v595_v6 = vrot.slane %v364_v10, %v1354_v22  ;;  %v354_v44 = vmul.f32 0.25, %v1422_v35  ;;  %v547_v35 = vrot.slane %v352_v51, %v1354_v22 }
  0xda   :  { %v259_v58 = vpop.xlane.xlu0 %258  ;;  %v1428_v40 = vpop.xlane.xlu1 %168 }
  0xdb   :  { %v374_v15 = vmul.f32 0.25, %v259_v58  ;;  %v767_v28 = vsel %vm742_vm5, %v595_v6, %v766_v24  ;;  %v555_v9 = vrot.slane %v354_v44, %v1354_v22 }
  0xdd   :  { %v635_v27 = vrot.slane %v374_v15, %v1354_v22 }
  0xde   :  { %v1433_v20 = vpop.xlane.xlu0 %171  ;;  %v202_v14 = vpop.xlane.xlu1 %201 }
  0xdf   :  { %v776_v30 = vsel %vm746_vm7, %v635_v27, %v775_v7  ;;  %v355_v59 = vmul.f32 0.25, %v202_v14  ;;  %v757_v14 = vsel %vm736_vm2, %v551_v8, %v547_v35  ;;  %v345_v26 = vmul.f32 0.25, %v1433_v20 }
  0xe0   :  { %v758_v3 = vsel %vm738_vm3, %v555_v9, %v757_v14  ;;  %v344_v27 = vmul.f32 0.25, %v1428_v40 }
  0xe1   :  { %v559_v29 = vrot.slane %v355_v59, %v1354_v22  ;;  %v519_v20 = vrot.slane %v345_v26, %v1354_v22 }
  0xe2   :  { %v232_v32 = vpop.xlane.xlu0 %231  ;;  %v262_v33 = vpop.xlane.xlu1 %261  ;;  %v515_v40 = vrot.slane %v344_v27, %v1354_v22 }
  0xe3   :  { %v375_v53 = vmul.f32 0.25, %v262_v33  ;;  %v365_v61 = vmul.f32 0.25, %v232_v32  ;;  %v759_v62 = vsel %vm740_vm4, %v559_v29, %v758_v3 }
  0xe4   :  { %v750_v6 = vsel %vm736_vm2, %v519_v20, %v515_v40 }
  0xe5   :  { %v639_v63 = vrot.slane %v375_v53, %v1354_v22  ;;  %v599_v56 = vrot.slane %v365_v61, %v1354_v22 }
  0xe6   :  { %v175_v49 = vpop.xlane.xlu0 %174  ;;  %v205_v23 = vpop.xlane.xlu1 %204 }
  0xe7   :  { %v777_v42 = vsel %vm748_vm8, %v639_v63, %v776_v30  ;;  %v768_v37 = vsel %vm744_vm6, %v599_v56, %v767_v28  ;;  %v356_v1 = vmul.f32 0.25, %v205_v23  ;;  %v346_v32 = vmul.f32 0.25, %v175_v49 }
  0xe8   :  { %915 = vmatprep.subr.mxu0 %v777_v42 }
  0xe9   :  { %916 = vmatpush3.msra.mxu0 %v777_v42  ;;  %v563_v55 = vrot.slane %v356_v1, %v1354_v22  ;;  %v523_v49 = vrot.slane %v346_v32, %v1354_v22 }
  0xea   :  { %v235_v50 = vpop.xlane.xlu0 %234  ;;  %v1450_v41 = vpop.xlane.xlu1 %144 }
  0xeb   :  { %v366_v48 = vmul.f32 0.25, %v235_v50  ;;  %v760_v23 = vsel %vm742_vm5, %v563_v55, %v759_v62  ;;  %v751_v56 = vsel %vm738_vm3, %v523_v49, %v750_v6 }
  0xed   :  { %v603_v17 = vrot.slane %v366_v48, %v1354_v22 }
  0xee   :  { %v148_v12 = vpop.xlane.xlu0 %147  ;;  %v178_v46 = vpop.xlane.xlu1 %177 }
  0xef   :  { %v769_v58 = vsel %vm746_vm7, %v603_v17, %v768_v37  ;;  %v347_v63 = vmul.f32 0.25, %v178_v46  ;;  %v337_v50 = vmul.f32 0.25, %v148_v12  ;;  %v336_v46 = vmul.f32 0.25, %v1450_v41 }
  0xf1   :  { %v527_v47 = vrot.slane %v347_v63, %v1354_v22  ;;  %v487_v39 = vrot.slane %v337_v50, %v1354_v22  ;;  %v483_v34 = vrot.slane %v336_v46, %v1354_v22 }
  0xf2   :  { %v208_v18 = vpop.xlane.xlu0 %207  ;;  %v238_v19 = vpop.xlane.xlu1 %237 }
  0xf3   :  { %v367_v25 = vmul.f32 0.25, %v238_v19  ;;  %v357_v38 = vmul.f32 0.25, %v208_v18  ;;  %v752_v41 = vsel %vm740_vm4, %v527_v47, %v751_v56 }
  0xf5   :  { %v607_v36 = vrot.slane %v367_v25, %v1354_v22  ;;  %v567_v31 = vrot.slane %v357_v38, %v1354_v22 }
  0xf6   :  { %v151_v45 = vpop.xlane.xlu0 %150  ;;  %v181_v57 = vpop.xlane.xlu1 %180 }
  0xf7   :  { %v770_v0 = vsel %vm748_vm8, %v607_v36, %v769_v58  ;;  %v348_v30 = vmul.f32 0.25, %v181_v57  ;;  %v761_v54 = vsel %vm744_vm6, %v567_v31, %v760_v23  ;;  %v338_v61 = vmul.f32 0.25, %v151_v45  ;;  %v401_v31 = vld [vmem:[%s1530_s1 + $0x8] sm:$0x7f] }
  0xf8   :  { %917 = vmatprep.subr.mxu0 %v770_v0  ;;  %v737_v58 = vsel %vm736_vm2, %v487_v39, %v483_v34 }
  0xf9   :  { %918 = vmatpush3.msra.mxu0 %v770_v0  ;;  %v531_v2 = vrot.slane %v348_v30, %v1354_v22  ;;  %v491_v24 = vrot.slane %v338_v61, %v1354_v22 }
  0xfa   :  { %v211_v15 = vpop.xlane.xlu0 %210  ;;  %v154_v5 = vpop.xlane.xlu1 %153 }
  0xfb   :  { %v358_v21 = vmul.f32 0.25, %v211_v15  ;;  %v339_v13 = vmul.f32 0.25, %v154_v5  ;;  %v753_v36 = vsel %vm742_vm5, %v531_v2, %v752_v41  ;;  %v739_v8 = vsel %vm738_vm3, %v491_v24, %v737_v58 }
  0xfd   :  { %v571_v33 = vrot.slane %v358_v21, %v1354_v22  ;;  %v495_v37 = vrot.slane %v339_v13, %v1354_v22 }
  0xfe   :  { %v184_v52 = vpop.xlane.xlu0 %183  ;;  %v214_v53 = vpop.xlane.xlu1 %213 }
  0xff   :  { %v359_v7 = vmul.f32 0.25, %v214_v53  ;;  %v349_v42 = vmul.f32 0.25, %v184_v52  ;;  %v762_v10 = vsel %vm746_vm7, %v571_v33, %v761_v54  ;;  %v741_v5 = vsel %vm740_vm4, %v495_v37, %v739_v8 }
 0x101   :  { %v575_v43 = vrot.slane %v359_v7, %v1354_v22  ;;  %v535_v12 = vrot.slane %v349_v42, %v1354_v22 }
 0x102   :  { %v157_v4 = vpop.xlane.xlu0 %156  ;;  %v187_v60 = vpop.xlane.xlu1 %186 }
 0x103   :  { %v350_v11 = vmul.f32 0.25, %v187_v60  ;;  %v763_v48 = vsel %vm748_vm8, %v575_v43, %v762_v10  ;;  %v340_v16 = vmul.f32 0.25, %v157_v4  ;;  %v754_v57 = vsel %vm744_vm6, %v535_v12, %v753_v36 }
 0x104   :  { %919 = vmatprep.subr.mxu0 %v763_v48 }
 0x105   :  { %920 = vmatpush3.msra.mxu0 %v763_v48  ;;  %v539_v17 = vrot.slane %v350_v11, %v1354_v22  ;;  %v499_v44 = vrot.slane %v340_v16, %v1354_v22 }
 0x106   :  { %v160_v18 = vpop.xlane.xlu0 %159  ;;  %v190_v19 = vpop.xlane.xlu1 %189 }
 0x107   :  { %v341_v25 = vmul.f32 0.25, %v160_v18  ;;  %v351_v28 = vmul.f32 0.25, %v190_v19  ;;  %v755_v1 = vsel %vm746_vm7, %v539_v17, %v754_v57  ;;  %v743_v35 = vsel %vm742_vm5, %v499_v44, %v741_v5 }
 0x109   :  { %v543_v45 = vrot.slane %v351_v28, %v1354_v22  ;;  %v503_v51 = vrot.slane %v341_v25, %v1354_v22 }
 0x10a   :  { %v163_v59 = vpop.xlane.xlu0 %162  ;;  %v166_v0 = vpop.xlane.xlu1 %165 }
 0x10b   :  { %v342_v38 = vmul.f32 0.25, %v163_v59  ;;  %v343_v9 = vmul.f32 0.25, %v166_v0  ;;  %v756_v15 = vsel %vm748_vm8, %v543_v45, %v755_v1  ;;  %v745_v55 = vsel %vm744_vm6, %v503_v51, %v743_v35 }
 0x10c   :  { %921 = vmatprep.subr.mxu0 %v756_v15 }
 0x10d   :  { %v507_v29 = vrot.slane %v342_v38, %v1354_v22  ;;  %v511_v21 = vrot.slane %v343_v9, %v1354_v22  ;;  %922 = vmatpush3.msra.mxu0 %v756_v15 }
 0x10e   :  { %v412_v3 = vpop.permute.xlu1 %411 }
 0x10f   :  { %v747_v14 = vsel %vm746_vm7, %v507_v29, %v745_v55 }
 0x110   :  { %v749_v26 = vsel %vm748_vm8, %v511_v21, %v747_v14 }
 0x111   :  { %923 = vmatprep.subr.mxu0 %v749_v26 }
 0x112   :  { %924 = vmatpush3.msra.mxu0 %v749_v26  ;;  %v407_v32 = vpop.permute.xlu0 %406 }
 0x113   :  { %926 = vmatmul.mubr.msk.f32.vlgmr.msra.gmra.mxu0 %vm807_vm1, %v401_v31 }
 0x1d3   :  { %v927_v27 = vpop.f32.mrf.mxu0 }
 0x1d4   :  { %v886_v22 = vadd.f32 %v927_v27, %v412_v3 }
 0x1d5   :  { %v880_v33 = vpop.f32.mrf.mxu0 }
 0x1d6   :  { %892 = vst.msk [vmem:[%s1532_s3 + $0x8] sm:$0x7f] %vm891_vm9, %v886_v22  ;;  %v881_v52 = vadd.f32 %v880_v33, %v407_v32 }
 0x1d8   :  { %890 = vst.msk [vmem:[%s1532_s3] sm:$0xff] %vm889_vm10, %v881_v52 }

// kernel: resnet2fcl_forward.18
= control target key start
LH: loop header
LB: loop body
LE: loop exit
PB: predicated region body
PF: predicated region fallthrough
CT: control target
= control target key end

     0   :  { %v1037_v1 = vmov 0   ;;  %vm478_vm0 = vcmask 523264   ;;  %vm750_vm1 = vcmask 60416   ;;  %s1328_s0 = inlined_call_operand.vmem [shape: bf16[576,8], index: 0, kind: input, shape index: {}]   ;;  %s1329_s1 = inlined_call_operand.vmem [shape: bf16[64,576], index: 1, kind: input, shape index: {}]   ;;  %s1330_s2 = inlined_call_operand.vmem [shape: f32[64,1], index: 2, kind: input, shape index: {}]   ;;  %s1331_s3 = inlined_call_operand.vmem [shape: bf16[64,8], index: 3, kind: input, shape index: {}]   ;;  %s1332_s4 = inlined_call_operand.vmem [shape: bf16[64,8], index: 4, kind: output, shape index: {}]  }
   0x1   :  { %v973_v0 = vld [vmem:[%s1328_s0 + $0x78] sm:$0xff]   ;;  %971 = vset.pattern.permute.xlu0 %v1037_v1  ;;  %972 = vset.pattern.permute.xlu1 %v1037_v1  ;;  %v977_v5 = vld [vmem:[%s1328_s0 + $0x70] sm:$0xff]   ;;  %v981_v9 = vld [vmem:[%s1328_s0 + $0x68] sm:$0xff]  }
   0x2   :  { %v974_v2 = vld [vmem:[%s1328_s0 + $0xf8] sm:$0xff]   ;;  %858 = vmatprep.subr.bf16.mxu0 %v973_v0  ;;  %v978_v6 = vld [vmem:[%s1328_s0 + $0xf0] sm:$0xff]   ;;  %v982_v10 = vld [vmem:[%s1328_s0 + $0xe8] sm:$0xff]  }
   0x3   :  { %v975_v3 = vld [vmem:[%s1328_s0 + $0x38] sm:$0xff]   ;;  %898 = vmatprep.subr.bf16.mxu1 %v974_v2  ;;  %v979_v7 = vld [vmem:[%s1328_s0 + $0x30] sm:$0xff]   ;;  %v983_v11 = vld [vmem:[%s1328_s0 + $0x28] sm:$0xff]  }
   0x4   :  { %v976_v4 = vld [vmem:[%s1328_s0 + $0xb8] sm:$0xff]   ;;  %859 = vmatpush3.bf16.msra.mxu0 %v975_v3  ;;  %v980_v8 = vld [vmem:[%s1328_s0 + $0xb0] sm:$0xff]   ;;  %v984_v12 = vld [vmem:[%s1328_s0 + $0xa8] sm:$0xff]  }
   0x5   :  { %899 = vmatpush3.bf16.msra.mxu1 %v976_v4  ;;  %860 = vmatprep.subr.bf16.mxu0 %v977_v5  ;;  %v985_v13 = vld [vmem:[%s1328_s0 + $0x60] sm:$0xff]   ;;  %v989_v17 = vld [vmem:[%s1328_s0 + $0x58] sm:$0xff]   ;;  %v993_v21 = vld [vmem:[%s1328_s0 + $0x50] sm:$0xff]  }
   0x6   :  { %900 = vmatprep.subr.bf16.mxu1 %v978_v6  ;;  %v986_v14 = vld [vmem:[%s1328_s0 + $0xe0] sm:$0xff]   ;;  %v990_v18 = vld [vmem:[%s1328_s0 + $0xd8] sm:$0xff]   ;;  %v994_v22 = vld [vmem:[%s1328_s0 + $0xd0] sm:$0xff]  }
   0x7   :  { %v987_v15 = vld [vmem:[%s1328_s0 + $0x20] sm:$0xff]   ;;  %v991_v19 = vld [vmem:[%s1328_s0 + $0x18] sm:$0xff]   ;;  %v995_v23 = vld [vmem:[%s1328_s0 + $0x10] sm:$0xff]  }
   0x8   :  { %861 = vmatpush3.bf16.msra.mxu0 %v979_v7  ;;  %v988_v16 = vld [vmem:[%s1328_s0 + $0xa0] sm:$0xff]   ;;  %v992_v20 = vld [vmem:[%s1328_s0 + $0x98] sm:$0xff]   ;;  %v996_v24 = vld [vmem:[%s1328_s0 + $0x90] sm:$0xff]  }
   0x9   :  { %901 = vmatpush3.bf16.msra.mxu1 %v980_v8  ;;  %862 = vmatprep.subr.bf16.mxu0 %v981_v9  ;;  %v997_v25 = vld [vmem:[%s1328_s0 + $0x48] sm:$0xff]   ;;  %v1001_v29 = vld [vmem:[%s1328_s0 + $0x40] sm:$0xff]   ;;  %v1011_v37 = vld [vmem:[%s1328_s0 + $0x118] sm:$0xff]  }
   0xa   :  { %902 = vmatprep.subr.bf16.mxu1 %v982_v10  ;;  %v998_v26 = vld [vmem:[%s1328_s0 + $0xc8] sm:$0xff]   ;;  %v1002_v30 = vld [vmem:[%s1328_s0 + $0xc0] sm:$0xff]   ;;  %v1018_v40 = vld [vmem:[%s1328_s0 + $0x110] sm:$0xff]  }
   0xb   :  { %v999_v27 = vld [vmem:[%s1328_s0 + $0x8] sm:$0xff]   ;;  %v1003_v31 = vld [vmem:[%s1328_s0] sm:$0xff]   ;;  %v1021_v44 = vld [vmem:[%s1329_s1 + $0x5c] ss:$20 sps:$4 sm:$0xff]  }
   0xc   :  { %863 = vmatpush3.bf16.msra.mxu0 %v983_v11  ;;  %v1000_v28 = vld [vmem:[%s1328_s0 + $0x88] sm:$0xff]   ;;  %v1004_v32 = vld [vmem:[%s1328_s0 + $0x80] sm:$0xff]   ;;  %v1026_v49 = vld [vmem:[%s1329_s1 + $0x7c] ss:$20 sps:$4 sm:$0xff]  }
   0xd   :  { %903 = vmatpush3.bf16.msra.mxu1 %v984_v12  ;;  %864 = vmatprep.subr.bf16.mxu0 %v985_v13  ;;  %v1005_v33 = vld [vmem:[%s1329_s1] ss:$20 sps:$4 sm:$0xff]   ;;  %v1007_v34 = vld [vmem:[%s1329_s1 + $0x4] ss:$20 sps:$4 sm:$0xff]   ;;  %v1008_v35 = vld [vmem:[%s1329_s1 + $0x8] ss:$20 sps:$4 sm:$0xff]  }
   0xe   :  { %904 = vmatprep.subr.bf16.mxu1 %v986_v14  ;;  %v1010_v36 = vld [vmem:[%s1329_s1 + $0xc] ss:$20 sps:$4 sm:$0xff]   ;;  %523 = vmatprep.mubr.bf16.mxu0 %v1007_v34  ;;  %v1014_v39 = vld [vmem:[%s1329_s1 + $0x34] ss:$20 sps:$4 sm:$0xff]   ;;  %v1017_v42 = vld [vmem:[%s1329_s1 + $0x30] ss:$20 sps:$4 sm:$0xff]  }
   0xf   :  { %588 = vmatprep.mubr.bf16.mxu1 %v1010_v36  ;;  %v1012_v38 = vld [vmem:[%s1329_s1 + $0x2c] ss:$20 sps:$4 sm:$0xff]   ;;  %v1016_v41 = vld [vmem:[%s1329_s1 + $0x28] ss:$20 sps:$4 sm:$0xff]   ;;  %v1023_v47 = vld [vmem:[%s1329_s1 + $0x50] ss:$20 sps:$4 sm:$0xff]  }
  0x10   :  { %865 = vmatpush3.bf16.msra.mxu0 %v987_v15  ;;  %v1019_v43 = vld [vmem:[%s1329_s1 + $0x54] ss:$20 sps:$4 sm:$0xff]   ;;  %v1032_v46 = vld [vmem:[%s1328_s0 + $0x100] sm:$0xff]   ;;  %v1024_v48 = vld [vmem:[%s1329_s1 + $0x58] ss:$20 sps:$4 sm:$0xff]  }
  0x11   :  { %905 = vmatpush3.bf16.msra.mxu1 %v988_v16  ;;  %866 = vmatprep.subr.bf16.mxu0 %v989_v17  ;;  %v1025_v45 = vld [vmem:[%s1328_s0 + $0x108] sm:$0xff]   ;;  %v1028_v50 = vld [vmem:[%s1329_s1 + $0x84] ss:$20 sps:$4 sm:$0xff]   ;;  %v116_v52 = vld [vmem:[%s1330_s2 + $0x10] sm:$0xff] }
  0x12   :  { %906 = vmatprep.subr.bf16.mxu1 %v990_v18  ;;  %v114_v51 = vld [vmem:[%s1330_s2] sm:$0xff]  ;;  %v115_v53 = vld [vmem:[%s1330_s2 + $0x8] sm:$0xff]  ;;  %134 = vperm.xlu1 %972, %v116_v52   ;;  %v117_v54 = vld [vmem:[%s1330_s2 + $0x18] sm:$0xff] }
  0x13   :  { %124 = vperm.xlu0 %971, %v114_v51   ;;  %v1030_v55 = vld [vmem:[%s1329_s1 + $0x78] ss:$20 sps:$4 sm:$0xff]   ;;  %v1031_v56 = vld [vmem:[%s1329_s1 + $0x80] ss:$20 sps:$4 sm:$0xff]   ;;  %v1033_v57 = vld [vmem:[%s1329_s1 + $0x10] ss:$20 sps:$4 sm:$0xff]  }
  0x14   :  { %867 = vmatpush3.bf16.msra.mxu0 %v991_v19  ;;  %v118_v58 = vld [vmem:[%s1330_s2 + $0x20] sm:$0xff]  ;;  %v119_v60 = vld [vmem:[%s1330_s2 + $0x28] sm:$0xff]  ;;  %v120_v61 = vld [vmem:[%s1330_s2 + $0x30] sm:$0xff] }
  0x15   :  { %907 = vmatpush3.bf16.msra.mxu1 %v992_v20  ;;  %868 = vmatprep.subr.bf16.mxu0 %v993_v21  ;;  %v1034_v59 = vld [vmem:[%s1329_s1 + $0x60] ss:$20 sps:$4 sm:$0xff]   ;;  %v121_v62 = vld [vmem:[%s1330_s2 + $0x38] sm:$0xff] }
  0x16   :  { %908 = vmatprep.subr.bf16.mxu1 %v994_v22  ;;  %139 = vperm.xlu1 %972, %v117_v54   ;;  %v1035_v63 = vld [vmem:[%s1329_s1 + $0x38] ss:$20 sps:$4 sm:$0xff]   ;;  %v1036_v0 = vld [vmem:[%s1329_s1 + $0x88] ss:$20 sps:$4 sm:$0xff]  }
  0x17   :  { %129 = vperm.xlu0 %971, %v115_v53  }
  0x18   :  { %869 = vmatpush3.bf16.msra.mxu0 %v995_v23 }
  0x19   :  { %909 = vmatpush3.bf16.msra.mxu1 %v996_v24  ;;  %870 = vmatprep.subr.bf16.mxu0 %v997_v25 }
  0x1a   :  { %910 = vmatprep.subr.bf16.mxu1 %v998_v26  ;;  %149 = vperm.xlu1 %972, %v119_v60  }
  0x1b   :  { %144 = vperm.xlu0 %971, %v118_v58  }
  0x1c   :  { %871 = vmatpush3.bf16.msra.mxu0 %v999_v27 }
  0x1d   :  { %911 = vmatpush3.bf16.msra.mxu1 %v1000_v28  ;;  %872 = vmatprep.subr.bf16.mxu0 %v1001_v29 }
  0x1e   :  { %912 = vmatprep.subr.bf16.mxu1 %v1002_v30  ;;  %159 = vperm.xlu1 %972, %v121_v62  }
  0x1f   :  { %154 = vperm.xlu0 %971, %v120_v61  }
  0x20   :  { %873 = vmatpush3.bf16.msra.mxu0 %v1003_v31  ;;  %v1268_v31 = vld [vmem:[%s1331_s3 + $0x8] sm:$0xff]  }
  0x21   :  { %913 = vmatpush3.bf16.msra.mxu1 %v1004_v32  ;;  %946 = vmatprep.subr.bf16.mxu0 %v1011_v37  ;;  %v1273_v32 = vld [vmem:[%s1331_s3 + $0x18] sm:$0xff]   ;;  %v846_v53 = vunpack.c.h.bf16 %v1268_v31 }
  0x22   :  { %962 = vmatprep.subr.bf16.mxu1 %v1011_v37  ;;  %v854_v58 = vunpack.c.h.bf16 %v1273_v32 }
  0x23   :  { %524 = vmatmul.mubr.bf16.vlgmr.msra.gmra.mxu0 %v1005_v33 }
  0x24   :  { %589 = vmatmul.mubr.bf16.vlgmr.msra.gmra.mxu1 %v1008_v35  ;;  %947 = vmatpush3.bf16.msra.mxu0 %v1011_v37  ;;  %v1278_v35 = vld [vmem:[%s1331_s3] sm:$0xff]  }
  0x25   :  { %966 = vmatpush3.bf16.msra.mxu1 %v1011_v37  ;;  %531 = vmatprep.mubr.bf16.mxu0 %v1012_v38  ;;  %v1283_v37 = vld [vmem:[%s1331_s3 + $0x10] sm:$0xff]  }
  0x26   :  { %596 = vmatprep.mubr.bf16.mxu1 %v1014_v39  ;;  %948 = vmatprep.subr.bf16.mxu0 %v1018_v40  ;;  %v849_v52 = vunpack.c.l.bf16 %v1283_v37 }
  0x27   :  { %963 = vmatprep.subr.bf16.mxu1 %v1018_v40 }
  0x28   :  { %949 = vmatpush3.bf16.msra.mxu0 %v1018_v40 }
  0x29   :  { %967 = vmatpush3.bf16.msra.mxu1 %v1018_v40  ;;  %950 = vmatprep.subr.bf16.mxu0 %v1025_v45 }
  0x2a   :  { %964 = vmatprep.subr.bf16.mxu1 %v1025_v45 }
  0x2b   :  { %532 = vmatmul.mubr.bf16.gmra.mxu0 %v1016_v41  ;;  %v845_v41 = vunpack.c.l.bf16 %v1268_v31 }
  0x2c   :  { %597 = vmatmul.mubr.bf16.gmra.mxu1 %v1017_v42  ;;  %539 = vmatprep.mubr.bf16.mxu0 %v1019_v43  ;;  %v853_v42 = vunpack.c.l.bf16 %v1273_v32 }
  0x2d   :  { %604 = vmatprep.mubr.bf16.mxu1 %v1021_v44  ;;  %951 = vmatpush3.bf16.msra.mxu0 %v1025_v45 }
  0x2e   :  { %968 = vmatpush3.bf16.msra.mxu1 %v1025_v45  ;;  %952 = vmatprep.subr.bf16.mxu0 %v1032_v46 }
  0x2f   :  { %965 = vmatprep.subr.bf16.mxu1 %v1032_v46 }
  0x31   :  { %953 = vmatpush3.bf16.msra.mxu0 %v1032_v46 }
  0x32   :  { %969 = vmatpush3.bf16.msra.mxu1 %v1032_v46 }
  0x33   :  { %540 = vmatmul.mubr.bf16.gmra.mxu0 %v1023_v47  ;;  %v841_v47 = vunpack.c.l.bf16 %v1278_v35 }
  0x34   :  { %605 = vmatmul.mubr.bf16.gmra.mxu1 %v1024_v48  ;;  %547 = vmatprep.mubr.bf16.mxu0 %v1026_v49 }
  0x35   :  { %612 = vmatprep.mubr.bf16.mxu1 %v1028_v50 }
  0x3b   :  { %548 = vmatmul.mubr.bf16.gmra.mxu0 %v1030_v55 }
  0x3c   :  { %613 = vmatmul.mubr.bf16.gmra.mxu1 %v1031_v56  ;;  %954 = vmatprep.mubr.msk.bf16.mxu0 %vm478_vm0, %v1033_v57 }
  0x3d   :  { %958 = vmatprep.mubr.msk.bf16.mxu1 %vm478_vm0, %v1034_v59 }
  0x43   :  { %955 = vmatmul.mubr.msk.bf16.vlgmr.msra.gmra.mxu0 %vm478_vm0, %v1035_v63 }
  0x44   :  { %959 = vmatmul.mubr.msk.bf16.vlgmr.msra.gmra.mxu1 %vm478_vm0, %v1036_v0 }
  0x8d   :  { %v135_v16 = vpop.permute.xlu1 %134 }
  0x8e   :  { %v125_v13 = vpop.permute.xlu0 %124 }
  0x91   :  { %v140_v24 = vpop.permute.xlu1 %139 }
  0x92   :  { %v130_v21 = vpop.permute.xlu0 %129 }
  0x95   :  { %v150_v39 = vpop.permute.xlu1 %149 }
  0x96   :  { %v145_v27 = vpop.permute.xlu0 %144 }
  0x9a   :  { %v155_v50 = vpop.permute.xlu0 %154 }
  0xe3   :  { %v874_v1 = vpop.f32.mrf.mxu0 }
  0xe4   :  { %v914_v2 = vpop.f32.mrf.mxu1 }
  0xe5   :  { %v875_v3 = vpop.f32.mrf.mxu0 }
  0xe6   :  { %v915_v4 = vpop.f32.mrf.mxu1  ;;  %v876_v33 = vadd.f32 %v875_v3, %v874_v1 }
  0xe7   :  { %v877_v5 = vpop.f32.mrf.mxu0  ;;  %v916_v59 = vadd.f32 %v915_v4, %v914_v2 }
  0xe8   :  { %v1259_v6 = vpop.f32.mrf.mxu1  ;;  %v526_v48 = vadd.f32 %v876_v33, %v125_v13  ;;  %v850_v33 = vunpack.c.h.bf16 %v1283_v37 }
  0xe9   :  { %v878_v7 = vpop.f32.mrf.mxu0 }
  0xea   :  { %v1261_v8 = vpop.f32.mrf.mxu1  ;;  %v879_v49 = vadd.f32 %v878_v7, %v877_v5 }
  0xeb   :  { %v880_v9 = vpop.f32.mrf.mxu0 }
  0xec   :  { %v920_v10 = vpop.f32.mrf.mxu1  ;;  %v529_v7 = vadd.f32 %v879_v49, %v130_v21 }
  0xed   :  { %v881_v11 = vpop.f32.mrf.mxu0 }
  0xee   :  { %v921_v12 = vpop.f32.mrf.mxu1  ;;  %v882_v29 = vadd.f32 %v881_v11, %v880_v9  ;;  %v160_v11 = vpop.permute.xlu1 %159 }
  0xef   :  { %v883_v14 = vpop.f32.mrf.mxu0  ;;  %v922_v54 = vadd.f32 %v921_v12, %v920_v10  ;;  %v591_v10 = vadd.f32 %v916_v59, %v526_v48  ;;  %v842_v12 = vunpack.c.h.bf16 %v1278_v35 }
  0xf0   :  { %v923_v15 = vpop.f32.mrf.mxu1  ;;  %v534_v43 = vadd.f32 %v882_v29, %v135_v16 }
  0xf1   :  { %v884_v17 = vpop.f32.mrf.mxu0 }
  0xf2   :  { %v924_v18 = vpop.f32.mrf.mxu1  ;;  %v885_v44 = vadd.f32 %v884_v17, %v883_v14  ;;  %v599_v3 = vadd.f32 %v922_v54, %v534_v43 }
  0xf3   :  { %v886_v19 = vpop.f32.mrf.mxu0  ;;  %v925_v14 = vadd.f32 %v924_v18, %v923_v15 }
  0xf4   :  { %v926_v20 = vpop.f32.mrf.mxu1  ;;  %v537_v63 = vadd.f32 %v885_v44, %v140_v24 }
  0xf5   :  { %v887_v22 = vpop.f32.mrf.mxu0 }
  0xf6   :  { %v927_v23 = vpop.f32.mrf.mxu1  ;;  %v888_v38 = vadd.f32 %v887_v22, %v886_v19  ;;  %v919_v19 = vadd.f32 %v1261_v8, %v1259_v6 }
  0xf7   :  { %v889_v25 = vpop.f32.mrf.mxu0  ;;  %v928_v9 = vadd.f32 %v927_v23, %v926_v20  ;;  %v602_v23 = vadd.f32 %v925_v14, %v537_v63 }
  0xf8   :  { %v1263_v26 = vpop.f32.mrf.mxu1  ;;  %v542_v60 = vadd.f32 %v888_v38, %v145_v27  ;;  %v594_v8 = vadd.f32 %v919_v19, %v529_v7 }
  0xf9   :  { %v890_v28 = vpop.f32.mrf.mxu0 }
  0xfa   :  { %v930_v30 = vpop.f32.mrf.mxu1  ;;  %v891_v61 = vadd.f32 %v890_v28, %v889_v25  ;;  %v607_v27 = vadd.f32 %v928_v9, %v542_v60 }
  0xfb   :  { %v892_v34 = vpop.f32.mrf.mxu0  ;;  %v931_v31 = vadd.f32 %v930_v30, %v1263_v26 }
  0xfc   :  { %v932_v36 = vpop.f32.mrf.mxu1  ;;  %v545_v22 = vadd.f32 %v891_v61, %v150_v39 }
  0xfd   :  { %v893_v40 = vpop.f32.mrf.mxu0 }
  0xfe   :  { %v894_v45 = vadd.f32 %v893_v40, %v892_v34  ;;  %v933_v46 = vpop.f32.mrf.mxu1  ;;  %v610_v43 = vadd.f32 %v931_v31, %v545_v22 }
  0xff   :  { %v895_v51 = vpop.f32.mrf.mxu0  ;;  %v934_v56 = vadd.f32 %v933_v46, %v932_v36 }
 0x100   :  { %v550_v55 = vadd.f32 %v894_v45, %v155_v50  ;;  %v935_v57 = vpop.f32.mrf.mxu1 }
 0x101   :  { %v896_v62 = vpop.f32.mrf.mxu0 }
 0x102   :  { %v897_v0 = vadd.f32 %v896_v62, %v895_v51  ;;  %v936_v1 = vpop.f32.mrf.mxu1  ;;  %v615_v5 = vadd.f32 %v934_v56, %v550_v55 }
 0x103   :  { %v956_v13 = vpop.f32.mrf.mxu0  ;;  %v937_v17 = vadd.f32 %v936_v1, %v935_v57 }
 0x104   :  { %v553_v16 = vadd.f32 %v897_v0, %v160_v11  ;;  %v664_v2 = vadd.f32 %v956_v13, %v599_v3  ;;  %v960_v4 = vpop.f32.mrf.mxu1 }
 0x105   :  { %v680_v24 = vadd.f32 %v960_v4, %v615_v5  ;;  %v655_v25 = vpop.f32.mrf.mxu0 }
 0x106   :  { %v704_v28 = vadd.f32 %v845_v41, %v664_v2  ;;  %v656_v21 = vadd.f32 %v655_v25, %v591_v10  ;;  %v671_v20 = vpop.f32.mrf.mxu1  ;;  %v618_v29 = vadd.f32 %v937_v17, %v553_v16 }
 0x107   :  { %v708_v32 = vadd.f32 %v853_v42, %v680_v24  ;;  %v672_v15 = vadd.f32 %v671_v20, %v607_v27  ;;  %v957_v18 = vpop.f32.mrf.mxu0 }
 0x108   :  { %v712_v34 = vmax.f32 %v704_v28, 0.0  ;;  %v702_v35 = vadd.f32 %v841_v47, %v656_v21  ;;  %v667_v36 = vadd.f32 %v957_v18, %v602_v23  ;;  %v961_v6 = vpop.f32.mrf.mxu1 }
 0x109   :  { %v716_v38 = vmax.f32 %v708_v32, 0.0  ;;  %v706_v39 = vadd.f32 %v849_v52, %v672_v15  ;;  %v683_v40 = vadd.f32 %v961_v6, %v618_v29  ;;  %v658_v41 = vpop.f32.mrf.mxu0 }
 0x10a   :  { %v833_v44 = vpack.c.bf16 %v712_v34, %v712_v34  ;;  %v710_v45 = vmax.f32 %v702_v35, 0.0  ;;  %v705_v46 = vadd.f32 %v846_v53, %v667_v36  ;;  %v659_v48 = vadd.f32 %v658_v41, %v594_v8  ;;  %v674_v26 = vpop.f32.mrf.mxu1 }
 0x10b   :  { %v837_v30 = vpack.c.bf16 %v716_v38, %v716_v38  ;;  %v714_v42 = vmax.f32 %v706_v39, 0.0  ;;  %v709_v49 = vadd.f32 %v854_v58, %v683_v40  ;;  %v675_v50 = vadd.f32 %v674_v26, %v610_v43 }
 0x10c   :  { %753 = vst.msk [vmem:[%s1332_s4 + $0x8] sm:$0xf] %vm750_vm1, %v833_v44  ;;  %v831_v37 = vpack.c.bf16 %v710_v45, %v710_v45  ;;  %v713_v47 = vmax.f32 %v705_v46, 0.0  ;;  %v703_v51 = vadd.f32 %v842_v12, %v659_v48 }
 0x10d   :  { %757 = vst.msk [vmem:[%s1332_s4 + $0x18] sm:$0xf] %vm750_vm1, %v837_v30  ;;  %v835_v52 = vpack.c.bf16 %v714_v42, %v714_v42  ;;  %v717_v53 = vmax.f32 %v709_v49, 0.0  ;;  %v707_v54 = vadd.f32 %v850_v33, %v675_v50 }
 0x10e   :  { %751 = vst.msk [vmem:[%s1332_s4] sm:$0xf] %vm750_vm1, %v831_v37  ;;  %v834_v55 = vpack.c.bf16 %v713_v47, %v713_v47  ;;  %v711_v56 = vmax.f32 %v703_v51, 0.0 }
 0x10f   :  { %755 = vst.msk [vmem:[%s1332_s4 + $0x10] sm:$0xf] %vm750_vm1, %v835_v52  ;;  %v838_v57 = vpack.c.bf16 %v717_v53, %v717_v53  ;;  %v715_v58 = vmax.f32 %v707_v54, 0.0 }
 0x110   :  { %754 = vst.msk [vmem:[%s1332_s4 + $0xc] sm:$0xf] %vm750_vm1, %v834_v55  ;;  %v832_v59 = vpack.c.bf16 %v711_v56, %v711_v56 }
 0x111   :  { %758 = vst.msk [vmem:[%s1332_s4 + $0x1c] sm:$0xf] %vm750_vm1, %v838_v57  ;;  %v836_v60 = vpack.c.bf16 %v715_v58, %v715_v58 }
 0x112   :  { %752 = vst.msk [vmem:[%s1332_s4 + $0x4] sm:$0xf] %vm750_vm1, %v832_v59 }
 0x113   :  { %756 = vst.msk [vmem:[%s1332_s4 + $0x14] sm:$0xf] %vm750_vm1, %v836_v60 }

</bundles_post_ra>
